<compile_context>
chip_gen: v7x
topology: tpu7x:2x2x1
jax: 0.10.0
libtpu: 0.0.40
codegen_flags: <defaults>
</compile_context>

<pallas_src>
import jax
import jax.numpy as jnp
from jax.experimental import pallas as pl
from jax.experimental.pallas import tpu as pltpu

# --- model hyper-parameters (small, TPU-friendly) ---------------------------
VOCAB_SIZE  = 256
EMBED_DIM   = 16
WINDOW_SIZE = 8
N_HIDDEN    = 128
IN_DIM      = WINDOW_SIZE * EMBED_DIM   # 128


def ngram_kernel(idx_ref,     # VMEM (TILE_B, WINDOW)              int32
                 efold_ref,   # VMEM (WINDOW, VOCAB, N_HIDDEN)     bf16  == emb @ W1 (folded)
                 b1_ref,      # VMEM (1, N_HIDDEN)                 f32
                 w2_ref,      # VMEM (N_HIDDEN, VOCAB)             bf16  == l2.weight.T
                 b2_ref,      # VMEM (1, VOCAB)                    f32
                 out_ref):    # VMEM (TILE_B, VOCAB)               f32
    tb = idx_ref.shape[0]                                           # static block size
    idx = idx_ref[...]                                              # (tb, WINDOW)
    vocab_iota = jax.lax.broadcasted_iota(jnp.int32, (tb, VOCAB_SIZE), 1)

    # Hidden pre-activation: start from the broadcast bias (hoisted, single
    # broadcast), then accumulate one full-width MXU matmul per window position.
    # Folded gather+layer1: h += onehot(tok_i) @ (emb @ W1_slice_i).
    h = jnp.broadcast_to(b1_ref[...], (tb, N_HIDDEN))                # f32
    for i in range(WINDOW_SIZE):                                     # static unroll
        tok = idx[:, i:i + 1]                                        # (tb, 1)
        onehot = (vocab_iota == tok).astype(jnp.bfloat16)            # compare -> cast at MXU edge
        h = h + jnp.dot(onehot, efold_ref[i],                        # (tb,256)@(256,128)
                        preferred_element_type=jnp.float32)
    h = jnp.maximum(h, 0.0)                                          # ReLU, f32

    # Layer 2: (tb, N_HIDDEN) @ (N_HIDDEN, VOCAB).
    logits = jnp.dot(h.astype(jnp.bfloat16), w2_ref[...],
                     preferred_element_type=jnp.float32) + b2_ref[...]

    # Numerically-stable log_softmax along dim=1.
    m = jnp.max(logits, axis=1, keepdims=True)
    shifted = logits - m
    lse = jnp.log(jnp.sum(jnp.exp(shifted), axis=1, keepdims=True))
    out_ref[...] = shifted - lse


def _pick_tile_b(B: int) -> int:
    # Prefer 256 (fills the 2x256^2 MXU M dim on v6e/v7x) but keep >= 2 grid
    # steps so v7x's second TensorCore gets work; 128 already fills v5e's MXU.
    for tb in (256, 128):
        if pl.cdiv(B, tb) >= 2:
            return tb
    return 128


@jax.jit
def ngram_forward(idx, emb_bf16, w1_t_bf16, b1, w2_t_bf16, b2):
    """idx: (B, WINDOW) int32; each row is one NGramModel.forward() call.

    Tokens are assumed in-range; an out-of-range token yields an all-zero
    embedding row (one-hot gather cannot fault).
    """
    idx = idx.astype(jnp.int32)
    B = idx.shape[0]
    tile_b = _pick_tile_b(B)
    Bp = pl.cdiv(B, tile_b) * tile_b
    if Bp != B:
        idx = jnp.pad(idx, ((0, Bp - B), (0, 0)))

    # Fold W1 into per-position embedding tables:
    #   E[i] = emb @ W1[i*D:(i+1)*D, :]   -> (WINDOW, VOCAB, N_HIDDEN) bf16 (~512 KiB)
    w1_blocks = w1_t_bf16.reshape(WINDOW_SIZE, EMBED_DIM, N_HIDDEN)
    efold = jnp.einsum(
        "vd,wdh->wvh",
        emb_bf16.astype(jnp.float32), w1_blocks.astype(jnp.float32),
    ).astype(jnp.bfloat16)

    flops = 2 * Bp * (WINDOW_SIZE * VOCAB_SIZE * N_HIDDEN + N_HIDDEN * VOCAB_SIZE)
    bytes_accessed = (efold.size * 2 + w2_t_bf16.size * 2 + b1.size * 4 + b2.size * 4
                      + Bp * (WINDOW_SIZE * 4 + VOCAB_SIZE * 4))

    out = pl.pallas_call(
        ngram_kernel,
        out_shape=jax.ShapeDtypeStruct((Bp, VOCAB_SIZE), jnp.float32),
        grid=(Bp // tile_b,),
        in_specs=[
            pl.BlockSpec((tile_b, WINDOW_SIZE), lambda b: (b, 0)),              # idx: tiled over batch
            pl.BlockSpec((WINDOW_SIZE, VOCAB_SIZE, N_HIDDEN), lambda b: (0, 0, 0)),  # folded tables resident
            pl.BlockSpec((1, N_HIDDEN), lambda b: (0, 0)),
            pl.BlockSpec((N_HIDDEN, VOCAB_SIZE), lambda b: (0, 0)),
            pl.BlockSpec((1, VOCAB_SIZE), lambda b: (0, 0)),
        ],
        out_specs=pl.BlockSpec((tile_b, VOCAB_SIZE), lambda b: (b, 0)),
        compiler_params=pltpu.CompilerParams(
            dimension_semantics=("parallel",)),       # v7x: split batch across both TCs
        cost_estimate=pl.CostEstimate(
            flops=flops,
            transcendentals=Bp * VOCAB_SIZE,
            bytes_accessed=bytes_accessed),
    )(idx, efold, b1, w2_t_bf16, b2)
    return out[:B]


def reference_forward(idx, emb, w1_t, b1, w2_t, b2):
    """Pure-JAX reference with the same bf16-weight / f32-accumulate policy
    (structurally mirrors the PyTorch module: gather -> L1 -> ReLU -> L2 -> log_softmax)."""
    idx = idx.astype(jnp.int32)
    g = emb[idx].reshape(idx.shape[0], -1)                          # (B, IN_DIM) bf16
    h = jnp.dot(g, w1_t, preferred_element_type=jnp.float32) + b1
    h = jnp.maximum(h, 0.0)
    logits = jnp.dot(h.astype(jnp.bfloat16), w2_t,
                     preferred_element_type=jnp.float32) + b2
    return jax.nn.log_softmax(logits, axis=1)


if __name__ == "__main__":
    key = jax.random.PRNGKey(0)
    k_idx, k_emb, k_w1, k_b1, k_w2, k_b2 = jax.random.split(key, 6)

    B = 256   # batch of independent n-gram windows (each row == one module forward)
    idx = jax.random.randint(k_idx, (B, WINDOW_SIZE), 0, VOCAB_SIZE, dtype=jnp.int32)

    # PyTorch Linear weights are (out, in); store transposed (in, out) for the kernel.
    # Weights in bf16, biases in f32.
    emb  = (jax.random.normal(k_emb, (VOCAB_SIZE, EMBED_DIM), jnp.float32) * 0.1
            ).astype(jnp.bfloat16)
    w1_t = (jax.random.normal(k_w1, (IN_DIM, N_HIDDEN), jnp.float32) * 0.05
            ).astype(jnp.bfloat16)
    b1   = jax.random.normal(k_b1, (1, N_HIDDEN), jnp.float32) * 0.05
    w2_t = (jax.random.normal(k_w2, (N_HIDDEN, VOCAB_SIZE), jnp.float32) * 0.05
            ).astype(jnp.bfloat16)
    b2   = jax.random.normal(k_b2, (1, VOCAB_SIZE), jnp.float32) * 0.05

    out = jax.block_until_ready(ngram_forward(idx, emb, w1_t, b1, w2_t, b2))
    ref = reference_forward(idx, emb, w1_t, b1, w2_t, b2)

    assert out.shape == (B, VOCAB_SIZE)
    assert jnp.allclose(out, ref, rtol=1e-2, atol=1e-2), (
        f"mismatch vs JAX reference: max |diff| = {jnp.max(jnp.abs(out - ref))}")

    print("KERNEL_OK")
</pallas_src>

<mosaic_0001>
module attributes {stable_mosaic.version = 11 : i64} {
  func.func @ngram_kernel(%arg0: i32, %arg1: memref<128x8xi32, #tpu.memory_space<vmem>>, %arg2: memref<8x256x128xbf16, #tpu.memory_space<vmem>>, %arg3: memref<1x128xf32, #tpu.memory_space<vmem>>, %arg4: memref<128x256xbf16, #tpu.memory_space<vmem>>, %arg5: memref<1x256xf32, #tpu.memory_space<vmem>>, %arg6: memref<128x256xf32, #tpu.memory_space<vmem>>) attributes {dimension_semantics = [#tpu.dimension_semantics<parallel>], iteration_bounds = array<i64: 2>, scalar_prefetch = 0 : i64, scratch_operands = 0 : i64, tpu.core_type = #tpu.core_type<tc>, window_params = [{transform_indices = @transform_0, window_bounds = array<i64: 128, 8>}, {pipeline_mode = #tpu.pipeline_mode<synchronous>, transform_indices = @transform_1, window_bounds = array<i64: 8, 256, 128>}, {pipeline_mode = #tpu.pipeline_mode<synchronous>, transform_indices = @transform_2, window_bounds = array<i64: 1, 128>}, {pipeline_mode = #tpu.pipeline_mode<synchronous>, transform_indices = @transform_3, window_bounds = array<i64: 128, 256>}, {pipeline_mode = #tpu.pipeline_mode<synchronous>, transform_indices = @transform_4, window_bounds = array<i64: 1, 256>}, {transform_indices = @transform_5, window_bounds = array<i64: 128, 256>}]} {
    %c0 = arith.constant 0 : index
    %c0_0 = arith.constant 0 : index
    %0 = vector.load %arg1[%c0, %c0_0] : memref<128x8xi32, #tpu.memory_space<vmem>>, vector<128x8xi32>
    %1 = tpu.iota {dimensions = array<i32: 1>} : vector<128x256xi32>
    %c0_1 = arith.constant 0 : index
    %c0_2 = arith.constant 0 : index
    %2 = vector.load %arg3[%c0_1, %c0_2] : memref<1x128xf32, #tpu.memory_space<vmem>>, vector<1x128xf32>
    %3 = vector.shape_cast %2 : vector<1x128xf32> to vector<1x128xf32>
    %4 = vector.broadcast %3 : vector<1x128xf32> to vector<128x128xf32>
    %5 = vector.extract_strided_slice %0 {offsets = [0, 0], sizes = [128, 1], strides = [1, 1]} : vector<128x8xi32> to vector<128x1xi32>
    %6 = vector.broadcast %5 : vector<128x1xi32> to vector<128x256xi32>
    %7 = arith.cmpi eq, %1, %6 : vector<128x256xi32>
    %8 = arith.extui %7 : vector<128x256xi1> to vector<128x256xi32>
    %9 = arith.sitofp %8 : vector<128x256xi32> to vector<128x256xf32>
    %10 = arith.truncf %9 : vector<128x256xf32> to vector<128x256xbf16>
    %c0_3 = arith.constant 0 : index
    %c0_4 = arith.constant 0 : index
    %c0_5 = arith.constant 0 : index
    %11 = vector.load %arg2[%c0_3, %c0_4, %c0_5] : memref<8x256x128xbf16, #tpu.memory_space<vmem>>, vector<1x256x128xbf16>
    %12 = vector.shape_cast %11 : vector<1x256x128xbf16> to vector<256x128xbf16>
    %cst = arith.constant dense<0.000000e+00> : vector<128x128xf32>
    %13 = tpu.matmul %10, %12, %cst {dimension_numbers = #tpu.dot_dimension_numbers<[1], [0], [0], [1], [0, 0, 1, 1], [], []>} : vector<128x256xbf16>, vector<256x128xbf16>, vector<128x128xf32> -> vector<128x128xf32>
    %14 = arith.addf %4, %13 : vector<128x128xf32>
    %15 = vector.extract_strided_slice %0 {offsets = [0, 1], sizes = [128, 1], strides = [1, 1]} : vector<128x8xi32> to vector<128x1xi32>
    %16 = vector.broadcast %15 : vector<128x1xi32> to vector<128x256xi32>
    %17 = arith.cmpi eq, %1, %16 : vector<128x256xi32>
    %18 = arith.extui %17 : vector<128x256xi1> to vector<128x256xi32>
    %19 = arith.sitofp %18 : vector<128x256xi32> to vector<128x256xf32>
    %20 = arith.truncf %19 : vector<128x256xf32> to vector<128x256xbf16>
    %c1 = arith.constant 1 : index
    %c0_6 = arith.constant 0 : index
    %c0_7 = arith.constant 0 : index
    %21 = vector.load %arg2[%c1, %c0_6, %c0_7] : memref<8x256x128xbf16, #tpu.memory_space<vmem>>, vector<1x256x128xbf16>
    %22 = vector.shape_cast %21 : vector<1x256x128xbf16> to vector<256x128xbf16>
    %cst_8 = arith.constant dense<0.000000e+00> : vector<128x128xf32>
    %23 = tpu.matmul %20, %22, %cst_8 {dimension_numbers = #tpu.dot_dimension_numbers<[1], [0], [0], [1], [0, 0, 1, 1], [], []>} : vector<128x256xbf16>, vector<256x128xbf16>, vector<128x128xf32> -> vector<128x128xf32>
    %24 = arith.addf %14, %23 : vector<128x128xf32>
    %25 = vector.extract_strided_slice %0 {offsets = [0, 2], sizes = [128, 1], strides = [1, 1]} : vector<128x8xi32> to vector<128x1xi32>
    %26 = vector.broadcast %25 : vector<128x1xi32> to vector<128x256xi32>
    %27 = arith.cmpi eq, %1, %26 : vector<128x256xi32>
    %28 = arith.extui %27 : vector<128x256xi1> to vector<128x256xi32>
    %29 = arith.sitofp %28 : vector<128x256xi32> to vector<128x256xf32>
    %30 = arith.truncf %29 : vector<128x256xf32> to vector<128x256xbf16>
    %c2 = arith.constant 2 : index
    %c0_9 = arith.constant 0 : index
    %c0_10 = arith.constant 0 : index
    %31 = vector.load %arg2[%c2, %c0_9, %c0_10] : memref<8x256x128xbf16, #tpu.memory_space<vmem>>, vector<1x256x128xbf16>
    %32 = vector.shape_cast %31 : vector<1x256x128xbf16> to vector<256x128xbf16>
    %cst_11 = arith.constant dense<0.000000e+00> : vector<128x128xf32>
    %33 = tpu.matmul %30, %32, %cst_11 {dimension_numbers = #tpu.dot_dimension_numbers<[1], [0], [0], [1], [0, 0, 1, 1], [], []>} : vector<128x256xbf16>, vector<256x128xbf16>, vector<128x128xf32> -> vector<128x128xf32>
    %34 = arith.addf %24, %33 : vector<128x128xf32>
    %35 = vector.extract_strided_slice %0 {offsets = [0, 3], sizes = [128, 1], strides = [1, 1]} : vector<128x8xi32> to vector<128x1xi32>
    %36 = vector.broadcast %35 : vector<128x1xi32> to vector<128x256xi32>
    %37 = arith.cmpi eq, %1, %36 : vector<128x256xi32>
    %38 = arith.extui %37 : vector<128x256xi1> to vector<128x256xi32>
    %39 = arith.sitofp %38 : vector<128x256xi32> to vector<128x256xf32>
    %40 = arith.truncf %39 : vector<128x256xf32> to vector<128x256xbf16>
    %c3 = arith.constant 3 : index
    %c0_12 = arith.constant 0 : index
    %c0_13 = arith.constant 0 : index
    %41 = vector.load %arg2[%c3, %c0_12, %c0_13] : memref<8x256x128xbf16, #tpu.memory_space<vmem>>, vector<1x256x128xbf16>
    %42 = vector.shape_cast %41 : vector<1x256x128xbf16> to vector<256x128xbf16>
    %cst_14 = arith.constant dense<0.000000e+00> : vector<128x128xf32>
    %43 = tpu.matmul %40, %42, %cst_14 {dimension_numbers = #tpu.dot_dimension_numbers<[1], [0], [0], [1], [0, 0, 1, 1], [], []>} : vector<128x256xbf16>, vector<256x128xbf16>, vector<128x128xf32> -> vector<128x128xf32>
    %44 = arith.addf %34, %43 : vector<128x128xf32>
    %45 = vector.extract_strided_slice %0 {offsets = [0, 4], sizes = [128, 1], strides = [1, 1]} : vector<128x8xi32> to vector<128x1xi32>
    %46 = vector.broadcast %45 : vector<128x1xi32> to vector<128x256xi32>
    %47 = arith.cmpi eq, %1, %46 : vector<128x256xi32>
    %48 = arith.extui %47 : vector<128x256xi1> to vector<128x256xi32>
    %49 = arith.sitofp %48 : vector<128x256xi32> to vector<128x256xf32>
    %50 = arith.truncf %49 : vector<128x256xf32> to vector<128x256xbf16>
    %c4 = arith.constant 4 : index
    %c0_15 = arith.constant 0 : index
    %c0_16 = arith.constant 0 : index
    %51 = vector.load %arg2[%c4, %c0_15, %c0_16] : memref<8x256x128xbf16, #tpu.memory_space<vmem>>, vector<1x256x128xbf16>
    %52 = vector.shape_cast %51 : vector<1x256x128xbf16> to vector<256x128xbf16>
    %cst_17 = arith.constant dense<0.000000e+00> : vector<128x128xf32>
    %53 = tpu.matmul %50, %52, %cst_17 {dimension_numbers = #tpu.dot_dimension_numbers<[1], [0], [0], [1], [0, 0, 1, 1], [], []>} : vector<128x256xbf16>, vector<256x128xbf16>, vector<128x128xf32> -> vector<128x128xf32>
    %54 = arith.addf %44, %53 : vector<128x128xf32>
    %55 = vector.extract_strided_slice %0 {offsets = [0, 5], sizes = [128, 1], strides = [1, 1]} : vector<128x8xi32> to vector<128x1xi32>
    %56 = vector.broadcast %55 : vector<128x1xi32> to vector<128x256xi32>
    %57 = arith.cmpi eq, %1, %56 : vector<128x256xi32>
    %58 = arith.extui %57 : vector<128x256xi1> to vector<128x256xi32>
    %59 = arith.sitofp %58 : vector<128x256xi32> to vector<128x256xf32>
    %60 = arith.truncf %59 : vector<128x256xf32> to vector<128x256xbf16>
    %c5 = arith.constant 5 : index
    %c0_18 = arith.constant 0 : index
    %c0_19 = arith.constant 0 : index
    %61 = vector.load %arg2[%c5, %c0_18, %c0_19] : memref<8x256x128xbf16, #tpu.memory_space<vmem>>, vector<1x256x128xbf16>
    %62 = vector.shape_cast %61 : vector<1x256x128xbf16> to vector<256x128xbf16>
    %cst_20 = arith.constant dense<0.000000e+00> : vector<128x128xf32>
    %63 = tpu.matmul %60, %62, %cst_20 {dimension_numbers = #tpu.dot_dimension_numbers<[1], [0], [0], [1], [0, 0, 1, 1], [], []>} : vector<128x256xbf16>, vector<256x128xbf16>, vector<128x128xf32> -> vector<128x128xf32>
    %64 = arith.addf %54, %63 : vector<128x128xf32>
    %65 = vector.extract_strided_slice %0 {offsets = [0, 6], sizes = [128, 1], strides = [1, 1]} : vector<128x8xi32> to vector<128x1xi32>
    %66 = vector.broadcast %65 : vector<128x1xi32> to vector<128x256xi32>
    %67 = arith.cmpi eq, %1, %66 : vector<128x256xi32>
    %68 = arith.extui %67 : vector<128x256xi1> to vector<128x256xi32>
    %69 = arith.sitofp %68 : vector<128x256xi32> to vector<128x256xf32>
    %70 = arith.truncf %69 : vector<128x256xf32> to vector<128x256xbf16>
    %c6 = arith.constant 6 : index
    %c0_21 = arith.constant 0 : index
    %c0_22 = arith.constant 0 : index
    %71 = vector.load %arg2[%c6, %c0_21, %c0_22] : memref<8x256x128xbf16, #tpu.memory_space<vmem>>, vector<1x256x128xbf16>
    %72 = vector.shape_cast %71 : vector<1x256x128xbf16> to vector<256x128xbf16>
    %cst_23 = arith.constant dense<0.000000e+00> : vector<128x128xf32>
    %73 = tpu.matmul %70, %72, %cst_23 {dimension_numbers = #tpu.dot_dimension_numbers<[1], [0], [0], [1], [0, 0, 1, 1], [], []>} : vector<128x256xbf16>, vector<256x128xbf16>, vector<128x128xf32> -> vector<128x128xf32>
    %74 = arith.addf %64, %73 : vector<128x128xf32>
    %75 = vector.extract_strided_slice %0 {offsets = [0, 7], sizes = [128, 1], strides = [1, 1]} : vector<128x8xi32> to vector<128x1xi32>
    %76 = vector.broadcast %75 : vector<128x1xi32> to vector<128x256xi32>
    %77 = arith.cmpi eq, %1, %76 : vector<128x256xi32>
    %78 = arith.extui %77 : vector<128x256xi1> to vector<128x256xi32>
    %79 = arith.sitofp %78 : vector<128x256xi32> to vector<128x256xf32>
    %80 = arith.truncf %79 : vector<128x256xf32> to vector<128x256xbf16>
    %c7 = arith.constant 7 : index
    %c0_24 = arith.constant 0 : index
    %c0_25 = arith.constant 0 : index
    %81 = vector.load %arg2[%c7, %c0_24, %c0_25] : memref<8x256x128xbf16, #tpu.memory_space<vmem>>, vector<1x256x128xbf16>
    %82 = vector.shape_cast %81 : vector<1x256x128xbf16> to vector<256x128xbf16>
    %cst_26 = arith.constant dense<0.000000e+00> : vector<128x128xf32>
    %83 = tpu.matmul %80, %82, %cst_26 {dimension_numbers = #tpu.dot_dimension_numbers<[1], [0], [0], [1], [0, 0, 1, 1], [], []>} : vector<128x256xbf16>, vector<256x128xbf16>, vector<128x128xf32> -> vector<128x128xf32>
    %84 = arith.addf %74, %83 : vector<128x128xf32>
    %cst_27 = arith.constant 0.000000e+00 : f32
    %85 = vector.broadcast %cst_27 : f32 to vector<128x128xf32>
    %86 = arith.maximumf %84, %85 : vector<128x128xf32>
    %87 = arith.truncf %86 : vector<128x128xf32> to vector<128x128xbf16>
    %c0_28 = arith.constant 0 : index
    %c0_29 = arith.constant 0 : index
    %88 = vector.load %arg4[%c0_28, %c0_29] : memref<128x256xbf16, #tpu.memory_space<vmem>>, vector<128x256xbf16>
    %cst_30 = arith.constant dense<0.000000e+00> : vector<128x256xf32>
    %89 = tpu.matmul %87, %88, %cst_30 {dimension_numbers = #tpu.dot_dimension_numbers<[1], [0], [0], [1], [0, 0, 1, 1], [], []>} : vector<128x128xbf16>, vector<128x256xbf16>, vector<128x256xf32> -> vector<128x256xf32>
    %c0_31 = arith.constant 0 : index
    %c0_32 = arith.constant 0 : index
    %90 = vector.load %arg5[%c0_31, %c0_32] : memref<1x256xf32, #tpu.memory_space<vmem>>, vector<1x256xf32>
    %91 = vector.broadcast %90 : vector<1x256xf32> to vector<128x256xf32>
    %92 = arith.addf %89, %91 : vector<128x256xf32>
    %cst_33 = arith.constant dense<0xFF800000> : vector<128xf32>
    %93 = vector.multi_reduction <maximumf>, %92, %cst_33 [1] : vector<128x256xf32> to vector<128xf32>
    %94 = vector.shape_cast %93 : vector<128xf32> to vector<128x1xf32>
    %95 = vector.broadcast %94 : vector<128x1xf32> to vector<128x256xf32>
    %96 = arith.subf %92, %95 : vector<128x256xf32>
    %97 = math.exp %96 : vector<128x256xf32>
    %cst_34 = arith.constant dense<0.000000e+00> : vector<128xf32>
    %98 = vector.multi_reduction <add>, %97, %cst_34 [1] : vector<128x256xf32> to vector<128xf32>
    %99 = vector.shape_cast %98 : vector<128xf32> to vector<128x1xf32>
    %100 = math.log %99 : vector<128x1xf32>
    %101 = vector.broadcast %100 : vector<128x1xf32> to vector<128x256xf32>
    %102 = arith.subf %96, %101 : vector<128x256xf32>
    %c0_35 = arith.constant 0 : index
    %c0_36 = arith.constant 0 : index
    %103 = vector.load %arg6[%c0_35, %c0_36] : memref<128x256xf32, #tpu.memory_space<vmem>>, vector<128x256xf32>
    tpu.vector_store %arg6[%c0_35, %c0_36], %102 {strides = array<i32>} : memref<128x256xf32, #tpu.memory_space<vmem>>, vector<128x256xf32>,
    return
  }
  func.func @transform_0(%arg0: i32) -> (i32, i32) {
    %c0_i32 = arith.constant 0 : i32
    %c0_i32_0 = arith.constant 0 : i32
    return %arg0, %c0_i32 : i32, i32
  }
  func.func @transform_1(%arg0: i32) -> (i32, i32, i32) {
    %c0_i32 = arith.constant 0 : i32
    %c0_i32_0 = arith.constant 0 : i32
    %c0_i32_1 = arith.constant 0 : i32
    %c0_i32_2 = arith.constant 0 : i32
    return %c0_i32, %c0_i32_0, %c0_i32_1 : i32, i32, i32
  }
  func.func @transform_2(%arg0: i32) -> (i32, i32) {
    %c0_i32 = arith.constant 0 : i32
    %c0_i32_0 = arith.constant 0 : i32
    %c0_i32_1 = arith.constant 0 : i32
    return %c0_i32, %c0_i32_0 : i32, i32
  }
  func.func @transform_3(%arg0: i32) -> (i32, i32) {
    %c0_i32 = arith.constant 0 : i32
    %c0_i32_0 = arith.constant 0 : i32
    %c0_i32_1 = arith.constant 0 : i32
    return %c0_i32, %c0_i32_0 : i32, i32
  }
  func.func @transform_4(%arg0: i32) -> (i32, i32) {
    %c0_i32 = arith.constant 0 : i32
    %c0_i32_0 = arith.constant 0 : i32
    %c0_i32_1 = arith.constant 0 : i32
    return %c0_i32, %c0_i32_0 : i32, i32
  }
  func.func @transform_5(%arg0: i32) -> (i32, i32) {
    %c0_i32 = arith.constant 0 : i32
    %c0_i32_0 = arith.constant 0 : i32
    return %arg0, %c0_i32 : i32, i32
  }
}

</mosaic_0001>

<bundles_post_ra>
// kernel: ngram_forward.1
= control target key start
LH: loop header
LB: loop body
LE: loop exit
PB: predicated region body
PF: predicated region fallthrough
CT: control target
= control target key end

     0   :  { %10 = vsyncpa [#allocation3], 0  ;;  %s7894_s0 = inlined_call_operand.vmem [shape: s32[256,8], index: 0, kind: input, shape index: {}]   ;;  %s7895_s1 = inlined_call_operand.vmem [shape: bf16[8,256,128], index: 1, kind: input, shape index: {}]   ;;  %s7896_s2 = inlined_call_operand.vmem [shape: f32[1,128], index: 2, kind: input, shape index: {}]   ;;  %s7897_s3 = inlined_call_operand.vmem [shape: bf16[128,256], index: 3, kind: input, shape index: {}]   ;;  %s7898_s4 = inlined_call_operand.vmem [shape: f32[1,256], index: 4, kind: input, shape index: {}]   ;;  %s7899_s5 = inlined_call_operand.hbm [shape: f32[256,256], index: 5, kind: output, shape index: {}]  }
   0x1   :  { %12 = vsyncpa [#allocation3 + $0x1], 0  ;;  %s6001_s18 = smov 0   ;;  %s6003_s19 = smov 0  }
   0x2   :  { %s6005_s20 = smov 0   ;;  %s6007_s21 = smov 0  }
   0x3 LB: > { %s6022_s22 = sadd.s32 4294967295, %s5957_s21   ;;  %s4078_s23 = sadd.s32 4294967294, %s5957_s21   ;;  %s5957_s21 = sphi %s6007_s21, %s7905_s21   ;;  %s5953_s20 = sphi %s6005_s20, %s7904_s20   ;;  %s5949_s19 = sphi %s6003_s19, %s7903_s19   ;;  %s5945_s18 = sphi %s6001_s18, %s7902_s18  }
   0x4   : > { %s6026_s24 = sadd.s32 1, %s5957_s21   ;;  %s135_s25 = sadd.s32 1, %s5953_s20 }
   0x5   : > { %s132_s26 = ssub.s32 %s5957_s21, %s6026_s24  ;;  %p145_p0 = scmp.ne.s32.totalorder %s5953_s20, %s5949_s19 }
   0x6   : > { %p133_p1 = scmp.eq.s32.totalorder %s132_s26, 0  ;;  %p146_p2 = scmp.eq.s32.totalorder %s6022_s22, 1 }
   0x7   : > { %p151_p3 = scmp.ne.s32.totalorder %s5949_s19, %s5945_s18  ;;  %p152_p4 = scmp.eq.s32.totalorder %s4078_s23, 1 }
   0x8   : > { %s6037_s27 = scalar_select %p133_p1, %s5953_s20, %s135_s25  }
   0x9   : > { %p6039_p5 = por %p146_p2, %p145_p0  ;;  %p6043_p6 = por %p152_p4, %p151_p3 }
   0xa   : > { %p4081_p7 = scmp.ge.s32.totalorder %s5957_s21, 1  ;;  %p191_p8 = scmp.lt.s32.totalorder %s5957_s21, 3 }
   0xc   : > { %p192_p9 = pnand %p4081_p7, %p191_p8 }
   0xd   : > { %s4083_s30 = sshll.u32 (!%p192_p9), %s6022_s22, 4  ;;  %v5629_v0 = vld [vmem:[%s7895_s1 + $0x40] sm:$0xff] (!%p192_p9)   ;;  %v5959_v1 = vmov (!%p192_p9), 0   ;;  %v5631_v3 = vld [vmem:[%s7895_s1 + $0x48] sm:$0xff] (!%p192_p9)   ;;  %v5633_v5 = vld [vmem:[%s7895_s1 + $0x50] sm:$0xff] (!%p192_p9)   ;;  %v5960_v25 = vmov (!%p192_p9), 1   ;;  %v243_v40 = vlaneseq (!%p192_p9) }
   0xe   : > { %195 = sbr.rel (%p192_p9) target bundleno = 1295 (0x50f), region = 40  ;;  %5553 = vset.pattern.permute.xlu1 (!%p192_p9), %v5959_v1  ;;  %5552 = vset.pattern.permute.xlu0 (!%p192_p9), %v5959_v1  ;;  %p220_p10 = scmp.lt.s32.totalorder (!%p192_p9), %s4083_s30, 31  ;;  %v5630_v2 = vld [vmem:[%s7895_s1] sm:$0xff] (!%p192_p9)   ;;  %v5632_v4 = vld [vmem:[%s7895_s1 + $0x8] sm:$0xff] (!%p192_p9)   ;;  %v5634_v8 = vld [vmem:[%s7895_s1 + $0x10] sm:$0xff] (!%p192_p9)   ;;  %v5961_v36 = vmov (!%p192_p9), 2  }
   0xf   : > { %5486 = vmatprep.subr.bf16.mxu1 (!%p192_p9), %v5629_v0  ;;  %4974 = vmatprep.subr.bf16.mxu0 (!%p192_p9), %v5629_v0  ;;  %v5635_v13 = vld [vmem:[%s7895_s1 + $0x58] sm:$0xff] (!%p192_p9)   ;;  %v5637_v15 = vld [vmem:[%s7895_s1 + $0x60] sm:$0xff] (!%p192_p9)   ;;  %v5639_v19 = vld [vmem:[%s7895_s1 + $0x68] sm:$0xff] (!%p192_p9)   ;;  %v5962_v37 = vmov (!%p192_p9), 3   ;;  %v5963_v38 = vmov (!%p192_p9), 5   ;;  %v5964_v39 = vmov (!%p192_p9), 4  }
  0x10   : > { %5494 = vmatpush3.bf16.msra.mxu1 (!%p192_p9), %v5630_v2  ;;  %4975 = vmatpush3.bf16.msra.mxu0 (!%p192_p9), %v5630_v2  ;;  %v5636_v14 = vld [vmem:[%s7895_s1 + $0x18] sm:$0xff] (!%p192_p9)   ;;  %v5638_v17 = vld [vmem:[%s7895_s1 + $0x20] sm:$0xff] (!%p192_p9)   ;;  %v5640_v20 = vld [vmem:[%s7895_s1 + $0x28] sm:$0xff] (!%p192_p9)   ;;  %v6235_v41 = vand.u32 (!%p192_p9), 127, %v243_v40  ;;  %v5965_v48 = vmov (!%p192_p9), 1.0|1.0  }
  0x11   : > { %5487 = vmatprep.subr.bf16.mxu1 (!%p192_p9), %v5631_v3  ;;  %4976 = vmatprep.subr.bf16.mxu0 (!%p192_p9), %v5631_v3  ;;  %v5641_v23 = vld [vmem:[%s7895_s1 + $0x70] sm:$0xff] (!%p192_p9)   ;;  %v5643_v26 = vld [vmem:[%s7895_s1 + $0x78] sm:$0xff] (!%p192_p9)   ;;  %v5645_v31 = vld [vmem:[%s7895_s1 + $0xc0] sm:$0xff] (!%p192_p9)   ;;  %s216_s13 = sand.u32 (!%p192_p9), 1, %s5949_s19   ;;  %s4973_s16 = sshll.u32 (!%p192_p9), %s6022_s22, 12 }
  0x12   : > { %v5642_v24 = vld [vmem:[%s7895_s1 + $0x30] sm:$0xff] (!%p192_p9)   ;;  %v5644_v29 = vld [vmem:[%s7895_s1 + $0x38] sm:$0xff] (!%p192_p9)   ;;  %v5661_v35 = vld [vmem:[%s7895_s1 + $0x140] sm:$0xff] (!%p192_p9)   ;;  %v6240_v44 = vadd.s32 (!%p192_p9), 128, %v6235_v41  ;;  %s7853_s22 = scalar_lea.sflag (!%p192_p9), [#allocation3], %s216_s13  ;;  %s5968_s7 = smov (!%p192_p9), [#allocation2]  }
  0x13   : > { %v5646_v47 = vld [vmem:[%s7895_s1 + $0x80] sm:$0xff] (!%p192_p9)   ;;  %v5647_v49 = vld [vmem:[%s7895_s1 + $0xc8] sm:$0xff] (!%p192_p9)   ;;  %v5649_v53 = vld [vmem:[%s7895_s1 + $0xd0] sm:$0xff] (!%p192_p9)   ;;  %s5899_s8 = sshll.u32 (!%p192_p9), %s5968_s7, 4  ;;  %s5900_s8 = int_to_ptr.vmem [resolvable:$false] %s5899_s8 }
  0x14   : > { %5495 = vmatpush3.bf16.msra.mxu1 (!%p192_p9), %v5632_v4  ;;  %4977 = vmatpush3.bf16.msra.mxu0 (!%p192_p9), %v5632_v4  ;;  %v5648_v52 = vld [vmem:[%s7895_s1 + $0x88] sm:$0xff] (!%p192_p9)   ;;  %v5650_v56 = vld [vmem:[%s7895_s1 + $0x90] sm:$0xff] (!%p192_p9)   ;;  %v5651_v57 = vld [vmem:[%s7895_s1 + $0xd8] sm:$0xff] (!%p192_p9)   ;;  %s5901_s9 = scalar_lea.vmem (!%p192_p9), %s5900_s8, 8192 }
  0x15   : > { %s7907_s30 = smov (!%p220_p10, %s4083_s30), 31  ;;  %5488 = vmatprep.subr.bf16.mxu1 %v5633_v5  ;;  %4978 = vmatprep.subr.bf16.mxu0 %v5633_v5  ;;  %v5652_v60 = vld [vmem:[%s7895_s1 + $0x98] sm:$0xff]   ;;  %v5653_v61 = vld [vmem:[%s7895_s1 + $0xe0] sm:$0xff]   ;;  %v5655_v2 = vld [vmem:[%s7895_s1 + $0xe8] sm:$0xff]  }
  0x16   : > { %s4084_s14 = sshll.u32 %s7907_s30, 3  ;;  %v5654_v0 = vld [vmem:[%s7895_s1 + $0xa0] sm:$0xff]   ;;  %v5656_v5 = vld [vmem:[%s7895_s1 + $0xa8] sm:$0xff]   ;;  %s7841_s30 = scalar_lea.hbm %s7899_s5, %s4973_s16 }
  0x17   : > { %s6070_s25 = scalar_lea.vmem %s7894_s0, %s4084_s14  ;;  %s4082_s14 = sshll.u32 %s216_s13, 8 }
  0x18   : > { %v6073_v6 = vld [vmem:[%s6070_s25 + $0x50] sm:$0xff]  ;;  %v6076_v7 = vld [vmem:[%s6070_s25 + $0x40] sm:$0xff]  ;;  %v6084_v9 = vld [vmem:[%s6070_s25 + $0x58] sm:$0xff]  ;;  %5496 = vmatpush3.bf16.msra.mxu1 %v5634_v8  ;;  %4979 = vmatpush3.bf16.msra.mxu0 %v5634_v8  ;;  %s7778_s15 = scalar_lea.vmem [#allocation2], %s4082_s14 }
  0x19   : > { %284 = vperm.xlu1 %5553, %v6073_v6   ;;  %278 = vperm.xlu0 %5552, %v6076_v7   ;;  %v6087_v10 = vld [vmem:[%s6070_s25 + $0x48] sm:$0xff]  ;;  %v6095_v12 = vld [vmem:[%s6070_s25 + $0x60] sm:$0xff]  ;;  %v6107_v16 = vld [vmem:[%s6070_s25 + $0x78] sm:$0xff]  ;;  %s4016_s17 = sshll.u32 %s7778_s15, 4  ;;  %s7843_s17 = int_to_ptr.vmem [resolvable:$true] %s4016_s17 }
  0x1a   : > { %v6090_v11 = vld [vmem:[%s6070_s25 + $0x68] sm:$0xff]  ;;  %5489 = vmatprep.subr.bf16.mxu1 %v5635_v13  ;;  %4980 = vmatprep.subr.bf16.mxu0 %v5635_v13  ;;  %v6115_v18 = vld [vmem:[%s6070_s25 + $0x70] sm:$0xff]  ;;  %v6129_v22 = vld [vmem:[%s6070_s25] sm:$0xff]  ;;  %s5895_s6 = scalar_lea.vmem %s7843_s17, 4096  ;;  %p5902_p0 = scmp.lt.s32.totalorder %s7843_s17, %s5900_s8 }
  0x1b   : > { %v6126_v21 = vld [vmem:[%s6070_s25 + $0x8] sm:$0xff]  ;;  %v6143_v27 = vld [vmem:[%s6070_s25 + $0x10] sm:$0xff]  ;;  %v6146_v28 = vld [vmem:[%s6070_s25 + $0x18] sm:$0xff]  ;;  %p5896_p11 = scmp.ne.s32.totalorder %s7843_s17, %s5895_s6  ;;  %p5903_p1 = scmp.lt.s32.totalorder %s5901_s9, %s5895_s6 }
  0x1c   : > { %5497 = vmatpush3.bf16.msra.mxu1 %v5636_v14  ;;  %4981 = vmatpush3.bf16.msra.mxu0 %v5636_v14  ;;  %v6152_v30 = vld [vmem:[%s6070_s25 + $0x20] sm:$0xff]  ;;  %v6160_v32 = vld [vmem:[%s6070_s25 + $0x28] sm:$0xff]  ;;  %v6163_v33 = vld [vmem:[%s6070_s25 + $0x30] sm:$0xff] }
  0x1d   : > { %287 = vperm.xlu1 %5553, %v6084_v9   ;;  %281 = vperm.xlu0 %5552, %v6087_v10   ;;  %v6166_v34 = vld [vmem:[%s6070_s25 + $0x38] sm:$0xff]  ;;  %p5897_p12 = pnand %p5896_p11, %p6039_p5  ;;  %p5904_p2 = por %p5903_p1, %p5902_p0 }
  0x1e   : > { %5490 = vmatprep.subr.bf16.mxu1 %v5637_v15  ;;  %4982 = vmatprep.subr.bf16.mxu0 %v5637_v15  ;;  %v5660_v14 = vld [vmem:[%s7895_s1 + $0xb8] sm:$0xff]   ;;  %v5671_v15 = vld [vmem:[%s7895_s1 + $0x1c0] sm:$0xff]  }
  0x1f   : > { %p5898_p13 = pneg %p5897_p12 }
  0x20   : > { %5498 = vmatpush3.bf16.msra.mxu1 %v5638_v17  ;;  %4983 = vmatpush3.bf16.msra.mxu0 %v5638_v17  ;;  %v6374_v17 = vld [vmem:[%s6070_s25 + $0x68] sm:$0xff] }
  0x21   : > { %293 = vperm.xlu1 %5553, %v6090_v11   ;;  %290 = vperm.xlu0 %5552, %v6095_v12   ;;  %p5905_p3 = pnand %p5904_p2, %p5898_p13 }
  0x22   : > { %5491 = vmatprep.subr.bf16.mxu1 %v5639_v19  ;;  %4984 = vmatprep.subr.bf16.mxu0 %v5639_v19  ;;  %v5664_v19 = vld [vmem:[%s7895_s1 + $0x108] sm:$0xff]  }
  0x24   : > { %5499 = vmatpush3.bf16.msra.mxu1 %v5640_v20  ;;  %4985 = vmatpush3.bf16.msra.mxu0 %v5640_v20  ;;  %v5672_v20 = vld [vmem:[%s7895_s1 + $0x180] sm:$0xff]  }
  0x25   : > { %299 = vperm.xlu1 %5553, %v6107_v16   ;;  %296 = vperm.xlu0 %5552, %v6115_v18  }
  0x26   : > { %5492 = vmatprep.subr.bf16.mxu1 %v5641_v23  ;;  %4986 = vmatprep.subr.bf16.mxu0 %v5641_v23  ;;  %v6410_v23 = vld [vmem:[%s6070_s25 + $0x78] sm:$0xff] }
  0x28   : > { %5500 = vmatpush3.bf16.msra.mxu1 %v5642_v24  ;;  %4987 = vmatpush3.bf16.msra.mxu0 %v5642_v24 }
  0x29   : > { %5555 = vset.pattern.permute.xlu1 %v5960_v25  ;;  %5554 = vset.pattern.permute.xlu0 %v5960_v25 }
  0x2a   : > { %658 = vperm.xlu1 %5555, %v6126_v21   ;;  %655 = vperm.xlu0 %5554, %v6129_v22  }
  0x2b   : > { %5493 = vmatprep.subr.bf16.mxu1 %v5643_v26  ;;  %4988 = vmatprep.subr.bf16.mxu0 %v5643_v26  ;;  %v5667_v26 = vld [vmem:[%s7895_s1 + $0x158] sm:$0xff]  }
  0x2c   : > { %5501 = vmatpush3.bf16.msra.mxu1 %v5644_v29  ;;  %4989 = vmatpush3.bf16.msra.mxu0 %v5644_v29  ;;  %v6433_v29 = vld [vmem:[%s6070_s25 + $0x70] sm:$0xff] }
  0x2d   : > { %5038 = vmatprep.subr.bf16.mxu1 %v5645_v31  ;;  %5102 = vmatprep.subr.bf16.mxu0 %v5661_v35  ;;  %v5683_v35 = vld [vmem:[%s7895_s1 + $0x1d8] sm:$0xff]  }
  0x2e   : > { %661 = vperm.xlu1 %5555, %v6143_v27   ;;  %664 = vperm.xlu0 %5554, %v6146_v28  }
  0x32   : > { %667 = vperm.xlu1 %5555, %v6152_v30   ;;  %670 = vperm.xlu0 %5554, %v6160_v32  }
  0x36   : > { %673 = vperm.xlu1 %5555, %v6163_v33   ;;  %676 = vperm.xlu0 %5554, %v6166_v34  }
  0x3a   : > { %5556 = vset.pattern.permute.xlu1 %v5959_v1  ;;  %5557 = vset.pattern.permute.xlu0 %v5959_v1 }
  0x3b   : > { %254 = vperm.xlu1 %5556, %v6129_v22   ;;  %257 = vperm.xlu0 %5557, %v6126_v21  }
  0x3f   : > { %5558 = vset.pattern.permute.xlu1 %v5960_v25  ;;  %260 = vperm.xlu0 %5557, %v6143_v27  }
  0x40   : > { %679 = vperm.xlu1 %5558, %v6076_v7  }
  0x43   : > { %269 = vperm.xlu0 %5557, %v6160_v32  }
  0x44   : > { %682 = vperm.xlu1 %5558, %v6087_v10  }
  0x47   : > { %272 = vperm.xlu0 %5557, %v6163_v33  }
  0x48   : > { %5559 = vset.pattern.permute.xlu1 %v5959_v1 }
  0x49   : > { %263 = vperm.xlu1 %5559, %v6146_v28  }
  0x4b   : > { %5563 = vset.pattern.permute.xlu0 %v5960_v25 }
  0x4c   : > { %685 = vperm.xlu0 %5563, %v6073_v6  }
  0x4d   : > { %5560 = vset.pattern.permute.xlu1 %v5960_v25 }
  0x4e   : > { %688 = vperm.xlu1 %5560, %v6084_v9  }
  0x50   : > { %697 = vperm.xlu0 %5563, %v6115_v18  }
  0x52   : > { %5561 = vset.pattern.permute.xlu1 %v5959_v1 }
  0x53   : > { %266 = vperm.xlu1 %5561, %v6152_v30  }
  0x54   : > { %5567 = vset.pattern.permute.xlu0 %v5961_v36 }
  0x55   : > { %1060 = vperm.xlu0 %5567, %v6126_v21  }
  0x57   : > { %5562 = vset.pattern.permute.xlu1 %v5960_v25 }
  0x58   : > { %691 = vperm.xlu1 %5562, %v6095_v12  }
  0x59   : > { %1063 = vperm.xlu0 %5567, %v6143_v27  }
  0x5c   : > { %694 = vperm.xlu1 %5562, %v6090_v11  }
  0x5d   : > { %5570 = vset.pattern.permute.xlu0 %v5962_v37 }
  0x5e   : > { %1465 = vperm.xlu0 %5570, %v6143_v27  }
  0x60   : > { %5564 = vset.pattern.permute.xlu1 %v5959_v1 }
  0x61   : > { %275 = vperm.xlu1 %5564, %v6166_v34  }
  0x62   : > { %1477 = vperm.xlu0 %5570, %v6163_v33  }
  0x65   : > { %5565 = vset.pattern.permute.xlu1 %v5960_v25  ;;  %v5666_v25 = vld [vmem:[%s7895_s1 + $0x110] sm:$0xff]  }
  0x66   : > { %700 = vperm.xlu1 %5565, %v6107_v16   ;;  %5575 = vset.pattern.permute.xlu0 %v5961_v36  ;;  %v5663_v16 = vld [vmem:[%s7895_s1 + $0x148] sm:$0xff]  }
  0x67   : > { %1072 = vperm.xlu0 %5575, %v6160_v32  }
  0x6a   : > { %5566 = vset.pattern.permute.xlu1 %v5961_v36 }
  0x6b   : > { %1057 = vperm.xlu1 %5566, %v6129_v22   ;;  %1075 = vperm.xlu0 %5575, %v6163_v33  }
  0x6f   : > { %5568 = vset.pattern.permute.xlu1 %v5962_v37  ;;  %1084 = vperm.xlu0 %5575, %v6087_v10  }
  0x70   : > { %1459 = vperm.xlu1 %5568, %v6129_v22   ;;  %v5675_v22 = vld [vmem:[%s7895_s1 + $0x1c8] sm:$0xff]  }
  0x73   : > { %1087 = vperm.xlu0 %5575, %v6073_v6  }
  0x74   : > { %1462 = vperm.xlu1 %5568, %v6126_v21  }
  0x77   : > { %1096 = vperm.xlu0 %5575, %v6090_v11  }
  0x78   : > { %5569 = vset.pattern.permute.xlu1 %v5961_v36 }
  0x79   : > { %1066 = vperm.xlu1 %5569, %v6146_v28  }
  0x7b   : > { %1099 = vperm.xlu0 %5575, %v6115_v18  }
  0x7d   : > { %5571 = vset.pattern.permute.xlu1 %v5962_v37 }
  0x7e   : > { %1468 = vperm.xlu1 %5571, %v6146_v28   ;;  %v5679_v28 = vld [vmem:[%s7895_s1 + $0x1d0] sm:$0xff]  }
  0x7f   : > { %5583 = vset.pattern.permute.xlu0 %v5962_v37 }
  0x80   : > { %1489 = vperm.xlu0 %5583, %v6073_v6  }
  0x82   : > { %5572 = vset.pattern.permute.xlu1 %v5961_v36 }
  0x83   : > { %1069 = vperm.xlu1 %5572, %v6152_v30  }
  0x84   : > { %1501 = vperm.xlu0 %5583, %v6115_v18  }
  0x87   : > { %5573 = vset.pattern.permute.xlu1 %v5962_v37 }
  0x88   : > { %1471 = vperm.xlu1 %5573, %v6152_v30   ;;  %5589 = vset.pattern.permute.xlu0 %v5963_v38 }
  0x89   : > { %2269 = vperm.xlu0 %5589, %v6143_v27  }
  0x8c   : > { %1474 = vperm.xlu1 %5573, %v6160_v32  }
  0x8d   : > { %5590 = vset.pattern.permute.xlu0 %v5964_v39 }
  0x8e   : > { %1864 = vperm.xlu0 %5590, %v6126_v21   ;;  %v5665_v21 = vld [vmem:[%s7895_s1 + $0x150] sm:$0xff]  }
  0x90   : > { %5574 = vset.pattern.permute.xlu1 %v5961_v36 }
  0x91   : > { %1078 = vperm.xlu1 %5574, %v6166_v34  }
  0x92   : > { %1867 = vperm.xlu0 %5590, %v6143_v27   ;;  %v5676_v27 = vld [vmem:[%s7895_s1 + $0x188] sm:$0xff]  }
  0x95   : > { %5576 = vset.pattern.permute.xlu1 %v5962_v37 }
  0x96   : > { %1480 = vperm.xlu1 %5576, %v6166_v34   ;;  %1876 = vperm.xlu0 %5590, %v6160_v32   ;;  %v5668_v32 = vld [vmem:[%s7895_s1 + $0x118] sm:$0xff]   ;;  %v5669_v34 = vld [vmem:[%s7895_s1 + $0x160] sm:$0xff]  }
  0x98   : > { %v285_v42 = vpop.permute.xlu1 %284  ;;  %v279_v43 = vpop.permute.xlu0 %278 }
  0x99   : > { %vm318_vm0 = vcmp.eq.s32.totalorder %v6240_v44, %v279_v43  ;;  %vm317_vm1 = vcmp.eq.s32.totalorder %v6235_v41, %v279_v43  ;;  %vm322_vm6 = vcmp.eq.s32.totalorder %v6240_v44, %v285_v42  ;;  %vm321_vm12 = vcmp.eq.s32.totalorder %v6235_v41, %v285_v42  ;;  %v5670_v43 = vld [vmem:[%s7895_s1 + $0x120] sm:$0xff]  }
  0x9a   : > { %5577 = vset.pattern.permute.xlu1 %v5961_v36  ;;  %1879 = vperm.xlu0 %5590, %v6163_v33  }
  0x9b   : > { %1081 = vperm.xlu1 %5577, %v6076_v7  }
  0x9c   : > { %v288_v45 = vpop.permute.xlu1 %287  ;;  %v282_v46 = vpop.permute.xlu0 %281 }
  0x9d   : > { %vm324_vm2 = vcmp.eq.s32.totalorder %v6240_v44, %v288_v45  ;;  %vm319_vm3 = vcmp.eq.s32.totalorder %v6235_v41, %v282_v46  ;;  %vm320_vm4 = vcmp.eq.s32.totalorder %v6240_v44, %v282_v46  ;;  %vm323_vm9 = vcmp.eq.s32.totalorder %v6235_v41, %v288_v45  ;;  %v5673_v46 = vld [vmem:[%s7895_s1 + $0x168] sm:$0xff]  }
  0x9e   : > { %vm4150_vm5 = vmpackc.low %vm320_vm4, %vm318_vm0  ;;  %5595 = vset.pattern.permute.xlu0 %v5963_v38 }
  0x9f   : > { %4151 = vmatprep.mubr.msk.bf16.mxu1 %vm4150_vm5, %v5965_v48  ;;  %5578 = vset.pattern.permute.xlu1 %v5962_v37  ;;  %vm4152_vm7 = vmpackc.low %vm319_vm3, %vm317_vm1 }
  0xa0   : > { %v294_v50 = vpop.permute.xlu1 %293  ;;  %4153 = vmatmul.mubr.msk.bf16.vlgmr.msra.gmra.mrb[0].mxu1 %vm4152_vm7, %v5965_v48  ;;  %v291_v51 = vpop.permute.xlu0 %290  ;;  %1483 = vperm.xlu1 %5578, %v6076_v7   ;;  %vm4154_vm8 = vmpackc.low %vm324_vm2, %vm322_vm6  ;;  %v5657_v7 = vld [vmem:[%s7895_s1 + $0xf0] sm:$0xff]  }
  0xa1   : > { %4155 = vmatprep.mubr.msk.bf16.mxu1 %vm4154_vm8, %v5965_v48  ;;  %5039 = vmatpush3.bf16.msra.mxu1 %v5646_v47  ;;  %vm328_vm10 = vcmp.eq.s32.totalorder %v6240_v44, %v294_v50  ;;  %vm326_vm11 = vcmp.eq.s32.totalorder %v6240_v44, %v291_v51  ;;  %vm4156_vm13 = vmpackc.low %vm323_vm9, %vm321_vm12  ;;  %vm327_vm15 = vcmp.eq.s32.totalorder %v6235_v41, %v294_v50  ;;  %v5684_v47 = vld [vmem:[%s7895_s1 + $0x198] sm:$0xff]   ;;  %v5685_v50 = vld [vmem:[%s7895_s1 + $0x1e0] sm:$0xff]  }
  0xa2   : > { %2281 = vperm.xlu0 %5595, %v6163_v33   ;;  %5040 = vmatprep.subr.bf16.mxu1 %v5647_v49  ;;  %vm4158_vm14 = vmpackc.low %vm328_vm10, %vm326_vm11  ;;  %vm325_vm0 = vcmp.eq.s32.totalorder %v6235_v41, %v291_v51  ;;  %v5680_v33 = vld [vmem:[%s7895_s1 + $0x190] sm:$0xff]   ;;  %v6497_v49 = vld [vmem:[%s6070_s25 + $0x8] sm:$0xff] }
  0xa3   : > { %vm4160_vm3 = vmpackc.low %vm327_vm15, %vm325_vm0 }
  0xa4   : > { %v300_v54 = vpop.permute.xlu1 %299  ;;  %v297_v55 = vpop.permute.xlu0 %296  ;;  %1486 = vperm.xlu1 %5578, %v6087_v10  }
  0xa5   : > { %5041 = vmatpush3.bf16.msra.mxu1 %v5648_v52  ;;  %vm332_vm1 = vcmp.eq.s32.totalorder %v6240_v44, %v300_v54  ;;  %vm330_vm2 = vcmp.eq.s32.totalorder %v6240_v44, %v297_v55  ;;  %vm331_vm5 = vcmp.eq.s32.totalorder %v6235_v41, %v300_v54  ;;  %vm329_vm6 = vcmp.eq.s32.totalorder %v6235_v41, %v297_v55  ;;  %v5674_v52 = vld [vmem:[%s7895_s1 + $0x128] sm:$0xff]   ;;  %v5677_v54 = vld [vmem:[%s7895_s1 + $0x170] sm:$0xff]  }
  0xa6   : > { %2293 = vperm.xlu0 %5595, %v6073_v6   ;;  %5042 = vmatprep.subr.bf16.mxu1 %v5649_v53  ;;  %vm4162_vm4 = vmpackc.low %vm332_vm1, %vm330_vm2  ;;  %v5686_v53 = vld [vmem:[%s7895_s1 + $0x1a0] sm:$0xff]   ;;  %v5687_v55 = vld [vmem:[%s7895_s1 + $0x1e8] sm:$0xff]  }
  0xa7   : > { %vm4164_vm9 = vmpackc.low %vm331_vm5, %vm329_vm6 }
  0xa8   : > { %4157 = vmatmul.mubr.msk.bf16.gmra.mrb[4].mxu1 %vm4156_vm13, %v5965_v48  ;;  %5579 = vset.pattern.permute.xlu1 %v5961_v36 }
  0xa9   : > { %4159 = vmatprep.mubr.msk.bf16.mxu1 %vm4158_vm14, %v5965_v48  ;;  %v6287_v58 = vpop.permute.xlu1 %658  ;;  %1090 = vperm.xlu1 %5579, %v6084_v9   ;;  %v6290_v59 = vpop.permute.xlu0 %655 }
  0xaa   : > { %5043 = vmatpush3.bf16.msra.mxu1 %v5650_v56  ;;  %5600 = vset.pattern.permute.xlu0 %v5964_v39  ;;  %vm705_vm7 = vcmp.eq.s32.totalorder %v6240_v44, %v6287_v58  ;;  %vm703_vm8 = vcmp.eq.s32.totalorder %v6240_v44, %v6290_v59  ;;  %vm704_vm0 = vcmp.eq.s32.totalorder %v6235_v41, %v6287_v58  ;;  %v6536_v56 = vld [vmem:[%s6070_s25 + $0x10] sm:$0xff] }
  0xab   : > { %5044 = vmatprep.subr.bf16.mxu1 %v5651_v57  ;;  %1888 = vperm.xlu0 %5600, %v6087_v10   ;;  %v5659_v10 = vld [vmem:[%s7895_s1 + $0xf8] sm:$0xff]   ;;  %vm4246_vm10 = vmpackc.low %vm705_vm7, %vm703_vm8  ;;  %vm702_vm1 = vcmp.eq.s32.totalorder %v6235_v41, %v6290_v59  ;;  %v5678_v59 = vld [vmem:[%s7895_s1 + $0x130] sm:$0xff]  }
  0xac   : > { %vm4248_vm5 = vmpackc.low %vm704_vm0, %vm702_vm1 }
  0xad   : > { %v6304_v62 = vpop.permute.xlu1 %661  ;;  %5580 = vset.pattern.permute.xlu1 %v5962_v37  ;;  %v6307_v63 = vpop.permute.xlu0 %664 }
  0xae   : > { %5045 = vmatpush3.bf16.msra.mxu1 %v5652_v60  ;;  %1492 = vperm.xlu1 %5580, %v6084_v9   ;;  %v5658_v9 = vld [vmem:[%s7895_s1 + $0xb0] sm:$0xff]   ;;  %vm706_vm7 = vcmp.eq.s32.totalorder %v6235_v41, %v6304_v62  ;;  %vm708_vm8 = vcmp.eq.s32.totalorder %v6235_v41, %v6307_v63  ;;  %v5688_v60 = vld [vmem:[%s7895_s1 + $0x1a8] sm:$0xff]  }
  0xaf   : > { %5046 = vmatprep.subr.bf16.mxu1 %v5653_v61  ;;  %1891 = vperm.xlu0 %5600, %v6073_v6   ;;  %v5681_v61 = vld [vmem:[%s7895_s1 + $0x178] sm:$0xff]  }
  0xb0   : > { %4161 = vmatmul.mubr.msk.bf16.gmra.mrb[8].mxu1 %vm4160_vm3, %v5965_v48  ;;  %vm707_vm3 = vcmp.eq.s32.totalorder %v6240_v44, %v6304_v62  ;;  %v5689_v62 = vld [vmem:[%s7895_s1 + $0x1f0] sm:$0xff]  }
  0xb1   : > { %4163 = vmatprep.mubr.msk.bf16.mxu1 %vm4162_vm4, %v5965_v48  ;;  %v6319_v3 = vpop.permute.xlu1 %667  ;;  %v6321_v4 = vpop.permute.xlu0 %670  ;;  %vm709_vm4 = vcmp.eq.s32.totalorder %v6240_v44, %v6307_v63  ;;  %v6574_v63 = vld [vmem:[%s6070_s25 + $0x18] sm:$0xff] }
  0xb2   : > { %5047 = vmatpush3.bf16.msra.mxu1 %v5654_v0  ;;  %5581 = vset.pattern.permute.xlu1 %v5961_v36  ;;  %vm4250_vm6 = vmpackc.low %vm709_vm4, %vm707_vm3  ;;  %vm710_vm3 = vcmp.eq.s32.totalorder %v6235_v41, %v6319_v3  ;;  %vm712_vm4 = vcmp.eq.s32.totalorder %v6235_v41, %v6321_v4 }
  0xb3   : > { %5048 = vmatprep.subr.bf16.mxu1 %v5655_v2  ;;  %1093 = vperm.xlu1 %5581, %v6095_v12  }
  0xb4   : > { %1900 = vperm.xlu0 %5600, %v6090_v11  }
  0xb5   : > { %v6338_v6 = vpop.permute.xlu1 %673  ;;  %v6340_v8 = vpop.permute.xlu0 %676 }
  0xb6   : > { %5049 = vmatpush3.bf16.msra.mxu1 %v5656_v5  ;;  %v5693_v5 = vld [vmem:[%s7895_s1 + $0x240] sm:$0xff]  }
  0xb7   : > { %5050 = vmatprep.subr.bf16.mxu1 %v5657_v7  ;;  %5582 = vset.pattern.permute.xlu1 %v5962_v37  ;;  %v5691_v7 = vld [vmem:[%s7895_s1 + $0x1f8] sm:$0xff]  }
  0xb8   : > { %4165 = vmatmul.mubr.msk.bf16.gmra.mrb[12].mxu1 %vm4164_vm9, %v5965_v48  ;;  %1495 = vperm.xlu1 %5582, %v6095_v12   ;;  %v5662_v12 = vld [vmem:[%s7895_s1 + $0x100] sm:$0xff]   ;;  %vm711_vm9 = vcmp.eq.s32.totalorder %v6240_v44, %v6319_v3  ;;  %v5682_v3 = vld [vmem:[%s7895_s1 + $0x138] sm:$0xff]  }
  0xb9   : > { %4247 = vmatprep.mubr.msk.bf16.mxu1 %vm4246_vm10, %v5965_v48  ;;  %1903 = vperm.xlu0 %5600, %v6115_v18   ;;  %vm713_vm10 = vcmp.eq.s32.totalorder %v6240_v44, %v6321_v4  ;;  %v5690_v4 = vld [vmem:[%s7895_s1 + $0x1b0] sm:$0xff]  }
  0xba   : > { %5051 = vmatpush3.bf16.msra.mxu1 %v5658_v9  ;;  %v255_v11 = vpop.permute.xlu1 %254  ;;  %v258_v13 = vpop.permute.xlu0 %257  ;;  %vm4254_vm0 = vmpackc.low %vm713_vm10, %vm711_vm9 }
  0xbb   : > { %vm301_vm11 = vcmp.eq.s32.totalorder %v6235_v41, %v255_v11  ;;  %vm303_vm12 = vcmp.eq.s32.totalorder %v6235_v41, %v258_v13  ;;  %5052 = vmatprep.subr.bf16.mxu1 %v5659_v10  ;;  %vm302_vm13 = vcmp.eq.s32.totalorder %v6240_v44, %v255_v11  ;;  %vm304_vm14 = vcmp.eq.s32.totalorder %v6240_v44, %v258_v13  ;;  %v5692_v10 = vld [vmem:[%s7895_s1 + $0x1b8] sm:$0xff]   ;;  %v5699_v11 = vld [vmem:[%s7895_s1 + $0x2c0] sm:$0xff]  }
  0xbc   : > { %vm4134_vm15 = vmpackc.low %vm304_vm14, %vm302_vm13  ;;  %1498 = vperm.xlu1 %5582, %v6374_v17   ;;  %v5967_v13 = vmov 7  }
  0xbd   : > { %4135 = vmatprep.mubr.msk.bf16.mxu0 %vm4134_vm15, %v5965_v48  ;;  %vm4136_vm2 = vmpackc.low %vm303_vm12, %vm301_vm11  ;;  %5605 = vset.pattern.permute.xlu0 %v5963_v38 }
  0xbe   : > { %5053 = vmatpush3.bf16.msra.mxu1 %v5660_v14  ;;  %4137 = vmatmul.mubr.msk.bf16.vlgmr.msra.gmra.mrb[0].mxu0 %vm4136_vm2, %v5965_v48  ;;  %v261_v30 = vpop.permute.xlu0 %260  ;;  %vm4252_vm13 = vmpackc.low %vm708_vm8, %vm706_vm7  ;;  %v6632_v14 = vld [vmem:[%s6070_s25 + $0x20] sm:$0xff] }
  0xbf   : > { %v6383_v18 = vpop.permute.xlu1 %679  ;;  %5103 = vmatpush3.bf16.msra.mxu0 %v5662_v12  ;;  %5166 = vmatprep.subr.bf16.mxu1 %v5671_v15  ;;  %vm306_vm11 = vcmp.eq.s32.totalorder %v6240_v44, %v261_v30  ;;  %vm305_vm12 = vcmp.eq.s32.totalorder %v6235_v41, %v261_v30  ;;  %vm4256_vm7 = vmpackc.low %vm712_vm4, %vm710_vm3  ;;  %v6691_v30 = vld [vmem:[%s6070_s25 + $0x48] sm:$0xff] }
  0xc0   : > { %5104 = vmatprep.subr.bf16.mxu0 %v5663_v16  ;;  %5584 = vset.pattern.permute.xlu1 %v5961_v36  ;;  %v5966_v36 = vmov 6  }
  0xc1   : > { %4249 = vmatmul.mubr.msk.bf16.vlgmr.msra.gmra.mrb[16].mxu1 %vm4248_vm5, %v5965_v48  ;;  %1102 = vperm.xlu1 %5584, %v6410_v23   ;;  %vm715_vm5 = vcmp.eq.s32.totalorder %v6240_v44, %v6338_v6 }
  0xc2   : > { %4251 = vmatprep.mubr.msk.bf16.mxu1 %vm4250_vm6, %v5965_v48  ;;  %5167 = vmatpush3.bf16.msra.mxu1 %v5672_v20  ;;  %vm717_vm6 = vcmp.eq.s32.totalorder %v6240_v44, %v6340_v8  ;;  %v270_v45 = vpop.permute.xlu0 %269  ;;  %v5694_v20 = vld [vmem:[%s7895_s1 + $0x200] sm:$0xff]  }
  0xc3   : > { %v6414_v24 = vpop.permute.xlu1 %682  ;;  %5105 = vmatpush3.bf16.msra.mxu0 %v5664_v19  ;;  %5168 = vmatprep.subr.bf16.mxu1 %v5675_v22  ;;  %vm312_vm8 = vcmp.eq.s32.totalorder %v6240_v44, %v270_v45  ;;  %vm4258_vm9 = vmpackc.low %vm717_vm6, %vm715_vm5  ;;  %vm311_vm10 = vcmp.eq.s32.totalorder %v6235_v41, %v270_v45  ;;  %v5695_v22 = vld [vmem:[%s7895_s1 + $0x248] sm:$0xff]   ;;  %v6735_v45 = vld [vmem:[%s6070_s25 + $0x40] sm:$0xff] }
  0xc4   : > { %5106 = vmatprep.subr.bf16.mxu0 %v5665_v21  ;;  %2305 = vperm.xlu0 %5605, %v6433_v29   ;;  %vm720_vm5 = vcmp.eq.s32.totalorder %v6235_v41, %v6414_v24 }
  0xc5   : > { %5585 = vset.pattern.permute.xlu1 %v5962_v37  ;;  %v6473_v37 = vld [vmem:[%s6070_s25] sm:$0xff] }
  0xc6   : > { %1504 = vperm.xlu1 %5585, %v6410_v23   ;;  %5169 = vmatpush3.bf16.msra.mxu1 %v5676_v27  ;;  %v273_v57 = vpop.permute.xlu0 %272 }
  0xc7   : > { %5107 = vmatpush3.bf16.msra.mxu0 %v5666_v25  ;;  %5170 = vmatprep.subr.bf16.mxu1 %v5679_v28  ;;  %v5697_v25 = vld [vmem:[%s7895_s1 + $0x250] sm:$0xff]  }
  0xc8   : > { %v264_v31 = vpop.permute.xlu1 %263  ;;  %5108 = vmatprep.subr.bf16.mxu0 %v5667_v26  ;;  %5608 = vset.pattern.permute.xlu0 %v5966_v36  ;;  %v6684_v26 = vld [vmem:[%s6070_s25 + $0x38] sm:$0xff] }
  0xc9   : > { %vm307_vm14 = vcmp.eq.s32.totalorder %v6235_v41, %v264_v31  ;;  %vm308_vm15 = vcmp.eq.s32.totalorder %v6240_v44, %v264_v31  ;;  %4253 = vmatmul.mubr.msk.bf16.gmra.mrb[20].mxu1 %vm4252_vm13, %v5965_v48  ;;  %2668 = vperm.xlu0 %5608, %v6497_v49   ;;  %v5698_v31 = vld [vmem:[%s7895_s1 + $0x210] sm:$0xff]  }
  0xca   : > { %4255 = vmatprep.mubr.msk.bf16.mxu1 %vm4254_vm0, %v5965_v48  ;;  %vm4138_vm1 = vmpackc.low %vm308_vm15, %vm306_vm11  ;;  %5586 = vset.pattern.permute.xlu1 %v5964_v39  ;;  %vm716_vm15 = vcmp.eq.s32.totalorder %v6235_v41, %v6340_v8 }
  0xcb   : > { %4139 = vmatprep.mubr.msk.bf16.mxu0 %vm4138_vm1, %v5965_v48  ;;  %vm4140_vm2 = vmpackc.low %vm307_vm14, %vm305_vm12  ;;  %1861 = vperm.xlu1 %5586, %v6473_v37   ;;  %vm714_vm14 = vcmp.eq.s32.totalorder %v6235_v41, %v6338_v6  ;;  %vm721_vm1 = vcmp.eq.s32.totalorder %v6240_v44, %v6414_v24  ;;  %v686_v0 = vpop.permute.xlu0 %685  ;;  %v6595_v6 = vld [vmem:[%s6070_s25 + $0x28] sm:$0xff] }
  0xcc   : > { %4141 = vmatmul.mubr.msk.bf16.gmra.mrb[4].mxu0 %vm4140_vm2, %v5965_v48  ;;  %5171 = vmatpush3.bf16.msra.mxu1 %v5680_v33  ;;  %vm719_vm2 = vcmp.eq.s32.totalorder %v6240_v44, %v6383_v18  ;;  %vm4260_vm3 = vmpackc.low %vm716_vm15, %vm714_vm14  ;;  %v5696_v24 = vld [vmem:[%s7895_s1 + $0x208] sm:$0xff]   ;;  %v5889_v33 = vld [vmem:[%s6070_s25 + $0x50] sm:$0xff] }
  0xcd   : > { %v6481_v42 = vpop.permute.xlu1 %688  ;;  %5109 = vmatpush3.bf16.msra.mxu0 %v5668_v32  ;;  %5172 = vmatprep.subr.bf16.mxu1 %v5683_v35  ;;  %vm4262_vm4 = vmpackc.low %vm721_vm1, %vm719_vm2  ;;  %vm722_vm2 = vcmp.eq.s32.totalorder %v6235_v41, %v686_v0  ;;  %v5701_v32 = vld [vmem:[%s7895_s1 + $0x258] sm:$0xff]  }
  0xce   : > { %5110 = vmatprep.subr.bf16.mxu0 %v5669_v34  ;;  %2671 = vperm.xlu0 %5608, %v6536_v56   ;;  %vm725_vm6 = vcmp.eq.s32.totalorder %v6240_v44, %v6481_v42  ;;  %vm724_vm1 = vcmp.eq.s32.totalorder %v6235_v41, %v6481_v42  ;;  %v5702_v42 = vld [vmem:[%s7895_s1 + $0x218] sm:$0xff]  }
  0xcf   : > { %5587 = vset.pattern.permute.xlu1 %v5963_v38  ;;  %v6607_v9 = vpop.permute.xlu0 %697 }
  0xd0   : > { %2263 = vperm.xlu1 %5587, %v6473_v37   ;;  %5173 = vmatpush3.bf16.msra.mxu1 %v5684_v47 }
  0xd1   : > { %4257 = vmatmul.mubr.msk.bf16.gmra.mrb[24].mxu1 %vm4256_vm7, %v5965_v48  ;;  %5111 = vmatpush3.bf16.msra.mxu0 %v5670_v43  ;;  %vm723_vm7 = vcmp.eq.s32.totalorder %v6240_v44, %v686_v0  ;;  %v5705_v43 = vld [vmem:[%s7895_s1 + $0x260] sm:$0xff]   ;;  %v5717_v0 = vld [vmem:[%s7895_s1 + $0x278] sm:$0xff]  }
  0xd2   : > { %4259 = vmatprep.mubr.msk.bf16.mxu1 %vm4258_vm9, %v5965_v48  ;;  %v267_v51 = vpop.permute.xlu1 %266  ;;  %5112 = vmatprep.subr.bf16.mxu0 %v5673_v46  ;;  %vm314_vm9 = vcmp.eq.s32.totalorder %v6240_v44, %v273_v57  ;;  %vm4266_vm14 = vmpackc.low %vm725_vm6, %vm723_vm7 }
  0xd3   : > { %vm309_vm11 = vcmp.eq.s32.totalorder %v6235_v41, %v267_v51  ;;  %vm310_vm12 = vcmp.eq.s32.totalorder %v6240_v44, %v267_v51  ;;  %5174 = vmatprep.subr.bf16.mxu1 %v5685_v50  ;;  %2680 = vperm.xlu0 %5608, %v6595_v6   ;;  %v5700_v50 = vld [vmem:[%s7895_s1 + $0x280] sm:$0xff]   ;;  %v5703_v51 = vld [vmem:[%s7895_s1 + $0x2c8] sm:$0xff]  }
  0xd4   : > { %vm4142_vm13 = vmpackc.low %vm312_vm8, %vm310_vm12  ;;  %2266 = vperm.xlu1 %5587, %v6497_v49   ;;  %5175 = vmatpush3.bf16.msra.mxu1 %v5686_v53  ;;  %vm718_vm8 = vcmp.eq.s32.totalorder %v6235_v41, %v6383_v18  ;;  %v1061_v15 = vpop.permute.xlu0 %1060  ;;  %v5886_v18 = vld [vmem:[%s6070_s25 + $0x30] sm:$0xff]  ;;  %v5709_v53 = vld [vmem:[%s7895_s1 + $0x268] sm:$0xff]  }
  0xd5   : > { %4143 = vmatprep.mubr.msk.bf16.mxu0 %vm4142_vm13, %v5965_v48  ;;  %vm4144_vm0 = vmpackc.low %vm311_vm10, %vm309_vm11  ;;  %5113 = vmatpush3.bf16.msra.mxu0 %v5674_v52  ;;  %vm313_vm10 = vcmp.eq.s32.totalorder %v6235_v41, %v273_v57  ;;  %vm1106_vm7 = vcmp.eq.s32.totalorder %v6235_v41, %v1061_v15  ;;  %v5706_v52 = vld [vmem:[%s7895_s1 + $0x220] sm:$0xff]   ;;  %v5710_v57 = vld [vmem:[%s7895_s1 + $0x228] sm:$0xff]  }
  0xd6   : > { %4145 = vmatmul.mubr.msk.bf16.gmra.mrb[8].mxu0 %vm4144_vm0, %v5965_v48  ;;  %5114 = vmatprep.subr.bf16.mxu0 %v5677_v54  ;;  %vm4264_vm11 = vmpackc.low %vm720_vm5, %vm718_vm8  ;;  %vm1107_vm8 = vcmp.eq.s32.totalorder %v6240_v44, %v1061_v15  ;;  %v6842_v15 = vld [vmem:[%s6070_s25 + $0x60] sm:$0xff] }
  0xd7   : > { %v6552_v58 = vpop.permute.xlu1 %691  ;;  %5176 = vmatprep.subr.bf16.mxu1 %v5687_v55  ;;  %5613 = vset.pattern.permute.xlu0 %v5967_v13  ;;  %vm4268_vm5 = vmpackc.low %vm724_vm1, %vm722_vm2  ;;  %v5704_v55 = vld [vmem:[%s7895_s1 + $0x288] sm:$0xff]  }
  0xd8   : > { %5588 = vset.pattern.permute.xlu1 %v5964_v39  ;;  %5177 = vmatpush3.bf16.msra.mxu1 %v5688_v60  ;;  %v1064_v19 = vpop.permute.xlu0 %1063 }
  0xd9   : > { %4261 = vmatmul.mubr.msk.bf16.gmra.mrb[28].mxu1 %vm4260_vm3, %v5965_v48  ;;  %1870 = vperm.xlu1 %5588, %v6574_v63  }
  0xda   : > { %4263 = vmatprep.mubr.msk.bf16.mxu1 %vm4262_vm4, %v5965_v48  ;;  %5115 = vmatpush3.bf16.msra.mxu0 %v5678_v59  ;;  %vm727_vm4 = vcmp.eq.s32.totalorder %v6240_v44, %v6552_v58  ;;  %v5708_v59 = vld [vmem:[%s7895_s1 + $0x290] sm:$0xff]  }
  0xdb   : > { %v6578_v2 = vpop.permute.xlu1 %694  ;;  %5116 = vmatprep.subr.bf16.mxu0 %v5681_v61  ;;  %5178 = vmatprep.subr.bf16.mxu1 %v5689_v62  ;;  %v5711_v61 = vld [vmem:[%s7895_s1 + $0x2d8] sm:$0xff]   ;;  %v5714_v62 = vld [vmem:[%s7895_s1 + $0x230] sm:$0xff]  }
  0xdc   : > { %5179 = vmatpush3.bf16.msra.mxu1 %v5690_v4  ;;  %3073 = vperm.xlu0 %5613, %v6536_v56   ;;  %vm729_vm3 = vcmp.eq.s32.totalorder %v6240_v44, %v6578_v2  ;;  %v5707_v56 = vld [vmem:[%s7895_s1 + $0x2d0] sm:$0xff]   ;;  %v5712_v4 = vld [vmem:[%s7895_s1 + $0x298] sm:$0xff]  }
  0xdd   : > { %5591 = vset.pattern.permute.xlu1 %v5963_v38  ;;  %5180 = vmatprep.subr.bf16.mxu1 %v5691_v7  ;;  %vm4270_vm6 = vmpackc.low %vm729_vm3, %vm727_vm4  ;;  %v6688_v27 = vpop.permute.xlu0 %1465  ;;  %vm730_vm4 = vcmp.eq.s32.totalorder %v6235_v41, %v6607_v9  ;;  %v5715_v7 = vld [vmem:[%s7895_s1 + $0x2e0] sm:$0xff]  }
  0xde   : > { %2272 = vperm.xlu1 %5591, %v6574_v63   ;;  %5117 = vmatpush3.bf16.msra.mxu0 %v5682_v3 }
  0xdf   : > { %5230 = vmatprep.subr.bf16.mxu0 %v5693_v5 }
  0xe0   : > { %v276_v8 = vpop.permute.xlu1 %275  ;;  %5181 = vmatpush3.bf16.msra.mxu1 %v5692_v10  ;;  %3085 = vperm.xlu0 %5613, %v5886_v18  }
  0xe1   : > { %vm315_vm12 = vcmp.eq.s32.totalorder %v6235_v41, %v276_v8  ;;  %vm316_vm13 = vcmp.eq.s32.totalorder %v6240_v44, %v276_v8  ;;  %4265 = vmatmul.mubr.msk.bf16.gmra.mrb[32].mxu1 %vm4264_vm11, %v5965_v48  ;;  %5294 = vmatprep.subr.bf16.mxu1 %v5699_v11  ;;  %v6712_v35 = vpop.permute.xlu0 %1477  ;;  %v5718_v8 = vld [vmem:[%s7895_s1 + $0x238] sm:$0xff]   ;;  %v5716_v11 = vld [vmem:[%s7895_s1 + $0x2a0] sm:$0xff]  }
  0xe2   : > { %4267 = vmatprep.mubr.msk.bf16.mxu1 %vm4266_vm14, %v5965_v48  ;;  %vm4146_vm15 = vmpackc.low %vm316_vm13, %vm314_vm9  ;;  %5592 = vset.pattern.permute.xlu1 %v5964_v39 }
  0xe3   : > { %4147 = vmatprep.mubr.msk.bf16.mxu0 %vm4146_vm15, %v5965_v48  ;;  %vm4148_vm0 = vmpackc.low %vm315_vm12, %vm313_vm10  ;;  %1873 = vperm.xlu1 %5592, %v6632_v14   ;;  %vm728_vm12 = vcmp.eq.s32.totalorder %v6235_v41, %v6578_v2  ;;  %vm731_vm15 = vcmp.eq.s32.totalorder %v6240_v44, %v6607_v9  ;;  %v6801_v2 = vld [vmem:[%s6070_s25 + $0x58] sm:$0xff]  ;;  %v5725_v9 = vld [vmem:[%s7895_s1 + $0x340] sm:$0xff]  }
  0xe4   : > { %4149 = vmatmul.mubr.msk.bf16.gmra.mrb[12].mxu0 %vm4148_vm0, %v5965_v48  ;;  %5616 = vset.pattern.permute.xlu0 %v5966_v36  ;;  %vm726_vm0 = vcmp.eq.s32.totalorder %v6235_v41, %v6552_v58  ;;  %v5713_v58 = vld [vmem:[%s7895_s1 + $0x270] sm:$0xff]  }
  0xe5   : > { %v6639_v12 = vpop.permute.xlu1 %700  ;;  %2683 = vperm.xlu0 %5616, %v5886_v18   ;;  %vm4272_vm1 = vmpackc.low %vm728_vm12, %vm726_vm0  ;;  %v5720_v18 = vld [vmem:[%s7895_s1 + $0x2a8] sm:$0xff]  }
  0xe6   : > { %vm733_vm14 = vcmp.eq.s32.totalorder %v6240_v44, %v6639_v12  ;;  %vm732_vm3 = vcmp.eq.s32.totalorder %v6235_v41, %v6639_v12  ;;  %v1073_v47 = vpop.permute.xlu0 %1072  ;;  %v5719_v12 = vld [vmem:[%s7895_s1 + $0x2e8] sm:$0xff]  }
  0xe7   : > { %5593 = vset.pattern.permute.xlu1 %v5963_v38  ;;  %vm4274_vm2 = vmpackc.low %vm733_vm14, %vm731_vm15  ;;  %vm1511_vm15 = vcmp.eq.s32.totalorder %v6240_v44, %v6688_v27 }
  0xe8   : > { %2275 = vperm.xlu1 %5593, %v6632_v14  }
  0xe9   : > { %4269 = vmatmul.mubr.msk.bf16.gmra.mrb[36].mxu1 %vm4268_vm5, %v5965_v48  ;;  %2692 = vperm.xlu0 %5616, %v6691_v30  }
  0xea   : > { %4271 = vmatprep.mubr.msk.bf16.mxu1 %vm4270_vm6, %v5965_v48  ;;  %v1058_v16 = vpop.permute.xlu1 %1057  ;;  %vm1109_vm6 = vcmp.eq.s32.totalorder %v6240_v44, %v1064_v19  ;;  %v1076_v5 = vpop.permute.xlu0 %1075 }
  0xeb   : > { %vm1104_vm9 = vcmp.eq.s32.totalorder %v6235_v41, %v1058_v16  ;;  %vm1105_vm10 = vcmp.eq.s32.totalorder %v6240_v44, %v1058_v16 }
  0xec   : > { %vm4360_vm11 = vmpackc.low %vm1106_vm7, %vm1104_vm9  ;;  %2278 = vperm.xlu1 %5593, %v6595_v6  }
  0xed   : > { %vm4358_vm13 = vmpackc.low %vm1107_vm8, %vm1105_vm10  ;;  %2695 = vperm.xlu0 %5616, %v5889_v33   ;;  %vm1108_vm8 = vcmp.eq.s32.totalorder %v6235_v41, %v1064_v19  ;;  %v5721_v19 = vld [vmem:[%s7895_s1 + $0x2f0] sm:$0xff]  }
  0xee   : > { %4359 = vmatprep.mubr.msk.bf16.mxu0 %vm4358_vm13, %v5965_v48  ;;  %vm4276_vm9 = vmpackc.low %vm732_vm3, %vm730_vm4  ;;  %v1085_v16 = vpop.permute.xlu0 %1084 }
  0xef   : > { %4361 = vmatmul.mubr.msk.bf16.vlgmr.msra.gmra.mrb[16].mxu0 %vm4360_vm11, %v5965_v48  ;;  %v6670_v21 = vpop.permute.xlu1 %1459 }
  0xf0   : > { %5231 = vmatpush3.bf16.msra.mxu0 %v5694_v20  ;;  %5594 = vset.pattern.permute.xlu1 %v5964_v39  ;;  %vm1507_vm7 = vcmp.eq.s32.totalorder %v6240_v44, %v6670_v21 }
  0xf1   : > { %4273 = vmatmul.mubr.msk.bf16.gmra.mrb[40].mxu1 %vm4272_vm1, %v5965_v48  ;;  %1882 = vperm.xlu1 %5594, %v6684_v26  }
  0xf2   : > { %4275 = vmatprep.mubr.msk.bf16.mxu1 %vm4274_vm2, %v5965_v48  ;;  %5232 = vmatprep.subr.bf16.mxu0 %v5695_v22  ;;  %vm1506_vm2 = vcmp.eq.s32.totalorder %v6235_v41, %v6670_v21  ;;  %v1088_v20 = vpop.permute.xlu0 %1087  ;;  %v5722_v22 = vld [vmem:[%s7895_s1 + $0x2b0] sm:$0xff]  }
  0xf3   : > { %v1463_v28 = vpop.permute.xlu1 %1462  ;;  %5621 = vset.pattern.permute.xlu0 %v5967_v13 }
  0xf4   : > { %5233 = vmatpush3.bf16.msra.mxu0 %v5696_v24  ;;  %vm1509_vm5 = vcmp.eq.s32.totalorder %v6240_v44, %v1463_v28  ;;  %vm1508_vm0 = vcmp.eq.s32.totalorder %v6235_v41, %v1463_v28  ;;  %3097 = vperm.xlu0 %5621, %v5889_v33   ;;  %v5723_v24 = vld [vmem:[%s7895_s1 + $0x2f8] sm:$0xff]  }
  0xf5   : > { %5234 = vmatprep.subr.bf16.mxu0 %v5697_v25  ;;  %5596 = vset.pattern.permute.xlu1 %v5963_v38  ;;  %vm4470_vm12 = vmpackc.low %vm1509_vm5, %vm1507_vm7  ;;  %vm1115_vm5 = vcmp.eq.s32.totalorder %v6240_v44, %v1073_v47 }
  0xf6   : > { %2284 = vperm.xlu1 %5596, %v6684_v26   ;;  %vm4472_vm4 = vmpackc.low %vm1508_vm0, %vm1506_vm2  ;;  %v1097_v25 = vpop.permute.xlu0 %1096 }
  0xf8   : > { %v1067_v34 = vpop.permute.xlu1 %1066  ;;  %5235 = vmatpush3.bf16.msra.mxu0 %v5698_v31  ;;  %5624 = vset.pattern.permute.xlu0 %v5966_v36  ;;  %v5727_v31 = vld [vmem:[%s7895_s1 + $0x3c0] sm:$0xff]  }
  0xf9   : > { %vm1110_vm10 = vcmp.eq.s32.totalorder %v6235_v41, %v1067_v34  ;;  %vm1111_vm11 = vcmp.eq.s32.totalorder %v6240_v44, %v1067_v34  ;;  %4277 = vmatmul.mubr.msk.bf16.gmra.mrb[44].mxu1 %vm4276_vm9, %v5965_v48  ;;  %5236 = vmatprep.subr.bf16.mxu0 %v5701_v32 }
  0xfa   : > { %4471 = vmatprep.mubr.msk.bf16.mxu1 %vm4470_vm12, %v5965_v48  ;;  %vm4362_vm13 = vmpackc.low %vm1111_vm11, %vm1109_vm6  ;;  %5597 = vset.pattern.permute.xlu1 %v5964_v39  ;;  %vm1114_vm6 = vcmp.eq.s32.totalorder %v6235_v41, %v1073_v47  ;;  %v6884_v32 = vpop.permute.xlu0 %1099  ;;  %v5726_v47 = vld [vmem:[%s7895_s1 + $0x300] sm:$0xff]  }
  0xfb   : > { %4363 = vmatprep.mubr.msk.bf16.mxu0 %vm4362_vm13, %v5965_v48  ;;  %vm4364_vm14 = vmpackc.low %vm1110_vm10, %vm1108_vm8  ;;  %1885 = vperm.xlu1 %5597, %v6735_v45   ;;  %vm1510_vm10 = vcmp.eq.s32.totalorder %v6235_v41, %v6688_v27  ;;  %v5724_v27 = vld [vmem:[%s7895_s1 + $0x2b8] sm:$0xff]  }
  0xfc   : > { %4365 = vmatmul.mubr.msk.bf16.gmra.mrb[20].mxu0 %vm4364_vm14, %v5965_v48  ;;  %2704 = vperm.xlu0 %5624, %v6374_v17  }
  0xfd   : > { %v1469_v46 = vpop.permute.xlu1 %1468  ;;  %5237 = vmatpush3.bf16.msra.mxu0 %v5702_v42 }
  0xfe   : > { %vm1513_vm1 = vcmp.eq.s32.totalorder %v6240_v44, %v1469_v46  ;;  %5238 = vmatprep.subr.bf16.mxu0 %v5705_v43  ;;  %vm1512_vm11 = vcmp.eq.s32.totalorder %v6235_v41, %v1469_v46 }
  0xff   : > { %vm4474_vm3 = vmpackc.low %vm1513_vm1, %vm1511_vm15  ;;  %5598 = vset.pattern.permute.xlu1 %v5963_v38  ;;  %v1490_v33 = vpop.permute.xlu0 %1489 }
 0x100   : > { %2287 = vperm.xlu1 %5598, %v6735_v45   ;;  %vm4476_vm13 = vmpackc.low %vm1512_vm11, %vm1510_vm10  ;;  %2707 = vperm.xlu0 %5624, %v6433_v29   ;;  %vm1519_vm10 = vcmp.eq.s32.totalorder %v6240_v44, %v6712_v35  ;;  %vm1518_vm11 = vcmp.eq.s32.totalorder %v6235_v41, %v6712_v35 }
 0x101   : > { %4473 = vmatmul.mubr.msk.bf16.vlgmr.msra.gmra.mrb[48].mxu1 %vm4472_vm4, %v5965_v48  ;;  %5239 = vmatpush3.bf16.msra.mxu0 %v5706_v52 }
 0x102   : > { %4475 = vmatprep.mubr.msk.bf16.mxu1 %vm4474_vm3, %v5965_v48  ;;  %v1070_v54 = vpop.permute.xlu1 %1069  ;;  %5295 = vmatpush3.bf16.msra.mxu1 %v5700_v50  ;;  %vm1117_vm3 = vcmp.eq.s32.totalorder %v6240_v44, %v1076_v5 }
 0x103   : > { %vm1112_vm7 = vcmp.eq.s32.totalorder %v6235_v41, %v1070_v54  ;;  %vm1113_vm8 = vcmp.eq.s32.totalorder %v6240_v44, %v1070_v54  ;;  %5296 = vmatprep.subr.bf16.mxu1 %v5703_v51  ;;  %5240 = vmatprep.subr.bf16.mxu0 %v5709_v53  ;;  %v1502_v34 = vpop.permute.xlu0 %1501  ;;  %v5730_v51 = vld [vmem:[%s7895_s1 + $0x308] sm:$0xff]   ;;  %v5732_v53 = vld [vmem:[%s7895_s1 + $0x310] sm:$0xff]  }
 0x104   : > { %vm4366_vm9 = vmpackc.low %vm1115_vm5, %vm1113_vm8  ;;  %2290 = vperm.xlu1 %5598, %v6691_v30   ;;  %vm1116_vm5 = vcmp.eq.s32.totalorder %v6235_v41, %v1076_v5  ;;  %5627 = vset.pattern.permute.xlu0 %v5967_v13  ;;  %v5741_v5 = vld [vmem:[%s7895_s1 + $0x368] sm:$0xff]  }
 0x105   : > { %vm4368_vm12 = vmpackc.low %vm1114_vm6, %vm1112_vm7  ;;  %4367 = vmatprep.mubr.msk.bf16.mxu0 %vm4366_vm9, %v5965_v48  ;;  %5241 = vmatpush3.bf16.msra.mxu0 %v5710_v57  ;;  %v5733_v57 = vld [vmem:[%s7895_s1 + $0x3c8] sm:$0xff]  }
 0x106   : > { %4369 = vmatmul.mubr.msk.bf16.gmra.mrb[24].mxu0 %vm4368_vm12, %v5965_v48  ;;  %5297 = vmatpush3.bf16.msra.mxu1 %v5704_v55  ;;  %v5735_v55 = vld [vmem:[%s7895_s1 + $0x358] sm:$0xff]  }
 0x107   : > { %v1472_v60 = vpop.permute.xlu1 %1471  ;;  %5298 = vmatprep.subr.bf16.mxu1 %v5707_v56  ;;  %5242 = vmatprep.subr.bf16.mxu0 %v5713_v58  ;;  %v5728_v56 = vld [vmem:[%s7895_s1 + $0x380] sm:$0xff]  }
 0x108   : > { %5599 = vset.pattern.permute.xlu1 %v5964_v39  ;;  %vm1515_vm14 = vcmp.eq.s32.totalorder %v6240_v44, %v1472_v60  ;;  %vm1514_vm2 = vcmp.eq.s32.totalorder %v6235_v41, %v1472_v60  ;;  %3109 = vperm.xlu0 %5627, %v6433_v29   ;;  %v6928_v42 = vpop.permute.xlu0 %2269  ;;  %v5737_v60 = vld [vmem:[%s7895_s1 + $0x360] sm:$0xff]  }
 0x109   : > { %4477 = vmatmul.mubr.msk.bf16.gmra.mrb[52].mxu1 %vm4476_vm13, %v5965_v48  ;;  %1894 = vperm.xlu1 %5599, %v6801_v2  }
 0x10a   : > { %5299 = vmatpush3.bf16.msra.mxu1 %v5708_v59  ;;  %5243 = vmatpush3.bf16.msra.mxu0 %v5714_v62  ;;  %v5736_v59 = vld [vmem:[%s7895_s1 + $0x318] sm:$0xff]  }
 0x10b   : > { %v1475_v3 = vpop.permute.xlu1 %1474  ;;  %5300 = vmatprep.subr.bf16.mxu1 %v5711_v61  ;;  %5244 = vmatprep.subr.bf16.mxu0 %v5717_v0  ;;  %v5739_v61 = vld [vmem:[%s7895_s1 + $0x3d0] sm:$0xff]   ;;  %v5738_v0 = vld [vmem:[%s7895_s1 + $0x320] sm:$0xff]  }
 0x10c   : > { %vm1517_vm15 = vcmp.eq.s32.totalorder %v6240_v44, %v1475_v3  ;;  %vm1516_vm0 = vcmp.eq.s32.totalorder %v6235_v41, %v1475_v3 }
 0x10d   : > { %vm4478_vm1 = vmpackc.low %vm1517_vm15, %vm1515_vm14  ;;  %5601 = vset.pattern.permute.xlu1 %v5963_v38  ;;  %v1865_v43 = vpop.permute.xlu0 %1864 }
 0x10e   : > { %4479 = vmatprep.mubr.msk.bf16.mxu1 %vm4478_vm1, %v5965_v48  ;;  %2296 = vperm.xlu1 %5601, %v6801_v2   ;;  %vm4480_vm4 = vmpackc.low %vm1516_vm0, %vm1514_vm2  ;;  %vm1123_vm0 = vcmp.eq.s32.totalorder %v6240_v44, %v1085_v16  ;;  %vm1122_vm1 = vcmp.eq.s32.totalorder %v6235_v41, %v1085_v16  ;;  %v5746_v16 = vld [vmem:[%s7895_s1 + $0x330] sm:$0xff]  }
 0x10f   : > { %5301 = vmatpush3.bf16.msra.mxu1 %v5712_v4  ;;  %5245 = vmatpush3.bf16.msra.mxu0 %v5718_v8  ;;  %v5740_v4 = vld [vmem:[%s7895_s1 + $0x390] sm:$0xff]   ;;  %v5742_v8 = vld [vmem:[%s7895_s1 + $0x328] sm:$0xff]  }
 0x110   : > { %v1079_v10 = vpop.permute.xlu1 %1078  ;;  %5302 = vmatprep.subr.bf16.mxu1 %v5715_v7  ;;  %5358 = vmatprep.subr.bf16.mxu0 %v5725_v9  ;;  %v5743_v7 = vld [vmem:[%s7895_s1 + $0x3d8] sm:$0xff]  }
 0x111   : > { %vm1118_vm6 = vcmp.eq.s32.totalorder %v6235_v41, %v1079_v10  ;;  %vm1119_vm7 = vcmp.eq.s32.totalorder %v6240_v44, %v1079_v10  ;;  %4481 = vmatmul.mubr.msk.bf16.gmra.mrb[56].mxu1 %vm4480_vm4, %v5965_v48  ;;  %v1868_v54 = vpop.permute.xlu0 %1867  ;;  %v5745_v10 = vld [vmem:[%s7895_s1 + $0x370] sm:$0xff]  }
 0x112   : > { %vm4370_vm8 = vmpackc.low %vm1119_vm7, %vm1117_vm3  ;;  %5602 = vset.pattern.permute.xlu1 %v5964_v39 }
 0x113   : > { %vm4372_vm9 = vmpackc.low %vm1118_vm6, %vm1116_vm5  ;;  %4371 = vmatprep.mubr.msk.bf16.mxu0 %vm4370_vm8, %v5965_v48  ;;  %1897 = vperm.xlu1 %5602, %v6842_v15  }
 0x114   : > { %4373 = vmatmul.mubr.msk.bf16.gmra.mrb[28].mxu0 %vm4372_vm9, %v5965_v48  ;;  %5303 = vmatpush3.bf16.msra.mxu1 %v5716_v11  ;;  %v5747_v11 = vld [vmem:[%s7895_s1 + $0x3e0] sm:$0xff]  }
 0x115   : > { %v1481_v29 = vpop.permute.xlu1 %1480  ;;  %5304 = vmatprep.subr.bf16.mxu1 %v5719_v12  ;;  %v1877_v3 = vpop.permute.xlu0 %1876 }
 0x116   : > { %vm1520_vm12 = vcmp.eq.s32.totalorder %v6235_v41, %v1481_v29  ;;  %vm1521_vm13 = vcmp.eq.s32.totalorder %v6240_v44, %v1481_v29  ;;  %v5748_v29 = vld [vmem:[%s7895_s1 + $0x3a0] sm:$0xff]  }
 0x117   : > { %vm4482_vm14 = vmpackc.low %vm1521_vm13, %vm1519_vm10  ;;  %5603 = vset.pattern.permute.xlu1 %v5963_v38  ;;  %vm1124_vm13 = vcmp.eq.s32.totalorder %v6235_v41, %v1088_v20 }
 0x118   : > { %4483 = vmatprep.mubr.msk.bf16.mxu1 %vm4482_vm14, %v5965_v48  ;;  %vm4484_vm15 = vmpackc.low %vm1520_vm12, %vm1518_vm11  ;;  %2299 = vperm.xlu1 %5603, %v6842_v15   ;;  %vm1125_vm12 = vcmp.eq.s32.totalorder %v6240_v44, %v1088_v20  ;;  %v5750_v20 = vld [vmem:[%s7895_s1 + $0x338] sm:$0xff]  }
 0x119   : > { %4485 = vmatmul.mubr.msk.bf16.gmra.mrb[60].mxu1 %vm4484_vm15, %v5965_v48  ;;  %v1880_v12 = vpop.permute.xlu0 %1879 }
 0x11a   : > { %v1082_v21 = vpop.permute.xlu1 %1081  ;;  %5305 = vmatpush3.bf16.msra.mxu1 %v5720_v18 }
 0x11b   : > { %vm1120_vm2 = vcmp.eq.s32.totalorder %v6235_v41, %v1082_v21  ;;  %vm1121_vm3 = vcmp.eq.s32.totalorder %v6240_v44, %v1082_v21  ;;  %5306 = vmatprep.subr.bf16.mxu1 %v5721_v19  ;;  %v5751_v19 = vld [vmem:[%s7895_s1 + $0x3e8] sm:$0xff]  }
 0x11c   : > { %vm4374_vm4 = vmpackc.low %vm1123_vm0, %vm1121_vm3  ;;  %2302 = vperm.xlu1 %5603, %v6374_v17   ;;  %vm1526_vm3 = vcmp.eq.s32.totalorder %v6235_v41, %v1490_v33 }
 0x11d   : > { %vm4376_vm5 = vmpackc.low %vm1122_vm1, %vm1120_vm2  ;;  %4375 = vmatprep.mubr.msk.bf16.mxu0 %vm4374_vm4, %v5965_v48  ;;  %vm1527_vm2 = vcmp.eq.s32.totalorder %v6240_v44, %v1490_v33 }
 0x11e   : > { %4377 = vmatmul.mubr.msk.bf16.gmra.mrb[32].mxu0 %vm4376_vm5, %v5965_v48  ;;  %5307 = vmatpush3.bf16.msra.mxu1 %v5722_v22 }
 0x11f   : > { %v1484_v28 = vpop.permute.xlu1 %1483  ;;  %5308 = vmatprep.subr.bf16.mxu1 %v5723_v24  ;;  %v5752_v24 = vld [vmem:[%s7895_s1 + $0x3a8] sm:$0xff]  }
 0x120   : > { %5604 = vset.pattern.permute.xlu1 %v5964_v39  ;;  %vm1523_vm6 = vcmp.eq.s32.totalorder %v6240_v44, %v1484_v28  ;;  %vm1522_vm9 = vcmp.eq.s32.totalorder %v6235_v41, %v1484_v28 }
 0x121   : > { %1906 = vperm.xlu1 %5604, %v6410_v23   ;;  %v2282_v21 = vpop.permute.xlu0 %2281 }
 0x122   : > { %5309 = vmatpush3.bf16.msra.mxu1 %v5724_v27 }
 0x123   : > { %v1487_v17 = vpop.permute.xlu1 %1486  ;;  %5422 = vmatprep.subr.bf16.mxu1 %v5727_v31  ;;  %v5754_v31 = vld [vmem:[%s7895_s1 + $0x3b0] sm:$0xff]  }
 0x124   : > { %vm1524_vm7 = vcmp.eq.s32.totalorder %v6235_v41, %v1487_v17  ;;  %vm1525_vm8 = vcmp.eq.s32.totalorder %v6240_v44, %v1487_v17 }
 0x125   : > { %vm4486_vm10 = vmpackc.low %vm1525_vm8, %vm1523_vm6  ;;  %5606 = vset.pattern.permute.xlu1 %v5963_v38  ;;  %vm1131_vm8 = vcmp.eq.s32.totalorder %v6240_v44, %v1097_v25  ;;  %v7085_v28 = vpop.permute.xlu0 %2293 }
 0x126   : > { %4487 = vmatprep.mubr.msk.bf16.mxu1 %vm4486_vm10, %v5965_v48  ;;  %vm4488_vm11 = vmpackc.low %vm1524_vm7, %vm1522_vm9  ;;  %2308 = vperm.xlu1 %5606, %v6410_v23   ;;  %vm1130_vm9 = vcmp.eq.s32.totalorder %v6235_v41, %v1097_v25  ;;  %v5753_v25 = vld [vmem:[%s7895_s1 + $0x3f0] sm:$0xff]  }
 0x127   : > { %4489 = vmatmul.mubr.msk.bf16.gmra.mrb[64].mxu1 %vm4488_vm11, %v5965_v48 }
 0x128   : > { %v1091_v39 = vpop.permute.xlu1 %1090 }
 0x129   : > { %vm1126_vm14 = vcmp.eq.s32.totalorder %v6235_v41, %v1091_v39  ;;  %vm1127_vm15 = vcmp.eq.s32.totalorder %v6240_v44, %v1091_v39 }
 0x12a   : > { %vm4378_vm0 = vmpackc.low %vm1127_vm15, %vm1125_vm12  ;;  %5607 = vset.pattern.permute.xlu1 %v5966_v36 }
 0x12b   : > { %4379 = vmatprep.mubr.msk.bf16.mxu0 %vm4378_vm0, %v5965_v48  ;;  %vm4380_vm1 = vmpackc.low %vm1126_vm14, %vm1124_vm13  ;;  %2665 = vperm.xlu1 %5607, %v6473_v37  }
 0x12c   : > { %4381 = vmatmul.mubr.msk.bf16.gmra.mrb[36].mxu0 %vm4380_vm1, %v5965_v48 }
 0x12d   : > { %v1493_v38 = vpop.permute.xlu1 %1492 }
 0x12e   : > { %vm1528_vm4 = vcmp.eq.s32.totalorder %v6235_v41, %v1493_v38  ;;  %vm1529_vm5 = vcmp.eq.s32.totalorder %v6240_v44, %v1493_v38 }
 0x12f   : > { %vm4490_vm6 = vmpackc.low %vm1529_vm5, %vm1527_vm2  ;;  %5609 = vset.pattern.permute.xlu1 %v5967_v13  ;;  %vm1132_vm5 = vcmp.eq.s32.totalorder %v6235_v41, %v6884_v32 }
 0x130   : > { %vm4492_vm7 = vmpackc.low %vm1528_vm4, %vm1526_vm3  ;;  %3067 = vperm.xlu1 %5609, %v6473_v37   ;;  %4491 = vmatprep.mubr.msk.bf16.mxu1 %vm4490_vm6, %v5965_v48  ;;  %vm1133_vm4 = vcmp.eq.s32.totalorder %v6240_v44, %v6884_v32 }
 0x131   : > { %4493 = vmatmul.mubr.msk.bf16.gmra.mrb[68].mxu1 %vm4492_vm7, %v5965_v48 }
 0x132   : > { %v1094_v23 = vpop.permute.xlu1 %1093 }
 0x133   : > { %vm1128_vm10 = vcmp.eq.s32.totalorder %v6235_v41, %v1094_v23  ;;  %vm1129_vm11 = vcmp.eq.s32.totalorder %v6240_v44, %v1094_v23 }
 0x134   : > { %3070 = vperm.xlu1 %5609, %v6497_v49   ;;  %vm4382_vm12 = vmpackc.low %vm1131_vm8, %vm1129_vm11  ;;  %vm1534_vm11 = vcmp.eq.s32.totalorder %v6235_v41, %v1502_v34 }
 0x135   : > { %4383 = vmatprep.mubr.msk.bf16.mxu0 %vm4382_vm12, %v5965_v48  ;;  %vm4384_vm13 = vmpackc.low %vm1130_vm9, %vm1128_vm10  ;;  %vm1535_vm10 = vcmp.eq.s32.totalorder %v6240_v44, %v1502_v34  ;;  %v1889_v34 = vpop.permute.xlu0 %1888 }
 0x136   : > { %4385 = vmatmul.mubr.msk.bf16.gmra.mrb[40].mxu0 %vm4384_vm13, %v5965_v48 }
 0x137   : > { %v1496_v37 = vpop.permute.xlu1 %1495 }
 0x138   : > { %5610 = vset.pattern.permute.xlu1 %v5966_v36  ;;  %vm1531_vm14 = vcmp.eq.s32.totalorder %v6240_v44, %v1496_v37  ;;  %vm1530_vm1 = vcmp.eq.s32.totalorder %v6235_v41, %v1496_v37 }
 0x139   : > { %2674 = vperm.xlu1 %5610, %v6574_v63  }
 0x13b   : > { %v1499_v35 = vpop.permute.xlu1 %1498 }
 0x13c   : > { %vm1532_vm15 = vcmp.eq.s32.totalorder %v6235_v41, %v1499_v35  ;;  %vm1533_vm0 = vcmp.eq.s32.totalorder %v6240_v44, %v1499_v35  ;;  %v5756_v35 = vld [vmem:[%s7895_s1 + $0x3b8] sm:$0xff]  }
 0x13d   : > { %5611 = vset.pattern.permute.xlu1 %v5967_v13  ;;  %vm4494_vm2 = vmpackc.low %vm1533_vm0, %vm1531_vm14  ;;  %vm1911_vm0 = vcmp.eq.s32.totalorder %v6240_v44, %v1865_v43 }
 0x13e   : > { %3076 = vperm.xlu1 %5611, %v6574_v63   ;;  %4495 = vmatprep.mubr.msk.bf16.mxu1 %vm4494_vm2, %v5965_v48  ;;  %vm4496_vm3 = vmpackc.low %vm1532_vm15, %vm1530_vm1  ;;  %vm1910_vm1 = vcmp.eq.s32.totalorder %v6235_v41, %v1865_v43 }
 0x13f   : > { %4497 = vmatmul.mubr.msk.bf16.gmra.mrb[72].mxu1 %vm4496_vm3, %v5965_v48 }
 0x140   : > { %v1103_v49 = vpop.permute.xlu1 %1102 }
 0x141   : > { %vm1134_vm6 = vcmp.eq.s32.totalorder %v6235_v41, %v1103_v49  ;;  %vm1135_vm7 = vcmp.eq.s32.totalorder %v6240_v44, %v1103_v49 }
 0x142   : > { %5612 = vset.pattern.permute.xlu1 %v5966_v36  ;;  %vm4386_vm8 = vmpackc.low %vm1135_vm7, %vm1133_vm4 }
 0x143   : > { %2677 = vperm.xlu1 %5612, %v6632_v14   ;;  %4387 = vmatprep.mubr.msk.bf16.mxu0 %vm4386_vm8, %v5965_v48  ;;  %vm4388_vm9 = vmpackc.low %vm1134_vm6, %vm1132_vm5 }
 0x144   : > { %4389 = vmatmul.mubr.msk.bf16.gmra.mrb[44].mxu0 %vm4388_vm9, %v5965_v48 }
 0x145   : > { %v1505_v63 = vpop.permute.xlu1 %1504 }
 0x146   : > { %vm1536_vm12 = vcmp.eq.s32.totalorder %v6235_v41, %v1505_v63  ;;  %vm1537_vm13 = vcmp.eq.s32.totalorder %v6240_v44, %v1505_v63 }
 0x147   : > { %5614 = vset.pattern.permute.xlu1 %v5967_v13  ;;  %vm4498_vm14 = vmpackc.low %vm1537_vm13, %vm1535_vm10  ;;  %vm1912_vm13 = vcmp.eq.s32.totalorder %v6235_v41, %v1868_v54 }
 0x148   : > { %3079 = vperm.xlu1 %5614, %v6632_v14   ;;  %4499 = vmatprep.mubr.msk.bf16.mxu1 %vm4498_vm14, %v5965_v48  ;;  %vm4500_vm15 = vmpackc.low %vm1536_vm12, %vm1534_vm11  ;;  %v5729_v14 = vld [vmem:[%s7895_s1 + $0x348] sm:$0xff]   ;;  %vm1913_vm12 = vcmp.eq.s32.totalorder %v6240_v44, %v1868_v54 }
 0x149   : > { %4501 = vmatmul.mubr.msk.bf16.gmra.mrb[76].mxu1 %vm4500_vm15, %v5965_v48 }
 0x14a   : > { %v1862_v46 = vpop.permute.xlu1 %1861 }
 0x14b   : > { %vm1908_vm2 = vcmp.eq.s32.totalorder %v6235_v41, %v1862_v46  ;;  %vm1909_vm3 = vcmp.eq.s32.totalorder %v6240_v44, %v1862_v46 }
 0x14c   : > { %vm4582_vm4 = vmpackc.low %vm1911_vm0, %vm1909_vm3  ;;  %3082 = vperm.xlu1 %5614, %v6595_v6   ;;  %v5731_v6 = vld [vmem:[%s7895_s1 + $0x350] sm:$0xff]   ;;  %vm2314_vm3 = vcmp.eq.s32.totalorder %v6235_v41, %v6928_v42 }
 0x14d   : > { %vm4584_vm5 = vmpackc.low %vm1910_vm1, %vm1908_vm2  ;;  %4583 = vmatprep.mubr.msk.bf16.mxu0 %vm4582_vm4, %v5965_v48  ;;  %vm2315_vm2 = vcmp.eq.s32.totalorder %v6240_v44, %v6928_v42 }
 0x14e   : > { %4585 = vmatmul.mubr.msk.bf16.vlgmr.msra.gmra.mrb[48].mxu0 %vm4584_vm5, %v5965_v48 }
 0x14f   : > { %v2264_v50 = vpop.permute.xlu1 %2263  ;;  %5359 = vmatpush3.bf16.msra.mxu0 %v5726_v47 }
 0x150   : > { %5615 = vset.pattern.permute.xlu1 %v5966_v36  ;;  %5360 = vmatprep.subr.bf16.mxu0 %v5729_v14  ;;  %vm2310_vm6 = vcmp.eq.s32.totalorder %v6235_v41, %v2264_v50  ;;  %vm2311_vm9 = vcmp.eq.s32.totalorder %v6240_v44, %v2264_v50 }
 0x151   : > { %2686 = vperm.xlu1 %5615, %v6684_v26  }
 0x153   : > { %v2267_v52 = vpop.permute.xlu1 %2266  ;;  %5361 = vmatpush3.bf16.msra.mxu0 %v5730_v51  ;;  %v5894_v51 = vld [vmem:[%s6070_s25 + $0x78] sm:$0xff] }
 0x154   : > { %vm2312_vm7 = vcmp.eq.s32.totalorder %v6235_v41, %v2267_v52  ;;  %vm2313_vm8 = vcmp.eq.s32.totalorder %v6240_v44, %v2267_v52  ;;  %5362 = vmatprep.subr.bf16.mxu0 %v5731_v6 }
 0x155   : > { %vm4696_vm10 = vmpackc.low %vm2312_vm7, %vm2310_vm6  ;;  %5617 = vset.pattern.permute.xlu1 %v5967_v13 }
 0x156   : > { %3088 = vperm.xlu1 %5617, %v6684_v26   ;;  %vm4694_vm11 = vmpackc.low %vm2313_vm8, %vm2311_vm9  ;;  %v5734_v26 = vld [vmem:[%s7895_s1 + $0x388] sm:$0xff]   ;;  %vm1919_vm8 = vcmp.eq.s32.totalorder %v6240_v44, %v1877_v3  ;;  %vm1918_vm9 = vcmp.eq.s32.totalorder %v6235_v41, %v1877_v3 }
 0x157   : > { %4695 = vmatprep.mubr.msk.bf16.mxu1 %vm4694_vm11, %v5965_v48  ;;  %5363 = vmatpush3.bf16.msra.mxu0 %v5732_v53 }
 0x158   : > { %4697 = vmatmul.mubr.msk.bf16.vlgmr.msra.gmra.mrb[80].mxu1 %vm4696_vm10, %v5965_v48  ;;  %v1871_v58 = vpop.permute.xlu1 %1870  ;;  %5364 = vmatprep.subr.bf16.mxu0 %v5735_v55 }
 0x159   : > { %vm1914_vm14 = vcmp.eq.s32.totalorder %v6235_v41, %v1871_v58  ;;  %vm1915_vm15 = vcmp.eq.s32.totalorder %v6240_v44, %v1871_v58  ;;  %5423 = vmatpush3.bf16.msra.mxu1 %v5728_v56  ;;  %v1892_v56 = vpop.permute.xlu0 %1891 }
 0x15a   : > { %vm4586_vm0 = vmpackc.low %vm1915_vm15, %vm1913_vm12  ;;  %5618 = vset.pattern.permute.xlu1 %v5966_v36  ;;  %5424 = vmatprep.subr.bf16.mxu1 %v5733_v57 }
 0x15b   : > { %vm4588_vm1 = vmpackc.low %vm1914_vm14, %vm1912_vm13  ;;  %2689 = vperm.xlu1 %5618, %v6735_v45   ;;  %4587 = vmatprep.mubr.msk.bf16.mxu0 %vm4586_vm0, %v5965_v48 }
 0x15c   : > { %4589 = vmatmul.mubr.msk.bf16.gmra.mrb[52].mxu0 %vm4588_vm1, %v5965_v48 }
 0x15d   : > { %v2273_v62 = vpop.permute.xlu1 %2272  ;;  %5425 = vmatpush3.bf16.msra.mxu1 %v5734_v26  ;;  %5365 = vmatpush3.bf16.msra.mxu0 %v5736_v59  ;;  %v1901_v3 = vpop.permute.xlu0 %1900 }
 0x15e   : > { %vm2316_vm4 = vcmp.eq.s32.totalorder %v6235_v41, %v2273_v62  ;;  %vm2317_vm5 = vcmp.eq.s32.totalorder %v6240_v44, %v2273_v62  ;;  %5366 = vmatprep.subr.bf16.mxu0 %v5737_v60  ;;  %5426 = vmatprep.subr.bf16.mxu1 %v5739_v61 }
 0x15f   : > { %5619 = vset.pattern.permute.xlu1 %v5967_v13  ;;  %vm4698_vm6 = vmpackc.low %vm2317_vm5, %vm2315_vm2  ;;  %vm1920_vm5 = vcmp.eq.s32.totalorder %v6235_v41, %v1880_v12 }
 0x160   : > { %3091 = vperm.xlu1 %5619, %v6735_v45   ;;  %4699 = vmatprep.mubr.msk.bf16.mxu1 %vm4698_vm6, %v5965_v48  ;;  %vm4700_vm7 = vmpackc.low %vm2316_vm4, %vm2314_vm3  ;;  %v5744_v45 = vld [vmem:[%s7895_s1 + $0x398] sm:$0xff]   ;;  %vm1921_vm4 = vcmp.eq.s32.totalorder %v6240_v44, %v1880_v12 }
 0x161   : > { %4701 = vmatmul.mubr.msk.bf16.gmra.mrb[84].mxu1 %vm4700_vm7, %v5965_v48  ;;  %5367 = vmatpush3.bf16.msra.mxu0 %v5738_v0 }
 0x162   : > { %v1874_v9 = vpop.permute.xlu1 %1873  ;;  %5427 = vmatpush3.bf16.msra.mxu1 %v5740_v4  ;;  %5368 = vmatprep.subr.bf16.mxu0 %v5741_v5 }
 0x163   : > { %vm1916_vm10 = vcmp.eq.s32.totalorder %v6235_v41, %v1874_v9  ;;  %vm1917_vm11 = vcmp.eq.s32.totalorder %v6240_v44, %v1874_v9  ;;  %5428 = vmatprep.subr.bf16.mxu1 %v5743_v7 }
 0x164   : > { %vm4590_vm12 = vmpackc.low %vm1919_vm8, %vm1917_vm11  ;;  %3094 = vperm.xlu1 %5619, %v6691_v30   ;;  %v5749_v30 = vld [vmem:[%s7895_s1 + $0x378] sm:$0xff]   ;;  %vm2322_vm11 = vcmp.eq.s32.totalorder %v6235_v41, %v2282_v21 }
 0x165   : > { %vm4592_vm13 = vmpackc.low %vm1918_vm9, %vm1916_vm10  ;;  %4591 = vmatprep.mubr.msk.bf16.mxu0 %vm4590_vm12, %v5965_v48  ;;  %5369 = vmatpush3.bf16.msra.mxu0 %v5742_v8  ;;  %vm2323_vm10 = vcmp.eq.s32.totalorder %v6240_v44, %v2282_v21 }
 0x166   : > { %4593 = vmatmul.mubr.msk.bf16.gmra.mrb[56].mxu0 %vm4592_vm13, %v5965_v48  ;;  %5429 = vmatpush3.bf16.msra.mxu1 %v5744_v45  ;;  %v7161_v45 = vld [vmem:[%s7896_s2] ss:$0 sm:$0xff] }
 0x167   : > { %v2276_v18 = vpop.permute.xlu1 %2275  ;;  %5370 = vmatprep.subr.bf16.mxu0 %v5745_v10  ;;  %5430 = vmatprep.subr.bf16.mxu1 %v5747_v11 }
 0x168   : > { %5620 = vset.pattern.permute.xlu1 %v5966_v36  ;;  %vm2319_vm14 = vcmp.eq.s32.totalorder %v6240_v44, %v2276_v18  ;;  %vm2318_vm1 = vcmp.eq.s32.totalorder %v6235_v41, %v2276_v18 }
 0x169   : > { %2698 = vperm.xlu1 %5620, %v6801_v2   ;;  %5371 = vmatpush3.bf16.msra.mxu0 %v5746_v16 }
 0x16a   : > { %5431 = vmatpush3.bf16.msra.mxu1 %v5748_v29  ;;  %5372 = vmatprep.subr.bf16.mxu0 %v5749_v30 }
 0x16b   : > { %v2279_v22 = vpop.permute.xlu1 %2278  ;;  %5432 = vmatprep.subr.bf16.mxu1 %v5751_v19 }
 0x16c   : > { %vm2320_vm15 = vcmp.eq.s32.totalorder %v6235_v41, %v2279_v22  ;;  %vm2321_vm0 = vcmp.eq.s32.totalorder %v6240_v44, %v2279_v22 }
 0x16d   : > { %vm4702_vm2 = vmpackc.low %vm2321_vm0, %vm2319_vm14  ;;  %5622 = vset.pattern.permute.xlu1 %v5967_v13  ;;  %5373 = vmatpush3.bf16.msra.mxu0 %v5750_v20  ;;  %vm1927_vm0 = vcmp.eq.s32.totalorder %v6240_v44, %v1889_v34 }
 0x16e   : > { %vm4704_vm3 = vmpackc.low %vm2320_vm15, %vm2318_vm1  ;;  %3100 = vperm.xlu1 %5622, %v6801_v2   ;;  %4703 = vmatprep.mubr.msk.bf16.mxu1 %vm4702_vm2, %v5965_v48  ;;  %v5755_v2 = vld [vmem:[%s7895_s1 + $0x3f8] sm:$0xff]   ;;  %vm1926_vm1 = vcmp.eq.s32.totalorder %v6235_v41, %v1889_v34 }
 0x16f   : > { %4705 = vmatmul.mubr.msk.bf16.gmra.mrb[88].mxu1 %vm4704_vm3, %v5965_v48 }
 0x170   : > { %v1883_v27 = vpop.permute.xlu1 %1882  ;;  %5433 = vmatpush3.bf16.msra.mxu1 %v5752_v24 }
 0x171   : > { %vm1922_vm6 = vcmp.eq.s32.totalorder %v6235_v41, %v1883_v27  ;;  %vm1923_vm7 = vcmp.eq.s32.totalorder %v6240_v44, %v1883_v27  ;;  %5434 = vmatprep.subr.bf16.mxu1 %v5753_v25  ;;  %v1904_v27 = vpop.permute.xlu0 %1903 }
 0x172   : > { %vm4594_vm8 = vmpackc.low %vm1923_vm7, %vm1921_vm4  ;;  %5623 = vset.pattern.permute.xlu1 %v5966_v36 }
 0x173   : > { %v5014_v17 = vpop.f32.mrb[0].mxu1  ;;  %vm4596_vm9 = vmpackc.low %vm1922_vm6, %vm1920_vm5  ;;  %2701 = vperm.xlu1 %5623, %v6842_v15   ;;  %4595 = vmatprep.mubr.msk.bf16.mxu0 %vm4594_vm8, %v5965_v48 }
 0x174   : > { %v5015_v32 = vpop.f32.mrb[1].mxu1  ;;  %4597 = vmatmul.mubr.msk.bf16.gmra.mrb[60].mxu0 %vm4596_vm9, %v5965_v48  ;;  %5435 = vmatpush3.bf16.msra.mxu1 %v5754_v31 }
 0x175   : > { %v7100_v39 = vadd.f32 %v5015_v32, %v5014_v17  ;;  %v5017_v33 = vpop.f32.mrb[2].mxu1  ;;  %v2285_v38 = vpop.permute.xlu1 %2284  ;;  %5436 = vmatprep.subr.bf16.mxu1 %v5755_v2 }
 0x176   : > { %v5018_v23 = vpop.f32.mrb[3].mxu1  ;;  %vm2324_vm12 = vcmp.eq.s32.totalorder %v6235_v41, %v2285_v38  ;;  %vm2325_vm13 = vcmp.eq.s32.totalorder %v6240_v44, %v2285_v38 }
 0x177   : > { %v7105_v37 = vadd.f32 %v5018_v23, %v5017_v33  ;;  %vm4706_vm14 = vmpackc.low %vm2325_vm13, %vm2323_vm10  ;;  %5625 = vset.pattern.permute.xlu1 %v5967_v13  ;;  %vm1928_vm13 = vcmp.eq.s32.totalorder %v6235_v41, %v1892_v56 }
 0x178   : > { %vm4708_vm15 = vmpackc.low %vm2324_vm12, %vm2322_vm11  ;;  %3103 = vperm.xlu1 %5625, %v6842_v15   ;;  %4707 = vmatprep.mubr.msk.bf16.mxu1 %vm4706_vm14, %v5965_v48  ;;  %v5893_v15 = vld [vmem:[%s6070_s25 + $0x68] sm:$0xff]  ;;  %vm1929_vm12 = vcmp.eq.s32.totalorder %v6240_v44, %v1892_v56 }
 0x179   : > { %4709 = vmatmul.mubr.msk.bf16.gmra.mrb[92].mxu1 %vm4708_vm15, %v5965_v48 }
 0x17a   : > { %v1886_v49 = vpop.permute.xlu1 %1885  ;;  %5437 = vmatpush3.bf16.msra.mxu1 %v5756_v35  ;;  %v2306_v35 = vpop.permute.xlu0 %2305 }
 0x17b   : > { %v5020_v42 = vpop.f32.mrb[4].mxu1  ;;  %vm1924_vm2 = vcmp.eq.s32.totalorder %v6235_v41, %v1886_v49  ;;  %vm1925_vm3 = vcmp.eq.s32.totalorder %v6240_v44, %v1886_v49 }
 0x17c   : > { %v5021_v63 = vpop.f32.mrb[5].mxu1  ;;  %vm4598_vm4 = vmpackc.low %vm1927_vm0, %vm1925_vm3  ;;  %3106 = vperm.xlu1 %5625, %v5893_v15   ;;  %vm2330_vm3 = vcmp.eq.s32.totalorder %v6235_v41, %v7085_v28 }
 0x17d   : > { %v7118_v43 = vadd.f32 %v5021_v63, %v5020_v42  ;;  %v5023_v46 = vpop.f32.mrb[6].mxu1  ;;  %vm4600_vm5 = vmpackc.low %vm1926_vm1, %vm1924_vm2  ;;  %4599 = vmatprep.mubr.msk.bf16.mxu0 %vm4598_vm4, %v5965_v48  ;;  %vm2331_vm2 = vcmp.eq.s32.totalorder %v6240_v44, %v7085_v28 }
 0x17e   : > { %v5024_v47 = vpop.f32.mrb[7].mxu1  ;;  %4601 = vmatmul.mubr.msk.bf16.gmra.mrb[64].mxu0 %vm4600_vm5, %v5965_v48 }
 0x17f   : > { %v7122_v14 = vadd.f32 %v5024_v47, %v5023_v46  ;;  %v2288_v50 = vpop.permute.xlu1 %2287 }
 0x180   : > { %5626 = vset.pattern.permute.xlu1 %v5966_v36  ;;  %vm2327_vm6 = vcmp.eq.s32.totalorder %v6240_v44, %v2288_v50  ;;  %vm2326_vm9 = vcmp.eq.s32.totalorder %v6235_v41, %v2288_v50 }
 0x181   : > { %2710 = vperm.xlu1 %5626, %v5894_v51  }
 0x183   : > { %v5026_v6 = vpop.f32.mrb[8].mxu1  ;;  %v2291_v52 = vpop.permute.xlu1 %2290 }
 0x184   : > { %v5027_v53 = vpop.f32.mrb[9].mxu1  ;;  %vm2328_vm7 = vcmp.eq.s32.totalorder %v6235_v41, %v2291_v52  ;;  %vm2329_vm8 = vcmp.eq.s32.totalorder %v6240_v44, %v2291_v52 }
 0x185   : > { %v7130_v54 = vadd.f32 %v5027_v53, %v5026_v6  ;;  %v5029_v55 = vpop.f32.mrb[10].mxu1  ;;  %vm4710_vm10 = vmpackc.low %vm2329_vm8, %vm2327_vm6  ;;  %5628 = vset.pattern.permute.xlu1 %v5967_v13  ;;  %vm1935_vm8 = vcmp.eq.s32.totalorder %v6240_v44, %v1901_v3 }
 0x186   : > { %v5030_v36 = vpop.f32.mrb[11].mxu1  ;;  %vm4712_vm11 = vmpackc.low %vm2328_vm7, %vm2326_vm9  ;;  %3112 = vperm.xlu1 %5628, %v5894_v51   ;;  %4711 = vmatprep.mubr.msk.bf16.mxu1 %vm4710_vm10, %v5965_v48  ;;  %vm1934_vm9 = vcmp.eq.s32.totalorder %v6235_v41, %v1901_v3 }
 0x187   : > { %v7134_v57 = vadd.f32 %v5030_v36, %v5029_v55  ;;  %4713 = vmatmul.mubr.msk.bf16.gmra.mrb[96].mxu1 %vm4712_vm11, %v5965_v48 }
 0x188   : > { %v1895_v58 = vpop.permute.xlu1 %1894 }
 0x189   : > { %vm1930_vm14 = vcmp.eq.s32.totalorder %v6235_v41, %v1895_v58  ;;  %vm1931_vm15 = vcmp.eq.s32.totalorder %v6240_v44, %v1895_v58  ;;  %v2669_v58 = vpop.permute.xlu0 %2668 }
 0x18a   : > { %vm4602_vm0 = vmpackc.low %vm1931_vm15, %vm1929_vm12 }
 0x18b   : > { %v5032_v13 = vpop.f32.mrb[12].mxu1  ;;  %vm4604_vm1 = vmpackc.low %vm1930_vm14, %vm1928_vm13  ;;  %4603 = vmatprep.mubr.msk.bf16.mxu0 %vm4602_vm0, %v5965_v48 }
 0x18c   : > { %v5033_v26 = vpop.f32.mrb[13].mxu1  ;;  %4605 = vmatmul.mubr.msk.bf16.gmra.mrb[68].mxu0 %vm4604_vm1, %v5965_v48 }
 0x18d   : > { %v7145_v59 = vadd.f32 %v5033_v26, %v5032_v13  ;;  %v5035_v60 = vpop.f32.mrb[14].mxu1  ;;  %v2297_v61 = vpop.permute.xlu1 %2296 }
 0x18e   : > { %v5036_v62 = vpop.f32.mrb[15].mxu1  ;;  %vm2332_vm4 = vcmp.eq.s32.totalorder %v6235_v41, %v2297_v61  ;;  %vm2333_vm5 = vcmp.eq.s32.totalorder %v6240_v44, %v2297_v61 }
 0x18f   : > { %v7152_v0 = vadd.f32 %v5036_v62, %v5035_v60  ;;  %vm4714_vm6 = vmpackc.low %vm2333_vm5, %vm2331_vm2  ;;  %vm1936_vm5 = vcmp.eq.s32.totalorder %v6235_v41, %v1904_v27 }
 0x190   : > { %vm4716_vm7 = vmpackc.low %vm2332_vm4, %vm2330_vm3  ;;  %4715 = vmatprep.mubr.msk.bf16.mxu1 %vm4714_vm6, %v5965_v48  ;;  %vm1937_vm4 = vcmp.eq.s32.totalorder %v6240_v44, %v1904_v27  ;;  %v646_v27 = vadd.f32 %v7100_v39, %v7161_v45 }
 0x191   : > { %v4990_v4 = vpop.f32.mrb[0].mxu0  ;;  %4717 = vmatmul.mubr.msk.bf16.gmra.mrb[100].mxu1 %vm4716_vm7, %v5965_v48 }
 0x192   : > { %v4991_v5 = vpop.f32.mrb[1].mxu0  ;;  %v1898_v7 = vpop.permute.xlu1 %1897 }
 0x193   : > { %v4992_v8 = vadd.f32 %v4991_v5, %v4990_v4  ;;  %v4993_v9 = vpop.f32.mrb[2].mxu0  ;;  %vm1932_vm10 = vcmp.eq.s32.totalorder %v6235_v41, %v1898_v7  ;;  %vm1933_vm11 = vcmp.eq.s32.totalorder %v6240_v44, %v1898_v7 }
 0x194   : > { %v5054_v10 = vpop.f32.mrb[16].mxu1  ;;  %v4994_v11 = vpop.f32.mrb[3].mxu0  ;;  %vm4606_vm12 = vmpackc.low %vm1935_vm8, %vm1933_vm11  ;;  %vm2338_vm11 = vcmp.eq.s32.totalorder %v6235_v41, %v2306_v35 }
 0x195   : > { %v638_v12 = vadd.f32 %v4992_v8, %v7161_v45  ;;  %v4995_v16 = vadd.f32 %v4994_v11, %v4993_v9  ;;  %v5055_v29 = vpop.f32.mrb[17].mxu1  ;;  %vm4608_vm13 = vmpackc.low %vm1934_vm9, %vm1932_vm10  ;;  %4607 = vmatprep.mubr.msk.bf16.mxu0 %vm4606_vm12, %v5965_v48  ;;  %vm2339_vm10 = vcmp.eq.s32.totalorder %v6240_v44, %v2306_v35  ;;  %v2672_v11 = vpop.permute.xlu0 %2671 }
 0x196   : > { %v5056_v30 = vadd.f32 %v5055_v29, %v5054_v10  ;;  %v5057_v18 = vpop.f32.mrb[18].mxu1  ;;  %4609 = vmatmul.mubr.msk.bf16.gmra.mrb[72].mxu0 %vm4608_vm13, %v5965_v48 }
 0x197   : > { %v639_v19 = vadd.f32 %v4995_v16, %v7161_v45  ;;  %v5058_v20 = vpop.f32.mrb[19].mxu1  ;;  %v2300_v24 = vpop.permute.xlu1 %2299 }
 0x198   : > { %v7169_v21 = vadd.f32 %v5056_v30, %v638_v12  ;;  %v5059_v22 = vadd.f32 %v5058_v20, %v5057_v18  ;;  %vm2335_vm14 = vcmp.eq.s32.totalorder %v6240_v44, %v2300_v24  ;;  %vm2334_vm1 = vcmp.eq.s32.totalorder %v6235_v41, %v2300_v24 }
 0x199   : > { %v7209_v24 = vpop.permute.xlu0 %2680 }
 0x19a   : > { %v7171_v25 = vadd.f32 %v5059_v22, %v639_v19 }
 0x19b   : > { %v2303_v28 = vpop.permute.xlu1 %2302 }
 0x19c   : > { %v5060_v31 = vpop.f32.mrb[20].mxu1  ;;  %vm2336_vm15 = vcmp.eq.s32.totalorder %v6235_v41, %v2303_v28  ;;  %vm2337_vm0 = vcmp.eq.s32.totalorder %v6240_v44, %v2303_v28 }
 0x19d   : > { %v5061_v2 = vpop.f32.mrb[21].mxu1  ;;  %vm4718_vm2 = vmpackc.low %vm2337_vm0, %vm2335_vm14  ;;  %vm2715_vm0 = vcmp.eq.s32.totalorder %v6240_v44, %v2669_v58 }
 0x19e   : > { %v5062_v17 = vadd.f32 %v5061_v2, %v5060_v31  ;;  %v5063_v32 = vpop.f32.mrb[22].mxu1  ;;  %vm4720_vm3 = vmpackc.low %vm2336_vm15, %vm2334_vm1  ;;  %4719 = vmatprep.mubr.msk.bf16.mxu1 %vm4718_vm2, %v5965_v48  ;;  %vm2714_vm1 = vcmp.eq.s32.totalorder %v6235_v41, %v2669_v58 }
 0x19f   : > { %v5064_v33 = vpop.f32.mrb[23].mxu1  ;;  %v4996_v38 = vpop.f32.mrb[4].mxu0  ;;  %4721 = vmatmul.mubr.msk.bf16.gmra.mrb[104].mxu1 %vm4720_vm3, %v5965_v48 }
 0x1a0   : > { %v5065_v23 = vadd.f32 %v5064_v33, %v5063_v32  ;;  %v4997_v34 = vpop.f32.mrb[5].mxu0  ;;  %v1907_v49 = vpop.permute.xlu1 %1906 }
 0x1a1   : > { %v4998_v42 = vadd.f32 %v4997_v34, %v4996_v38  ;;  %v4999_v63 = vpop.f32.mrb[6].mxu0  ;;  %vm1938_vm6 = vcmp.eq.s32.totalorder %v6235_v41, %v1907_v49  ;;  %vm1939_vm7 = vcmp.eq.s32.totalorder %v6240_v44, %v1907_v49 }
 0x1a2   : > { %v5000_v15 = vpop.f32.mrb[7].mxu0  ;;  %vm4610_vm8 = vmpackc.low %vm1939_vm7, %vm1937_vm4 }
 0x1a3   : > { %v640_v46 = vadd.f32 %v4998_v42, %v7161_v45  ;;  %v5001_v47 = vadd.f32 %v5000_v15, %v4999_v63  ;;  %vm4612_vm9 = vmpackc.low %vm1938_vm6, %vm1936_vm5  ;;  %4611 = vmatprep.mubr.msk.bf16.mxu0 %vm4610_vm8, %v5965_v48 }
 0x1a4   : > { %v5066_v50 = vpop.f32.mrb[24].mxu1  ;;  %4613 = vmatmul.mubr.msk.bf16.gmra.mrb[76].mxu0 %vm4612_vm9, %v5965_v48 }
 0x1a5   : > { %v641_v51 = vadd.f32 %v5001_v47, %v7161_v45  ;;  %v5067_v6 = vpop.f32.mrb[25].mxu1  ;;  %v7188_v52 = vadd.f32 %v5062_v17, %v640_v46  ;;  %v2309_v55 = vpop.permute.xlu1 %2308  ;;  %v647_v17 = vadd.f32 %v7105_v37, %v7161_v45 }
 0x1a6   : > { %v5068_v53 = vadd.f32 %v5067_v6, %v5066_v50  ;;  %v5069_v56 = vpop.f32.mrb[26].mxu1  ;;  %vm2340_vm12 = vcmp.eq.s32.totalorder %v6235_v41, %v2309_v55  ;;  %vm2341_vm13 = vcmp.eq.s32.totalorder %v6240_v44, %v2309_v55  ;;  %v3074_v46 = vpop.permute.xlu0 %3073 }
 0x1a7   : > { %v5070_v36 = vpop.f32.mrb[27].mxu1  ;;  %v7193_v13 = vadd.f32 %v5065_v23, %v641_v51  ;;  %vm4722_vm14 = vmpackc.low %vm2341_vm13, %vm2339_vm10  ;;  %vm2716_vm13 = vcmp.eq.s32.totalorder %v6235_v41, %v2672_v11 }
 0x1a8   : > { %v5071_v26 = vadd.f32 %v5070_v36, %v5069_v56  ;;  %vm4724_vm15 = vmpackc.low %vm2340_vm12, %vm2338_vm11  ;;  %4723 = vmatprep.mubr.msk.bf16.mxu1 %vm4722_vm14, %v5965_v48  ;;  %vm2717_vm12 = vcmp.eq.s32.totalorder %v6240_v44, %v2672_v11  ;;  %v648_v56 = vadd.f32 %v7118_v43, %v7161_v45 }
 0x1a9   : > { %v5002_v60 = vpop.f32.mrb[8].mxu0  ;;  %4725 = vmatmul.mubr.msk.bf16.gmra.mrb[108].mxu1 %vm4724_vm15, %v5965_v48 }
 0x1aa   : > { %v5003_v61 = vpop.f32.mrb[9].mxu0  ;;  %v2666_v62 = vpop.permute.xlu1 %2665 }
 0x1ab   : > { %v5004_v3 = vadd.f32 %v5003_v61, %v5002_v60  ;;  %v5005_v4 = vpop.f32.mrb[10].mxu0  ;;  %vm2712_vm2 = vcmp.eq.s32.totalorder %v6235_v41, %v2666_v62  ;;  %vm2713_vm3 = vcmp.eq.s32.totalorder %v6240_v44, %v2666_v62  ;;  %v649_v62 = vadd.f32 %v7122_v14, %v7161_v45 }
 0x1ac   : > { %v5072_v5 = vpop.f32.mrb[28].mxu1  ;;  %v5006_v7 = vpop.f32.mrb[11].mxu0  ;;  %vm4806_vm4 = vmpackc.low %vm2715_vm0, %vm2713_vm3  ;;  %vm3118_vm3 = vcmp.eq.s32.totalorder %v6235_v41, %v3074_v46 }
 0x1ad   : > { %v642_v8 = vadd.f32 %v5004_v3, %v7161_v45  ;;  %v5007_v9 = vadd.f32 %v5006_v7, %v5005_v4  ;;  %v5073_v10 = vpop.f32.mrb[29].mxu1  ;;  %vm4808_vm5 = vmpackc.low %vm2714_vm1, %vm2712_vm2  ;;  %4807 = vmatprep.mubr.msk.bf16.mxu0 %vm4806_vm4, %v5965_v48  ;;  %vm3119_vm2 = vcmp.eq.s32.totalorder %v6240_v44, %v3074_v46 }
 0x1ae   : > { %v5074_v12 = vadd.f32 %v5073_v10, %v5072_v5  ;;  %v5075_v16 = vpop.f32.mrb[30].mxu1  ;;  %4809 = vmatmul.mubr.msk.bf16.vlgmr.msra.gmra.mrb[80].mxu0 %vm4808_vm5, %v5965_v48 }
 0x1af   : > { %v643_v29 = vadd.f32 %v5007_v9, %v7161_v45  ;;  %v5076_v30 = vpop.f32.mrb[31].mxu1  ;;  %v7205_v18 = vadd.f32 %v5068_v53, %v642_v8  ;;  %v3068_v20 = vpop.permute.xlu1 %3067 }
 0x1b0   : > { %v5077_v19 = vadd.f32 %v5076_v30, %v5075_v16  ;;  %vm3115_vm6 = vcmp.eq.s32.totalorder %v6240_v44, %v3068_v20  ;;  %vm3114_vm9 = vcmp.eq.s32.totalorder %v6235_v41, %v3068_v20  ;;  %v650_v16 = vadd.f32 %v7130_v54, %v7161_v45 }
 0x1b1   : > { %v7207_v22 = vadd.f32 %v5071_v26, %v643_v29 }
 0x1b3   : > { %v3071_v28 = vpop.permute.xlu1 %3070 }
 0x1b4   : > { %v5078_v31 = vpop.f32.mrb[32].mxu1  ;;  %vm3116_vm7 = vcmp.eq.s32.totalorder %v6235_v41, %v3071_v28  ;;  %vm3117_vm8 = vcmp.eq.s32.totalorder %v6240_v44, %v3071_v28  ;;  %v651_v28 = vadd.f32 %v7134_v57, %v7161_v45  ;;  %v652_v57 = vadd.f32 %v7145_v59, %v7161_v45 }
 0x1b5   : > { %v5079_v2 = vpop.f32.mrb[33].mxu1  ;;  %vm4918_vm10 = vmpackc.low %vm3117_vm8, %vm3115_vm6  ;;  %vm2723_vm8 = vcmp.eq.s32.totalorder %v6240_v44, %v7209_v24 }
 0x1b6   : > { %v5080_v32 = vadd.f32 %v5079_v2, %v5078_v31  ;;  %v5081_v33 = vpop.f32.mrb[34].mxu1  ;;  %vm4920_vm11 = vmpackc.low %vm3116_vm7, %vm3114_vm9  ;;  %4919 = vmatprep.mubr.msk.bf16.mxu1 %vm4918_vm10, %v5965_v48  ;;  %vm2722_vm9 = vcmp.eq.s32.totalorder %v6235_v41, %v7209_v24 }
 0x1b7   : > { %v5082_v38 = vpop.f32.mrb[35].mxu1  ;;  %v5008_v39 = vpop.f32.mrb[12].mxu0  ;;  %4921 = vmatmul.mubr.msk.bf16.vlgmr.msra.gmra.mrb[112].mxu1 %vm4920_vm11, %v5965_v48 }
 0x1b8   : > { %v7220_v23 = vadd.f32 %v5080_v32, %v646_v27  ;;  %v5083_v34 = vadd.f32 %v5082_v38, %v5081_v33  ;;  %v5009_v35 = vpop.f32.mrb[13].mxu0  ;;  %v2675_v37 = vpop.permute.xlu1 %2674 }
 0x1b9   : > { %v5010_v49 = vadd.f32 %v5009_v35, %v5008_v39  ;;  %v5011_v42 = vpop.f32.mrb[14].mxu0  ;;  %vm2718_vm14 = vcmp.eq.s32.totalorder %v6235_v41, %v2675_v37  ;;  %vm2719_vm15 = vcmp.eq.s32.totalorder %v6240_v44, %v2675_v37  ;;  %v3086_v27 = vpop.permute.xlu0 %3085 }
 0x1ba   : > { %v7225_v63 = vadd.f32 %v5083_v34, %v647_v17  ;;  %v5012_v15 = vpop.f32.mrb[15].mxu0  ;;  %vm4810_vm0 = vmpackc.low %vm2719_vm15, %vm2717_vm12 }
 0x1bb   : > { %v644_v47 = vadd.f32 %v5010_v49, %v7161_v45  ;;  %v5013_v50 = vadd.f32 %v5012_v15, %v5011_v42  ;;  %vm4812_vm1 = vmpackc.low %vm2718_vm14, %vm2716_vm13  ;;  %4811 = vmatprep.mubr.msk.bf16.mxu0 %vm4810_vm0, %v5965_v48  ;;  %v653_v49 = vadd.f32 %v7152_v0, %v7161_v45 }
 0x1bc   : > { %v5084_v51 = vpop.f32.mrb[36].mxu1  ;;  %4813 = vmatmul.mubr.msk.bf16.gmra.mrb[84].mxu0 %vm4812_vm1, %v5965_v48 }
 0x1bd   : > { %v645_v6 = vadd.f32 %v5013_v50, %v7161_v45  ;;  %v5085_v53 = vpop.f32.mrb[37].mxu1  ;;  %v7234_v55 = vadd.f32 %v5074_v12, %v644_v47  ;;  %v3077_v58 = vpop.permute.xlu1 %3076 }
 0x1be   : > { %v5086_v36 = vadd.f32 %v5085_v53, %v5084_v51  ;;  %v5087_v26 = vpop.f32.mrb[38].mxu1  ;;  %vm3120_vm4 = vcmp.eq.s32.totalorder %v6235_v41, %v3077_v58  ;;  %vm3121_vm5 = vcmp.eq.s32.totalorder %v6240_v44, %v3077_v58  ;;  %v2684_v39 = vpop.permute.xlu0 %2683 }
 0x1bf   : > { %v5088_v60 = vpop.f32.mrb[39].mxu1  ;;  %v7241_v61 = vadd.f32 %v5077_v19, %v645_v6  ;;  %vm4922_vm6 = vmpackc.low %vm3121_vm5, %vm3119_vm2  ;;  %vm2724_vm5 = vcmp.eq.s32.totalorder %v6235_v41, %v2684_v39 }
 0x1c0   : > { %v7245_v3 = vadd.f32 %v5086_v36, %v648_v56  ;;  %v5089_v4 = vadd.f32 %v5088_v60, %v5087_v26  ;;  %vm4924_vm7 = vmpackc.low %vm3120_vm4, %vm3118_vm3  ;;  %4923 = vmatprep.mubr.msk.bf16.mxu1 %vm4922_vm6, %v5965_v48  ;;  %vm2725_vm4 = vcmp.eq.s32.totalorder %v6240_v44, %v2684_v39 }
 0x1c1   : > { %4925 = vmatmul.mubr.msk.bf16.gmra.mrb[116].mxu1 %vm4924_vm7, %v5965_v48 }
 0x1c2   : > { %v7250_v43 = vadd.f32 %v5089_v4, %v649_v62  ;;  %v5118_v5 = vpop.f32.mrb[16].mxu0  ;;  %v2678_v7 = vpop.permute.xlu1 %2677 }
 0x1c3   : > { %v5119_v14 = vpop.f32.mrb[17].mxu0  ;;  %vm2720_vm10 = vcmp.eq.s32.totalorder %v6235_v41, %v2678_v7  ;;  %vm2721_vm11 = vcmp.eq.s32.totalorder %v6240_v44, %v2678_v7  ;;  %v2693_v62 = vpop.permute.xlu0 %2692 }
 0x1c4   : > { %v5120_v8 = vadd.f32 %v5119_v14, %v5118_v5  ;;  %v5090_v9 = vpop.f32.mrb[40].mxu1  ;;  %v5121_v10 = vpop.f32.mrb[18].mxu0  ;;  %vm4814_vm12 = vmpackc.low %vm2723_vm8, %vm2721_vm11  ;;  %vm3126_vm11 = vcmp.eq.s32.totalorder %v6235_v41, %v3086_v27 }
 0x1c5   : > { %v5091_v11 = vpop.f32.mrb[41].mxu1  ;;  %v5122_v12 = vpop.f32.mrb[19].mxu0  ;;  %vm4816_vm13 = vmpackc.low %vm2722_vm9, %vm2720_vm10  ;;  %4815 = vmatprep.mubr.msk.bf16.mxu0 %vm4814_vm12, %v5965_v48  ;;  %vm3127_vm10 = vcmp.eq.s32.totalorder %v6240_v44, %v3086_v27 }
 0x1c6   : > { %v1442_v29 = vadd.f32 %v5120_v8, %v7169_v21  ;;  %v5092_v30 = vadd.f32 %v5091_v11, %v5090_v9  ;;  %v5123_v19 = vadd.f32 %v5122_v12, %v5121_v10  ;;  %v5093_v20 = vpop.f32.mrb[42].mxu1  ;;  %4817 = vmatmul.mubr.msk.bf16.gmra.mrb[88].mxu0 %vm4816_vm13, %v5965_v48 }
 0x1c7   : > { %v5094_v24 = vpop.f32.mrb[43].mxu1  ;;  %v3080_v17 = vpop.permute.xlu1 %3079 }
 0x1c8   : > { %v7264_v31 = vadd.f32 %v5092_v30, %v650_v16  ;;  %v1443_v2 = vadd.f32 %v5123_v19, %v7171_v25  ;;  %v5095_v54 = vadd.f32 %v5094_v24, %v5093_v20  ;;  %vm3123_vm14 = vcmp.eq.s32.totalorder %v6240_v44, %v3080_v17 }
 0x1c9   : > { %vm3122_vm1 = vcmp.eq.s32.totalorder %v6235_v41, %v3080_v17 }
 0x1ca   : > { %v7267_v32 = vadd.f32 %v5095_v54, %v651_v28 }
 0x1cb   : > { %v3083_v21 = vpop.permute.xlu1 %3082 }
 0x1cc   : > { %v5096_v33 = vpop.f32.mrb[44].mxu1  ;;  %vm3124_vm15 = vcmp.eq.s32.totalorder %v6235_v41, %v3083_v21  ;;  %vm3125_vm0 = vcmp.eq.s32.totalorder %v6240_v44, %v3083_v21 }
 0x1cd   : > { %v5097_v38 = vpop.f32.mrb[45].mxu1  ;;  %vm4926_vm2 = vmpackc.low %vm3125_vm0, %vm3123_vm14  ;;  %vm2731_vm0 = vcmp.eq.s32.totalorder %v6240_v44, %v2693_v62 }
 0x1ce   : > { %v5098_v25 = vadd.f32 %v5097_v38, %v5096_v33  ;;  %v5099_v34 = vpop.f32.mrb[46].mxu1  ;;  %vm4928_vm3 = vmpackc.low %vm3124_vm15, %vm3122_vm1  ;;  %4927 = vmatprep.mubr.msk.bf16.mxu1 %vm4926_vm2, %v5965_v48  ;;  %vm2730_vm1 = vcmp.eq.s32.totalorder %v6235_v41, %v2693_v62  ;;  %v5757_v62 = vld [vmem:[%s7897_s3] ss:$8 sps:$4 sm:$0xff]  }
 0x1cf   : > { %v5100_v35 = vpop.f32.mrb[47].mxu1  ;;  %v5124_v37 = vpop.f32.mrb[20].mxu0  ;;  %4929 = vmatmul.mubr.msk.bf16.gmra.mrb[120].mxu1 %vm4928_vm3, %v5965_v48 }
 0x1d0   : > { %v7278_v42 = vadd.f32 %v5098_v25, %v652_v57  ;;  %v5101_v15 = vadd.f32 %v5100_v35, %v5099_v34  ;;  %v5125_v46 = vpop.f32.mrb[21].mxu0  ;;  %v2687_v59 = vpop.permute.xlu1 %2686 }
 0x1d1   : > { %v5126_v47 = vadd.f32 %v5125_v46, %v5124_v37  ;;  %v5127_v50 = vpop.f32.mrb[22].mxu0  ;;  %vm2726_vm6 = vcmp.eq.s32.totalorder %v6235_v41, %v2687_v59  ;;  %vm2727_vm7 = vcmp.eq.s32.totalorder %v6240_v44, %v2687_v59 }
 0x1d2   : > { %v7283_v51 = vadd.f32 %v5101_v15, %v653_v49  ;;  %v5128_v0 = vpop.f32.mrb[23].mxu0  ;;  %vm4818_vm8 = vmpackc.low %vm2727_vm7, %vm2725_vm4 }
 0x1d3   : > { %v1444_v45 = vadd.f32 %v5126_v47, %v7188_v52  ;;  %v5129_v6 = vadd.f32 %v5128_v0, %v5127_v50  ;;  %vm4820_vm9 = vmpackc.low %vm2726_vm6, %vm2724_vm5  ;;  %4819 = vmatprep.mubr.msk.bf16.mxu0 %vm4818_vm8, %v5965_v48 }
 0x1d4   : > { %v5182_v53 = vpop.f32.mrb[48].mxu1  ;;  %4821 = vmatmul.mubr.msk.bf16.gmra.mrb[92].mxu0 %vm4820_vm9, %v5965_v48 }
 0x1d5   : > { %v1445_v56 = vadd.f32 %v5129_v6, %v7193_v13  ;;  %v5183_v36 = vpop.f32.mrb[49].mxu1  ;;  %v3089_v26 = vpop.permute.xlu1 %3088 }
 0x1d6   : > { %v5184_v58 = vadd.f32 %v5183_v36, %v5182_v53  ;;  %v5185_v60 = vpop.f32.mrb[50].mxu1  ;;  %vm3128_vm12 = vcmp.eq.s32.totalorder %v6235_v41, %v3089_v26  ;;  %vm3129_vm13 = vcmp.eq.s32.totalorder %v6240_v44, %v3089_v26 }
 0x1d7   : > { %v5186_v52 = vpop.f32.mrb[51].mxu1  ;;  %vm4930_vm14 = vmpackc.low %vm3129_vm13, %vm3127_vm10 }
 0x1d8   : > { %v7295_v4 = vadd.f32 %v5184_v58, %v1442_v29  ;;  %v5187_v5 = vadd.f32 %v5186_v52, %v5185_v60  ;;  %vm4932_vm15 = vmpackc.low %vm3128_vm12, %vm3126_vm11  ;;  %4931 = vmatprep.mubr.msk.bf16.mxu1 %vm4930_vm14, %v5965_v48 }
 0x1d9   : > { %v5130_v13 = vpop.f32.mrb[24].mxu0  ;;  %4933 = vmatmul.mubr.msk.bf16.gmra.mrb[124].mxu1 %vm4932_vm15, %v5965_v48 }
 0x1da   : > { %v7298_v7 = vadd.f32 %v5187_v5, %v1443_v2  ;;  %v5131_v14 = vpop.f32.mrb[25].mxu0  ;;  %v2690_v8 = vpop.permute.xlu1 %2689  ;;  %v5759_v5 = vld [vmem:[%s7897_s3 + $0x4] ss:$8 sps:$4 sm:$0xff]  }
 0x1db   : > { %v5132_v9 = vadd.f32 %v5131_v14, %v5130_v13  ;;  %v5133_v10 = vpop.f32.mrb[26].mxu0  ;;  %vm2728_vm2 = vcmp.eq.s32.totalorder %v6235_v41, %v2690_v8  ;;  %vm2729_vm3 = vcmp.eq.s32.totalorder %v6240_v44, %v2690_v8  ;;  %3600 = vmatprep.subr.bf16.mxu0 %v5759_v5 }
 0x1dc   : > { %v5188_v11 = vpop.f32.mrb[52].mxu1  ;;  %v5134_v12 = vpop.f32.mrb[27].mxu0  ;;  %vm4822_vm4 = vmpackc.low %vm2731_vm0, %vm2729_vm3  ;;  %3601 = vmatpush1.bf16.msra.mxu0 %v5757_v62 }
 0x1dd   : > { %v1446_v16 = vadd.f32 %v5132_v9, %v7205_v18  ;;  %v5135_v29 = vadd.f32 %v5134_v12, %v5133_v10  ;;  %v5189_v30 = vpop.f32.mrb[53].mxu1  ;;  %vm4824_vm5 = vmpackc.low %vm2730_vm1, %vm2728_vm2  ;;  %4823 = vmatprep.mubr.msk.bf16.mxu0 %vm4822_vm4, %v5965_v48  ;;  %v2696_v18 = vpop.permute.xlu0 %2695 }
 0x1de   : > { %v5190_v19 = vadd.f32 %v5189_v30, %v5188_v11  ;;  %v5191_v20 = vpop.f32.mrb[54].mxu1  ;;  %4825 = vmatmul.mubr.msk.bf16.gmra.mrb[96].mxu0 %vm4824_vm5, %v5965_v48  ;;  %vm2733_vm12 = vcmp.eq.s32.totalorder %v6240_v44, %v2696_v18  ;;  %vm2732_vm15 = vcmp.eq.s32.totalorder %v6235_v41, %v2696_v18 }
 0x1df   : > { %v1447_v24 = vadd.f32 %v5135_v29, %v7207_v22  ;;  %v5192_v27 = vpop.f32.mrb[55].mxu1  ;;  %v3092_v54 = vpop.permute.xlu1 %3091 }
 0x1e0   : > { %v7309_v28 = vadd.f32 %v5190_v19, %v1444_v45  ;;  %v5193_v2 = vadd.f32 %v5192_v27, %v5191_v20  ;;  %vm3131_vm6 = vcmp.eq.s32.totalorder %v6240_v44, %v3092_v54  ;;  %vm3130_vm9 = vcmp.eq.s32.totalorder %v6235_v41, %v3092_v54  ;;  %v5760_v20 = vld [vmem:[%s7897_s3 + $0x10] ss:$8 sps:$4 sm:$0xff]  }
 0x1e1   : > { %v3098_v49 = vpop.permute.xlu0 %3097 }
 0x1e2   : > { %v7311_v17 = vadd.f32 %v5193_v2, %v1445_v56  ;;  %vm3135_vm2 = vcmp.eq.s32.totalorder %v6240_v44, %v3098_v49  ;;  %vm3134_vm3 = vcmp.eq.s32.totalorder %v6235_v41, %v3098_v49 }
 0x1e3   : > { %v3095_v21 = vpop.permute.xlu1 %3094 }
 0x1e4   : > { %v5194_v33 = vpop.f32.mrb[56].mxu1  ;;  %vm3132_vm7 = vcmp.eq.s32.totalorder %v6235_v41, %v3095_v21  ;;  %vm3133_vm8 = vcmp.eq.s32.totalorder %v6240_v44, %v3095_v21 }
 0x1e5   : > { %v5195_v38 = vpop.f32.mrb[57].mxu1  ;;  %vm4934_vm10 = vmpackc.low %vm3133_vm8, %vm3131_vm6  ;;  %v2705_v60 = vpop.permute.xlu0 %2704 }
 0x1e6   : > { %v5196_v22 = vadd.f32 %v5195_v38, %v5194_v33  ;;  %v5197_v39 = vpop.f32.mrb[58].mxu1  ;;  %vm4936_vm11 = vmpackc.low %vm3132_vm7, %vm3130_vm9  ;;  %4935 = vmatprep.mubr.msk.bf16.mxu1 %vm4934_vm10, %v5965_v48  ;;  %vm2739_vm8 = vcmp.eq.s32.totalorder %v6240_v44, %v2705_v60  ;;  %vm2738_vm9 = vcmp.eq.s32.totalorder %v6235_v41, %v2705_v60  ;;  %v5769_v60 = vld [vmem:[%s7897_s3 + $0x40] ss:$8 sps:$4 sm:$0xff]  }
 0x1e7   : > { %v5198_v57 = vpop.f32.mrb[59].mxu1  ;;  %v5136_v25 = vpop.f32.mrb[28].mxu0  ;;  %4937 = vmatmul.mubr.msk.bf16.gmra.mrb[128].mxu1 %vm4936_vm11, %v5965_v48 }
 0x1e8   : > { %v7318_v34 = vadd.f32 %v5196_v22, %v1446_v16  ;;  %v5199_v35 = vadd.f32 %v5198_v57, %v5197_v39  ;;  %v5137_v37 = vpop.f32.mrb[29].mxu0  ;;  %v2699_v15 = vpop.permute.xlu1 %2698  ;;  %v5765_v39 = vld [vmem:[%s7897_s3 + $0x24] ss:$8 sps:$4 sm:$0xff]  }
 0x1e9   : > { %v5138_v46 = vadd.f32 %v5137_v37, %v5136_v25  ;;  %v5139_v59 = vpop.f32.mrb[30].mxu0  ;;  %vm2734_vm13 = vcmp.eq.s32.totalorder %v6235_v41, %v2699_v15  ;;  %vm2735_vm14 = vcmp.eq.s32.totalorder %v6240_v44, %v2699_v15  ;;  %v2708_v33 = vpop.permute.xlu0 %2707 }
 0x1ea   : > { %v7322_v47 = vadd.f32 %v5199_v35, %v1447_v24  ;;  %v5140_v50 = vpop.f32.mrb[31].mxu0  ;;  %vm4826_vm0 = vmpackc.low %vm2735_vm14, %vm2733_vm12  ;;  %v5762_v24 = vld [vmem:[%s7897_s3 + $0x14] ss:$8 sps:$4 sm:$0xff]   ;;  %v5763_v35 = vld [vmem:[%s7897_s3 + $0x20] ss:$8 sps:$4 sm:$0xff]  }
 0x1eb   : > { %v1448_v0 = vadd.f32 %v5138_v46, %v7234_v55  ;;  %v5141_v45 = vadd.f32 %v5140_v50, %v5139_v59  ;;  %vm4828_vm1 = vmpackc.low %vm2734_vm13, %vm2732_vm15  ;;  %4827 = vmatprep.mubr.msk.bf16.mxu0 %vm4826_vm0, %v5965_v48  ;;  %3602 = vmatprep.subr.bf16.mxu0 %v5762_v24  ;;  %v5778_v24 = vld [vmem:[%s7897_s3 + $0x70] ss:$8 sps:$4 sm:$0xff]  }
 0x1ec   : > { %v5200_v6 = vpop.f32.mrb[60].mxu1  ;;  %4829 = vmatmul.mubr.msk.bf16.gmra.mrb[100].mxu0 %vm4828_vm1, %v5965_v48 }
 0x1ed   : > { %v1449_v53 = vadd.f32 %v5141_v45, %v7241_v61  ;;  %v5201_v56 = vpop.f32.mrb[61].mxu1  ;;  %v3101_v36 = vpop.permute.xlu1 %3100  ;;  %3603 = vmatpush1.bf16.msra.mxu0 %v5760_v20  ;;  %v5768_v45 = vld [vmem:[%s7897_s3 + $0x34] ss:$8 sps:$4 sm:$0xff]  }
 0x1ee   : > { %v5202_v58 = vadd.f32 %v5201_v56, %v5200_v6  ;;  %v5203_v26 = vpop.f32.mrb[62].mxu1  ;;  %vm3136_vm4 = vcmp.eq.s32.totalorder %v6235_v41, %v3101_v36  ;;  %vm3137_vm5 = vcmp.eq.s32.totalorder %v6240_v44, %v3101_v36  ;;  %3604 = vmatprep.subr.bf16.mxu0 %v5765_v39  ;;  %v3110_v59 = vpop.permute.xlu0 %3109  ;;  %v5766_v6 = vld [vmem:[%s7897_s3 + $0x30] ss:$8 sps:$4 sm:$0xff]   ;;  %v5780_v20 = vld [vmem:[%s7897_s3 + $0x74] ss:$8 sps:$4 sm:$0xff]  }
 0x1ef   : > { %v5204_v55 = vpop.f32.mrb[63].mxu1  ;;  %vm4938_vm6 = vmpackc.low %vm3137_vm5, %vm3135_vm2 }
 0x1f0   : > { %v7335_v52 = vadd.f32 %v5202_v58, %v1448_v0  ;;  %v5205_v61 = vadd.f32 %v5204_v55, %v5203_v26  ;;  %vm4940_vm7 = vmpackc.low %vm3136_vm4, %vm3134_vm3  ;;  %4939 = vmatprep.mubr.msk.bf16.mxu1 %vm4938_vm6, %v5965_v48  ;;  %vm2741_vm4 = vcmp.eq.s32.totalorder %v6240_v44, %v2708_v33 }
 0x1f1   : > { %v5142_v13 = vpop.f32.mrb[32].mxu0  ;;  %4941 = vmatmul.mubr.msk.bf16.gmra.mrb[132].mxu1 %vm4940_vm7, %v5965_v48  ;;  %3605 = vmatpush1.bf16.msra.mxu0 %v5763_v35  ;;  %vm2740_vm7 = vcmp.eq.s32.totalorder %v6235_v41, %v2708_v33 }
 0x1f2   : > { %v7344_v14 = vadd.f32 %v5205_v61, %v1449_v53  ;;  %v5143_v8 = vpop.f32.mrb[33].mxu0  ;;  %v2702_v9 = vpop.permute.xlu1 %2701  ;;  %3606 = vmatprep.subr.bf16.mxu0 %v5768_v45 }
 0x1f3   : > { %v5144_v10 = vadd.f32 %v5143_v8, %v5142_v13  ;;  %v5145_v11 = vpop.f32.mrb[34].mxu0  ;;  %vm2736_vm10 = vcmp.eq.s32.totalorder %v6235_v41, %v2702_v9  ;;  %vm2737_vm11 = vcmp.eq.s32.totalorder %v6240_v44, %v2702_v9  ;;  %v5772_v13 = vld [vmem:[%s7897_s3 + $0x50] ss:$8 sps:$4 sm:$0xff]   ;;  %v5774_v8 = vld [vmem:[%s7897_s3 + $0x54] ss:$8 sps:$4 sm:$0xff]  }
 0x1f4   : > { %v5146_v12 = vpop.f32.mrb[35].mxu0  ;;  %vm4830_vm12 = vmpackc.low %vm2739_vm8, %vm2737_vm11  ;;  %vm3142_vm11 = vcmp.eq.s32.totalorder %v6235_v41, %v3110_v59 }
 0x1f5   : > { %v1450_v16 = vadd.f32 %v5144_v10, %v7220_v23  ;;  %v5147_v29 = vadd.f32 %v5146_v12, %v5145_v11  ;;  %vm4832_vm13 = vmpackc.low %vm2738_vm9, %vm2736_vm10  ;;  %4831 = vmatprep.mubr.msk.bf16.mxu0 %vm4830_vm12, %v5965_v48  ;;  %vm3143_vm10 = vcmp.eq.s32.totalorder %v6240_v44, %v3110_v59  ;;  %3607 = vmatpush1.bf16.msra.mxu0 %v5766_v6 }
 0x1f6   : > { %4833 = vmatmul.mubr.msk.bf16.gmra.mrb[104].mxu0 %vm4832_vm13, %v5965_v48 }
 0x1f7   : > { %v1451_v30 = vadd.f32 %v5147_v29, %v7225_v63  ;;  %v3104_v19 = vpop.permute.xlu1 %3103 }
 0x1f8   : > { %vm3139_vm14 = vcmp.eq.s32.totalorder %v6240_v44, %v3104_v19  ;;  %vm3138_vm1 = vcmp.eq.s32.totalorder %v6235_v41, %v3104_v19 }
 0x1fa   : > { %v5206_v27 = vpop.f32.mrb[64].mxu1 }
 0x1fb   : > { %v5207_v23 = vpop.f32.mrb[65].mxu1  ;;  %v3107_v2 = vpop.permute.xlu1 %3106 }
 0x1fc   : > { %v5208_v54 = vadd.f32 %v5207_v23, %v5206_v27  ;;  %v5209_v18 = vpop.f32.mrb[66].mxu1  ;;  %vm3140_vm15 = vcmp.eq.s32.totalorder %v6235_v41, %v3107_v2  ;;  %vm3141_vm0 = vcmp.eq.s32.totalorder %v6240_v44, %v3107_v2 }
 0x1fd   : > { %v5210_v63 = vpop.f32.mrb[67].mxu1  ;;  %vm4942_vm2 = vmpackc.low %vm3141_vm0, %vm3139_vm14 }
 0x1fe   : > { %v7365_v21 = vadd.f32 %v5208_v54, %v1450_v16  ;;  %v5211_v38 = vadd.f32 %v5210_v63, %v5209_v18  ;;  %vm4944_vm3 = vmpackc.low %vm3140_vm15, %vm3138_vm1  ;;  %4943 = vmatprep.mubr.msk.bf16.mxu1 %vm4942_vm2, %v5965_v48 }
 0x1ff   : > { %v5148_v22 = vpop.f32.mrb[36].mxu0  ;;  %4945 = vmatmul.mubr.msk.bf16.gmra.mrb[136].mxu1 %vm4944_vm3, %v5965_v48 }
 0x200   : > { %v7371_v57 = vadd.f32 %v5211_v38, %v1451_v30  ;;  %v5149_v25 = vpop.f32.mrb[37].mxu0  ;;  %v2711_v37 = vpop.permute.xlu1 %2710  ;;  %v5775_v30 = vld [vmem:[%s7897_s3 + $0x60] ss:$8 sps:$4 sm:$0xff]  }
 0x201   : > { %v5150_v49 = vadd.f32 %v5149_v25, %v5148_v22  ;;  %v5151_v15 = vpop.f32.mrb[38].mxu0  ;;  %vm2742_vm5 = vcmp.eq.s32.totalorder %v6235_v41, %v2711_v37  ;;  %vm2743_vm6 = vcmp.eq.s32.totalorder %v6240_v44, %v2711_v37 }
 0x202   : > { %v5152_v46 = vpop.f32.mrb[39].mxu0  ;;  %vm4834_vm8 = vmpackc.low %vm2743_vm6, %vm2741_vm4 }
 0x203   : > { %v1452_v50 = vadd.f32 %v5150_v49, %v7245_v3  ;;  %v5153_v0 = vadd.f32 %v5152_v46, %v5151_v15  ;;  %vm4836_vm9 = vmpackc.low %vm2742_vm5, %vm2740_vm7  ;;  %4835 = vmatprep.mubr.msk.bf16.mxu0 %vm4834_vm8, %v5965_v48 }
 0x204   : > { %v5212_v56 = vpop.f32.mrb[68].mxu1  ;;  %4837 = vmatmul.mubr.msk.bf16.gmra.mrb[108].mxu0 %vm4836_vm9, %v5965_v48 }
 0x205   : > { %v1453_v53 = vadd.f32 %v5153_v0, %v7250_v43  ;;  %v3113_v3 = vpop.permute.xlu1 %3112  ;;  %v5213_v36 = vpop.f32.mrb[69].mxu1  ;;  %3632 = vmatprep.mubr.bf16.mxu0 %v5959_v1  ;;  %v5771_v43 = vld [vmem:[%s7897_s3 + $0x44] ss:$8 sps:$4 sm:$0xff]  }
 0x206   : > { %vm3144_vm12 = vcmp.eq.s32.totalorder %v6235_v41, %v3113_v3  ;;  %vm3145_vm13 = vcmp.eq.s32.totalorder %v6240_v44, %v3113_v3  ;;  %v5214_v58 = vadd.f32 %v5213_v36, %v5212_v56  ;;  %v5215_v26 = vpop.f32.mrb[70].mxu1  ;;  %3608 = vmatprep.subr.bf16.mxu0 %v5771_v43 }
 0x207   : > { %vm4946_vm14 = vmpackc.low %vm3145_vm13, %vm3143_vm10  ;;  %v5216_v55 = vpop.f32.mrb[71].mxu1  ;;  %3609 = vmatpush1.bf16.msra.mxu0 %v5769_v60 }
 0x208   : > { %v7402_v61 = vadd.f32 %v5214_v58, %v1452_v50  ;;  %vm4948_vm15 = vmpackc.low %vm3144_vm12, %vm3142_vm11  ;;  %v5217_v62 = vadd.f32 %v5216_v55, %v5215_v26  ;;  %4947 = vmatprep.mubr.msk.bf16.mxu1 %vm4946_vm14, %v5965_v48  ;;  %3610 = vmatprep.subr.bf16.mxu0 %v5774_v8 }
 0x209   : > { %v5154_v41 = vpop.f32.mrb[40].mxu0  ;;  %4949 = vmatmul.mubr.msk.bf16.gmra.mrb[140].mxu1 %vm4948_vm15, %v5965_v48  ;;  %v5777_v48 = vld [vmem:[%s7897_s3 + $0x64] ss:$8 sps:$4 sm:$0xff]  }
 0x20a   : > { %v7406_v44 = vadd.f32 %v5217_v62, %v1453_v53  ;;  %v5155_v5 = vpop.f32.mrb[41].mxu0 }
 0x20b   : > { %v5156_v9 = vadd.f32 %v5155_v5, %v5154_v41  ;;  %v5157_v10 = vpop.f32.mrb[42].mxu0  ;;  %3611 = vmatpush1.bf16.msra.mxu0 %v5772_v13 }
 0x20c   : > { %v5158_v11 = vpop.f32.mrb[43].mxu0  ;;  %3612 = vmatprep.subr.bf16.mxu0 %v5777_v48 }
 0x20d   : > { %v1454_v12 = vadd.f32 %v5156_v9, %v7264_v31  ;;  %v5159_v16 = vadd.f32 %v5158_v11, %v5157_v10 }
 0x20f   : > { %v1455_v29 = vadd.f32 %v5159_v16, %v7267_v32  ;;  %3613 = vmatpush1.bf16.msra.mxu0 %v5775_v30 }
 0x210   : > { %3614 = vmatprep.subr.bf16.mxu0 %v5780_v20 }
 0x212   : > { %v5218_v19 = vpop.f32.mrb[72].mxu1 }
 0x213   : > { %v5219_v31 = vpop.f32.mrb[73].mxu1  ;;  %3615 = vmatpush1.bf16.msra.mxu0 %v5778_v24 }
 0x214   : > { %v5220_v27 = vadd.f32 %v5219_v31, %v5218_v19  ;;  %v5221_v23 = vpop.f32.mrb[74].mxu1 }
 0x215   : > { %v5222_v32 = vpop.f32.mrb[75].mxu1 }
 0x216   : > { %v7428_v2 = vadd.f32 %v5220_v27, %v1454_v12  ;;  %v5223_v54 = vadd.f32 %v5222_v32, %v5221_v23 }
 0x217   : > { %v5160_v18 = vpop.f32.mrb[44].mxu0 }
 0x218   : > { %v7430_v63 = vadd.f32 %v5223_v54, %v1455_v29  ;;  %v5161_v33 = vpop.f32.mrb[45].mxu0 }
 0x219   : > { %v5162_v38 = vadd.f32 %v5161_v33, %v5160_v18  ;;  %v5163_v22 = vpop.f32.mrb[46].mxu0 }
 0x21a   : > { %v5164_v39 = vpop.f32.mrb[47].mxu0 }
 0x21b   : > { %v1456_v25 = vadd.f32 %v5162_v38, %v7278_v42  ;;  %v5165_v35 = vadd.f32 %v5164_v39, %v5163_v22 }
 0x21c   : > { %v5224_v37 = vpop.f32.mrb[76].mxu1 }
 0x21d   : > { %v1457_v49 = vadd.f32 %v5165_v35, %v7283_v51  ;;  %v5225_v15 = vpop.f32.mrb[77].mxu1 }
 0x21e   : > { %v5226_v46 = vadd.f32 %v5225_v15, %v5224_v37  ;;  %v5227_v59 = vpop.f32.mrb[78].mxu1 }
 0x21f   : > { %v5228_v50 = vpop.f32.mrb[79].mxu1 }
 0x220   : > { %v7434_v0 = vadd.f32 %v5226_v46, %v1456_v25  ;;  %v5229_v45 = vadd.f32 %v5228_v50, %v5227_v59 }
 0x221   : > { %v5246_v6 = vpop.f32.mrb[48].mxu0 }
 0x222   : > { %v7436_v53 = vadd.f32 %v5229_v45, %v1457_v49  ;;  %v5247_v56 = vpop.f32.mrb[49].mxu0 }
 0x223   : > { %v5248_v3 = vadd.f32 %v5247_v56, %v5246_v6  ;;  %v5249_v36 = vpop.f32.mrb[50].mxu0 }
 0x224   : > { %v5250_v58 = vpop.f32.mrb[51].mxu0 }
 0x225   : > { %v2246_v42 = vadd.f32 %v5248_v3, %v7295_v4  ;;  %v5251_v26 = vadd.f32 %v5250_v58, %v5249_v36 }
 0x227   : > { %v2247_v43 = vadd.f32 %v5251_v26, %v7298_v7 }
 0x22b   : > { %v5310_v51 = vpop.f32.mrb[80].mxu1 }
 0x22c   : > { %v5311_v55 = vpop.f32.mrb[81].mxu1 }
 0x22d   : > { %v5312_v60 = vadd.f32 %v5311_v55, %v5310_v51  ;;  %v5313_v62 = vpop.f32.mrb[82].mxu1 }
 0x22e   : > { %v5314_v41 = vpop.f32.mrb[83].mxu1 }
 0x22f   : > { %v7440_v5 = vadd.f32 %v5312_v60, %v2246_v42  ;;  %v5315_v13 = vadd.f32 %v5314_v41, %v5313_v62  ;;  %v5252_v8 = vpop.f32.mrb[52].mxu0 }
 0x230   : > { %v5253_v9 = vpop.f32.mrb[53].mxu0 }
 0x231   : > { %v7442_v10 = vadd.f32 %v5315_v13, %v2247_v43  ;;  %v5254_v11 = vadd.f32 %v5253_v9, %v5252_v8  ;;  %v5255_v12 = vpop.f32.mrb[54].mxu0 }
 0x232   : > { %v5256_v16 = vpop.f32.mrb[55].mxu0 }
 0x233   : > { %v2248_v4 = vadd.f32 %v5254_v11, %v7309_v28  ;;  %v5257_v48 = vadd.f32 %v5256_v16, %v5255_v12 }
 0x234   : > { %v5316_v29 = vpop.f32.mrb[84].mxu1 }
 0x235   : > { %v2249_v7 = vadd.f32 %v5257_v48, %v7311_v17  ;;  %v5317_v30 = vpop.f32.mrb[85].mxu1 }
 0x236   : > { %v5318_v19 = vadd.f32 %v5317_v30, %v5316_v29  ;;  %v5319_v20 = vpop.f32.mrb[86].mxu1 }
 0x237   : > { %v5320_v31 = vpop.f32.mrb[87].mxu1 }
 0x238   : > { %v7446_v24 = vadd.f32 %v5318_v19, %v2248_v4  ;;  %v5321_v27 = vadd.f32 %v5320_v31, %v5319_v20 }
 0x239   : > { %v5258_v23 = vpop.f32.mrb[56].mxu0 }
 0x23a   : > { %v7448_v32 = vadd.f32 %v5321_v27, %v2249_v7  ;;  %v5259_v54 = vpop.f32.mrb[57].mxu0 }
 0x23b   : > { %v5260_v18 = vadd.f32 %v5259_v54, %v5258_v23  ;;  %v5261_v33 = vpop.f32.mrb[58].mxu0 }
 0x23c   : > { %v5262_v38 = vpop.f32.mrb[59].mxu0 }
 0x23d   : > { %v2250_v28 = vadd.f32 %v5260_v18, %v7318_v34  ;;  %v5263_v22 = vadd.f32 %v5262_v38, %v5261_v33 }
 0x23f   : > { %v2251_v39 = vadd.f32 %v5263_v22, %v7322_v47 }
 0x242   : > { %v5322_v17 = vpop.f32.mrb[88].mxu1 }
 0x243   : > { %v5323_v25 = vpop.f32.mrb[89].mxu1 }
 0x244   : > { %v5324_v35 = vadd.f32 %v5323_v25, %v5322_v17  ;;  %v5325_v37 = vpop.f32.mrb[90].mxu1 }
 0x245   : > { %v5326_v49 = vpop.f32.mrb[91].mxu1 }
 0x246   : > { %v7452_v15 = vadd.f32 %v5324_v35, %v2250_v28  ;;  %v5327_v46 = vadd.f32 %v5326_v49, %v5325_v37 }
 0x247   : > { %v5264_v59 = vpop.f32.mrb[60].mxu0 }
 0x248   : > { %v7454_v50 = vadd.f32 %v5327_v46, %v2251_v39  ;;  %v5265_v45 = vpop.f32.mrb[61].mxu0 }
 0x249   : > { %v5266_v6 = vadd.f32 %v5265_v45, %v5264_v59  ;;  %v5267_v56 = vpop.f32.mrb[62].mxu0 }
 0x24a   : > { %v5268_v3 = vpop.f32.mrb[63].mxu0 }
 0x24b   : > { %v2252_v34 = vadd.f32 %v5266_v6, %v7335_v52  ;;  %v5269_v36 = vadd.f32 %v5268_v3, %v5267_v56 }
 0x24c   : > { %v5328_v58 = vpop.f32.mrb[92].mxu1 }
 0x24d   : > { %v2253_v47 = vadd.f32 %v5269_v36, %v7344_v14  ;;  %v5329_v42 = vpop.f32.mrb[93].mxu1 }
 0x24e   : > { %v5330_v26 = vadd.f32 %v5329_v42, %v5328_v58  ;;  %v5331_v43 = vpop.f32.mrb[94].mxu1 }
 0x24f   : > { %v5332_v51 = vpop.f32.mrb[95].mxu1 }
 0x250   : > { %v7458_v55 = vadd.f32 %v5330_v26, %v2252_v34  ;;  %v5333_v60 = vadd.f32 %v5332_v51, %v5331_v43 }
 0x251   : > { %v5270_v62 = vpop.f32.mrb[64].mxu0 }
 0x252   : > { %v7460_v41 = vadd.f32 %v5333_v60, %v2253_v47  ;;  %v5271_v13 = vpop.f32.mrb[65].mxu0 }
 0x253   : > { %v5272_v8 = vadd.f32 %v5271_v13, %v5270_v62  ;;  %v5273_v9 = vpop.f32.mrb[66].mxu0 }
 0x254   : > { %v5274_v11 = vpop.f32.mrb[67].mxu0 }
 0x255   : > { %v2254_v52 = vadd.f32 %v5272_v8, %v7365_v21  ;;  %v5275_v12 = vadd.f32 %v5274_v11, %v5273_v9 }
 0x257   : > { %v2255_v16 = vadd.f32 %v5275_v12, %v7371_v57 }
 0x25a   : > { %v5334_v14 = vpop.f32.mrb[96].mxu1 }
 0x25b   : > { %v5335_v4 = vpop.f32.mrb[97].mxu1 }
 0x25c   : > { %v5336_v48 = vadd.f32 %v5335_v4, %v5334_v14  ;;  %v5337_v29 = vpop.f32.mrb[98].mxu1 }
 0x25d   : > { %v5338_v7 = vpop.f32.mrb[99].mxu1 }
 0x25e   : > { %v7464_v30 = vadd.f32 %v5336_v48, %v2254_v52  ;;  %v5339_v19 = vadd.f32 %v5338_v7, %v5337_v29 }
 0x25f   : > { %v5276_v20 = vpop.f32.mrb[68].mxu0 }
 0x260   : > { %v7466_v31 = vadd.f32 %v5339_v19, %v2255_v16  ;;  %v5277_v27 = vpop.f32.mrb[69].mxu0 }
 0x261   : > { %v5278_v23 = vadd.f32 %v5277_v27, %v5276_v20  ;;  %v5279_v54 = vpop.f32.mrb[70].mxu0 }
 0x262   : > { %v5280_v18 = vpop.f32.mrb[71].mxu0 }
 0x263   : > { %v2256_v21 = vadd.f32 %v5278_v23, %v7402_v61  ;;  %v5281_v33 = vadd.f32 %v5280_v18, %v5279_v54 }
 0x264   : > { %v5340_v38 = vpop.f32.mrb[100].mxu1 }
 0x265   : > { %v2257_v57 = vadd.f32 %v5281_v33, %v7406_v44  ;;  %v5341_v28 = vpop.f32.mrb[101].mxu1 }
 0x266   : > { %v5342_v22 = vadd.f32 %v5341_v28, %v5340_v38  ;;  %v5343_v39 = vpop.f32.mrb[102].mxu1 }
 0x267   : > { %v5344_v17 = vpop.f32.mrb[103].mxu1 }
 0x268   : > { %v7470_v25 = vadd.f32 %v5342_v22, %v2256_v21  ;;  %v5345_v35 = vadd.f32 %v5344_v17, %v5343_v39 }
 0x269   : > { %v5282_v37 = vpop.f32.mrb[72].mxu0 }
 0x26a   : > { %v7472_v49 = vadd.f32 %v5345_v35, %v2257_v57  ;;  %v5283_v46 = vpop.f32.mrb[73].mxu0 }
 0x26b   : > { %v5284_v59 = vadd.f32 %v5283_v46, %v5282_v37  ;;  %v5285_v45 = vpop.f32.mrb[74].mxu0 }
 0x26c   : > { %v5286_v6 = vpop.f32.mrb[75].mxu0 }
 0x26d   : > { %v2258_v61 = vadd.f32 %v5284_v59, %v7428_v2  ;;  %v5287_v56 = vadd.f32 %v5286_v6, %v5285_v45 }
 0x26f   : > { %v2259_v3 = vadd.f32 %v5287_v56, %v7430_v63 }
 0x272   : > { %v5346_v44 = vpop.f32.mrb[104].mxu1 }
 0x273   : > { %v5347_v34 = vpop.f32.mrb[105].mxu1 }
 0x274   : > { %v5348_v36 = vadd.f32 %v5347_v34, %v5346_v44  ;;  %v5349_v58 = vpop.f32.mrb[106].mxu1 }
 0x275   : > { %v5350_v47 = vpop.f32.mrb[107].mxu1 }
 0x276   : > { %v7476_v42 = vadd.f32 %v5348_v36, %v2258_v61  ;;  %v5351_v26 = vadd.f32 %v5350_v47, %v5349_v58 }
 0x277   : > { %v5288_v43 = vpop.f32.mrb[76].mxu0 }
 0x278   : > { %v7478_v51 = vadd.f32 %v5351_v26, %v2259_v3  ;;  %v5289_v60 = vpop.f32.mrb[77].mxu0 }
 0x279   : > { %v5290_v62 = vadd.f32 %v5289_v60, %v5288_v43  ;;  %v5291_v13 = vpop.f32.mrb[78].mxu0 }
 0x27a   : > { %v5292_v8 = vpop.f32.mrb[79].mxu0 }
 0x27b   : > { %v2260_v2 = vadd.f32 %v5290_v62, %v7434_v0  ;;  %v5293_v9 = vadd.f32 %v5292_v8, %v5291_v13 }
 0x27c   : > { %v5352_v11 = vpop.f32.mrb[108].mxu1 }
 0x27d   : > { %v2261_v63 = vadd.f32 %v5293_v9, %v7436_v53  ;;  %v5353_v52 = vpop.f32.mrb[109].mxu1 }
 0x27e   : > { %v5354_v12 = vadd.f32 %v5353_v52, %v5352_v11  ;;  %v5355_v16 = vpop.f32.mrb[110].mxu1 }
 0x27f   : > { %v5356_v14 = vpop.f32.mrb[111].mxu1 }
 0x280   : > { %v7482_v4 = vadd.f32 %v5354_v12, %v2260_v2  ;;  %v5357_v48 = vadd.f32 %v5356_v14, %v5355_v16 }
 0x281   : > { %v5374_v29 = vpop.f32.mrb[80].mxu0 }
 0x282   : > { %v7484_v7 = vadd.f32 %v5357_v48, %v2261_v63  ;;  %v5375_v19 = vpop.f32.mrb[81].mxu0 }
 0x283   : > { %v5376_v20 = vadd.f32 %v5375_v19, %v5374_v29  ;;  %v5377_v27 = vpop.f32.mrb[82].mxu0 }
 0x284   : > { %v5378_v23 = vpop.f32.mrb[83].mxu0 }
 0x285   : > { %v3050_v0 = vadd.f32 %v5376_v20, %v7440_v5  ;;  %v5379_v54 = vadd.f32 %v5378_v23, %v5377_v27 }
 0x287   : > { %v3051_v18 = vadd.f32 %v5379_v54, %v7442_v10 }
 0x28a   : > { %v5438_v53 = vpop.f32.mrb[112].mxu1 }
 0x28b   : > { %v5439_v21 = vpop.f32.mrb[113].mxu1 }
 0x28c   : > { %v5440_v33 = vadd.f32 %v5439_v21, %v5438_v53  ;;  %v5441_v38 = vpop.f32.mrb[114].mxu1 }
 0x28d   : > { %v5442_v57 = vpop.f32.mrb[115].mxu1 }
 0x28e   : > { %v3452_v28 = vadd.f32 %v5440_v33, %v3050_v0  ;;  %v5443_v22 = vadd.f32 %v5442_v57, %v5441_v38 }
 0x28f   : > { %v5380_v39 = vpop.f32.mrb[84].mxu0 }
 0x290   : > { %v3453_v17 = vadd.f32 %v5443_v22, %v3051_v18  ;;  %v5381_v35 = vpop.f32.mrb[85].mxu0  ;;  %v3468_v59 = vmax.f32 %v3452_v28, 0.0 }
 0x291   : > { %v5382_v37 = vadd.f32 %v5381_v35, %v5380_v39  ;;  %v5383_v46 = vpop.f32.mrb[86].mxu0 }
 0x292   : > { %v3469_v45 = vmax.f32 %v3453_v17, 0.0  ;;  %v5384_v6 = vpop.f32.mrb[87].mxu0 }
 0x293   : > { %v3052_v5 = vadd.f32 %v5382_v37, %v7446_v24  ;;  %v5385_v61 = vadd.f32 %v5384_v6, %v5383_v46 }
 0x294   : > { %v3484_v56 = vpack.c.bf16 %v3469_v45, %v3468_v59  ;;  %v5444_v10 = vpop.f32.mrb[116].mxu1 }
 0x295   : > { %v3053_v3 = vadd.f32 %v5385_v61, %v7448_v32  ;;  %v5445_v44 = vpop.f32.mrb[117].mxu1 }
 0x296   : > { %v5446_v34 = vadd.f32 %v5445_v44, %v5444_v10  ;;  %v5447_v36 = vpop.f32.mrb[118].mxu1  ;;  %3633 = vmatmul.mubr.bf16.vlgmr.msra.gmra.mrb[112].mxu0 %v3484_v56 }
 0x297   : > { %v5448_v58 = vpop.f32.mrb[119].mxu1  ;;  %3642 = vmatprep.mubr.bf16.mxu0 %v5959_v1 }
 0x298   : > { %v3454_v47 = vadd.f32 %v5446_v34, %v3052_v5  ;;  %v5449_v26 = vadd.f32 %v5448_v58, %v5447_v36 }
 0x299   : > { %v5386_v43 = vpop.f32.mrb[88].mxu0 }
 0x29a   : > { %v3455_v60 = vadd.f32 %v5449_v26, %v3053_v3  ;;  %v5387_v62 = vpop.f32.mrb[89].mxu0  ;;  %v3470_v24 = vmax.f32 %v3454_v47, 0.0 }
 0x29b   : > { %v5388_v13 = vadd.f32 %v5387_v62, %v5386_v43  ;;  %v5389_v8 = vpop.f32.mrb[90].mxu0 }
 0x29c   : > { %v3471_v2 = vmax.f32 %v3455_v60, 0.0  ;;  %v5390_v9 = vpop.f32.mrb[91].mxu0 }
 0x29d   : > { %v3054_v11 = vadd.f32 %v5388_v13, %v7452_v15  ;;  %v5391_v32 = vadd.f32 %v5390_v9, %v5389_v8 }
 0x29e   : > { %v3485_v63 = vpack.c.bf16 %v3471_v2, %v3470_v24 }
 0x29f   : > { %v3055_v52 = vadd.f32 %v5391_v32, %v7454_v50 }
 0x2a0   : > { %3643 = vmatmul.mubr.bf16.gmra.mrb[116].mxu0 %v3485_v63 }
 0x2a1   : > { %3652 = vmatprep.mubr.bf16.mxu0 %v5959_v1 }
 0x2a2   : > { %v5450_v12 = vpop.f32.mrb[120].mxu1 }
 0x2a3   : > { %v5451_v16 = vpop.f32.mrb[121].mxu1 }
 0x2a4   : > { %v5452_v14 = vadd.f32 %v5451_v16, %v5450_v12  ;;  %v5453_v48 = vpop.f32.mrb[122].mxu1 }
 0x2a5   : > { %v5454_v29 = vpop.f32.mrb[123].mxu1 }
 0x2a6   : > { %v3456_v19 = vadd.f32 %v5452_v14, %v3054_v11  ;;  %v5455_v20 = vadd.f32 %v5454_v29, %v5453_v48 }
 0x2a7   : > { %v5392_v27 = vpop.f32.mrb[92].mxu0 }
 0x2a8   : > { %v3457_v23 = vadd.f32 %v5455_v20, %v3055_v52  ;;  %v5393_v0 = vpop.f32.mrb[93].mxu0  ;;  %v3472_v15 = vmax.f32 %v3456_v19, 0.0 }
 0x2a9   : > { %v5394_v54 = vadd.f32 %v5393_v0, %v5392_v27  ;;  %v5395_v18 = vpop.f32.mrb[94].mxu0 }
 0x2aa   : > { %v3473_v53 = vmax.f32 %v3457_v23, 0.0  ;;  %v5396_v21 = vpop.f32.mrb[95].mxu0 }
 0x2ab   : > { %v3056_v50 = vadd.f32 %v5394_v54, %v7458_v55  ;;  %v5397_v33 = vadd.f32 %v5396_v21, %v5395_v18 }
 0x2ac   : > { %v5456_v38 = vpop.f32.mrb[124].mxu1  ;;  %v3486_v57 = vpack.c.bf16 %v3473_v53, %v3472_v15 }
 0x2ad   : > { %v3057_v28 = vadd.f32 %v5397_v33, %v7460_v41  ;;  %v5457_v22 = vpop.f32.mrb[125].mxu1 }
 0x2ae   : > { %v5458_v39 = vadd.f32 %v5457_v22, %v5456_v38  ;;  %v5459_v17 = vpop.f32.mrb[126].mxu1  ;;  %3653 = vmatmul.mubr.bf16.gmra.mrb[120].mxu0 %v3486_v57 }
 0x2af   : > { %v5460_v35 = vpop.f32.mrb[127].mxu1  ;;  %3662 = vmatprep.mubr.bf16.mxu0 %v5959_v1 }
 0x2b0   : > { %v3458_v37 = vadd.f32 %v5458_v39, %v3056_v50  ;;  %v5461_v46 = vadd.f32 %v5460_v35, %v5459_v17 }
 0x2b1   : > { %v5398_v59 = vpop.f32.mrb[96].mxu0 }
 0x2b2   : > { %v3459_v45 = vadd.f32 %v5461_v46, %v3057_v28  ;;  %v5399_v6 = vpop.f32.mrb[97].mxu0  ;;  %v3474_v55 = vmax.f32 %v3458_v37, 0.0 }
 0x2b3   : > { %v5400_v5 = vadd.f32 %v5399_v6, %v5398_v59  ;;  %v5401_v61 = vpop.f32.mrb[98].mxu0 }
 0x2b4   : > { %v3475_v56 = vmax.f32 %v3459_v45, 0.0  ;;  %v5402_v10 = vpop.f32.mrb[99].mxu0 }
 0x2b5   : > { %v3058_v3 = vadd.f32 %v5400_v5, %v7464_v30  ;;  %v5403_v41 = vadd.f32 %v5402_v10, %v5401_v61 }
 0x2b6   : > { %v3487_v44 = vpack.c.bf16 %v3475_v56, %v3474_v55 }
 0x2b7   : > { %v3059_v34 = vadd.f32 %v5403_v41, %v7466_v31 }
 0x2b8   : > { %3663 = vmatmul.mubr.bf16.gmra.mrb[124].mxu0 %v3487_v44 }
 0x2b9   : > { %3672 = vmatprep.mubr.bf16.mxu0 %v5959_v1 }
 0x2ba   : > { %v5462_v36 = vpop.f32.mrb[128].mxu1 }
 0x2bb   : > { %v5463_v58 = vpop.f32.mrb[129].mxu1 }
 0x2bc   : > { %v5464_v47 = vadd.f32 %v5463_v58, %v5462_v36  ;;  %v5465_v26 = vpop.f32.mrb[130].mxu1 }
 0x2bd   : > { %v5466_v43 = vpop.f32.mrb[131].mxu1 }
 0x2be   : > { %v3460_v60 = vadd.f32 %v5464_v47, %v3058_v3  ;;  %v5467_v62 = vadd.f32 %v5466_v43, %v5465_v26 }
 0x2bf   : > { %v5404_v13 = vpop.f32.mrb[100].mxu0 }
 0x2c0   : > { %v3461_v8 = vadd.f32 %v5467_v62, %v3059_v34  ;;  %v5405_v24 = vpop.f32.mrb[101].mxu0  ;;  %v3476_v30 = vmax.f32 %v3460_v60, 0.0 }
 0x2c1   : > { %v5406_v2 = vadd.f32 %v5405_v24, %v5404_v13  ;;  %v5407_v9 = vpop.f32.mrb[102].mxu0 }
 0x2c2   : > { %v3477_v11 = vmax.f32 %v3461_v8, 0.0  ;;  %v5408_v32 = vpop.f32.mrb[103].mxu0 }
 0x2c3   : > { %v3060_v31 = vadd.f32 %v5406_v2, %v7470_v25  ;;  %v5409_v63 = vadd.f32 %v5408_v32, %v5407_v9 }
 0x2c4   : > { %v5468_v52 = vpop.f32.mrb[132].mxu1  ;;  %v3488_v12 = vpack.c.bf16 %v3477_v11, %v3476_v30 }
 0x2c5   : > { %v3061_v16 = vadd.f32 %v5409_v63, %v7472_v49  ;;  %v5469_v14 = vpop.f32.mrb[133].mxu1 }
 0x2c6   : > { %v5470_v48 = vadd.f32 %v5469_v14, %v5468_v52  ;;  %v5471_v29 = vpop.f32.mrb[134].mxu1  ;;  %3673 = vmatmul.mubr.bf16.gmra.mrb[128].mxu0 %v3488_v12 }
 0x2c7   : > { %v5472_v19 = vpop.f32.mrb[135].mxu1  ;;  %3682 = vmatprep.mubr.bf16.mxu0 %v5959_v1 }
 0x2c8   : > { %v3462_v20 = vadd.f32 %v5470_v48, %v3060_v31  ;;  %v5473_v27 = vadd.f32 %v5472_v19, %v5471_v29 }
 0x2c9   : > { %v5410_v23 = vpop.f32.mrb[104].mxu0 }
 0x2ca   : > { %v3463_v0 = vadd.f32 %v5473_v27, %v3061_v16  ;;  %v5411_v54 = vpop.f32.mrb[105].mxu0  ;;  %v3478_v25 = vmax.f32 %v3462_v20, 0.0 }
 0x2cb   : > { %v5412_v18 = vadd.f32 %v5411_v54, %v5410_v23  ;;  %v5413_v15 = vpop.f32.mrb[106].mxu0 }
 0x2cc   : > { %v3479_v53 = vmax.f32 %v3463_v0, 0.0  ;;  %v5414_v21 = vpop.f32.mrb[107].mxu0 }
 0x2cd   : > { %v3062_v50 = vadd.f32 %v5412_v18, %v7476_v42  ;;  %v5415_v49 = vadd.f32 %v5414_v21, %v5413_v15 }
 0x2ce   : > { %v3489_v33 = vpack.c.bf16 %v3479_v53, %v3478_v25 }
 0x2cf   : > { %v3063_v38 = vadd.f32 %v5415_v49, %v7478_v51 }
 0x2d0   : > { %3683 = vmatmul.mubr.bf16.gmra.mrb[132].mxu0 %v3489_v33 }
 0x2d1   : > { %3692 = vmatprep.mubr.bf16.mxu0 %v5959_v1 }
 0x2d2   : > { %v5474_v57 = vpop.f32.mrb[136].mxu1 }
 0x2d3   : > { %v5475_v28 = vpop.f32.mrb[137].mxu1 }
 0x2d4   : > { %v5476_v22 = vadd.f32 %v5475_v28, %v5474_v57  ;;  %v5477_v39 = vpop.f32.mrb[138].mxu1 }
 0x2d5   : > { %v5478_v17 = vpop.f32.mrb[139].mxu1 }
 0x2d6   : > { %v3464_v35 = vadd.f32 %v5476_v22, %v3062_v50  ;;  %v5479_v37 = vadd.f32 %v5478_v17, %v5477_v39 }
 0x2d7   : > { %v5416_v46 = vpop.f32.mrb[108].mxu0 }
 0x2d8   : > { %v3465_v59 = vadd.f32 %v5479_v37, %v3063_v38  ;;  %v5417_v45 = vpop.f32.mrb[109].mxu0  ;;  %v3480_v42 = vmax.f32 %v3464_v35, 0.0 }
 0x2d9   : > { %v5418_v6 = vadd.f32 %v5417_v45, %v5416_v46  ;;  %v5419_v5 = vpop.f32.mrb[110].mxu0 }
 0x2da   : > { %v3481_v61 = vmax.f32 %v3465_v59, 0.0  ;;  %v5420_v55 = vpop.f32.mrb[111].mxu0 }
 0x2db   : > { %v3064_v51 = vadd.f32 %v5418_v6, %v7482_v4  ;;  %v5421_v56 = vadd.f32 %v5420_v55, %v5419_v5  ;;  %v3511_v4 = vshrl.u32 %v243_v40, 7 }
 0x2dc   : > { %v5480_v10 = vpop.f32.mrb[140].mxu1  ;;  %v3490_v3 = vpack.c.bf16 %v3481_v61, %v3480_v42 }
 0x2dd   : > { %v3065_v41 = vadd.f32 %v5421_v56, %v7484_v7  ;;  %v5481_v44 = vpop.f32.mrb[141].mxu1  ;;  %v3512_v8 = vsub.s32 0, %v3511_v4  ;;  %v3508_v7 = vld [vmem:[%s7898_s4] sm:$0x3]  ;;  %v3516_v24 = vsub.s32 1, %v3511_v4 }
 0x2de   : > { %v5482_v34 = vadd.f32 %v5481_v44, %v5480_v10  ;;  %v5483_v36 = vpop.f32.mrb[142].mxu1  ;;  %3693 = vmatmul.mubr.bf16.gmra.mrb[136].mxu0 %v3490_v3 }
 0x2df   : > { %v5484_v58 = vpop.f32.mrb[143].mxu1  ;;  %3702 = vmatprep.mubr.bf16.mxu0 %v5959_v1  ;;  %v7513_v2 = vrot.slane %v3508_v7, %v3512_v8  ;;  %v7515_v9 = vrot.slane %v3508_v7, %v3516_v24 }
 0x2e0   : > { %v3466_v47 = vadd.f32 %v5482_v34, %v3064_v51  ;;  %v5485_v26 = vadd.f32 %v5484_v58, %v5483_v36 }
 0x2e2   : > { %v3467_v43 = vadd.f32 %v5485_v26, %v3065_v41  ;;  %v3482_v60 = vmax.f32 %v3466_v47, 0.0 }
 0x2e4   : > { %v3483_v62 = vmax.f32 %v3467_v43, 0.0 }
 0x2e6   : > { %v3491_v13 = vpack.c.bf16 %v3483_v62, %v3482_v60 }
 0x2e8   : > { %3703 = vmatmul.mubr.bf16.gmra.mrb[140].mxu0 %v3491_v13 }
 0x369   : > { %v3634_v1 = vpop.f32.mrb[112].mxu0 }
 0x36a   : > { %v7518_v30 = vadd.f32 %v3634_v1, %v7513_v2  ;;  %v3636_v11 = vpop.f32.mrb[113].mxu0 }
 0x36b   : > { %v7521_v32 = vadd.f32 %v3636_v11, %v7515_v9  ;;  %v3638_v31 = vpop.f32.mrb[114].mxu0 }
 0x36c   : > { %v7524_v40 = vadd.f32 %v3638_v31, %v7513_v2  ;;  %v3640_v63 = vpop.f32.mrb[115].mxu0 }
 0x36d   : > { %v3713_v52 = vmax.f32 %v7518_v30, %v7521_v32  ;;  %v7529_v12 = vadd.f32 %v3640_v63, %v7515_v9 }
 0x36f   : > { %v3716_v16 = vmax.f32 %v7524_v40, %v7529_v12  ;;  %3714 = vmax.xlane.f32.xlu1 %v3713_v52 }
 0x371   : > { %3717 = vmax.xlane.f32.xlu0 %v3716_v16 }
 0x373   : > { %v3644_v14 = vpop.f32.mrb[116].mxu0 }
 0x374   : > { %v7534_v48 = vadd.f32 %v3644_v14, %v7513_v2  ;;  %v3646_v29 = vpop.f32.mrb[117].mxu0 }
 0x375   : > { %v7537_v19 = vadd.f32 %v3646_v29, %v7515_v9  ;;  %v3648_v20 = vpop.f32.mrb[118].mxu0 }
 0x376   : > { %v7540_v27 = vadd.f32 %v3648_v20, %v7513_v2  ;;  %v3650_v23 = vpop.f32.mrb[119].mxu0 }
 0x377   : > { %v3719_v0 = vmax.f32 %v7534_v48, %v7537_v19  ;;  %v7545_v54 = vadd.f32 %v3650_v23, %v7515_v9 }
 0x379   : > { %v3722_v18 = vmax.f32 %v7540_v27, %v7545_v54  ;;  %3720 = vmax.xlane.f32.xlu0 %v3719_v0 }
 0x37b   : > { %3723 = vmax.xlane.f32.xlu1 %v3722_v18 }
 0x381   : > { %v3654_v15 = vpop.f32.mrb[120].mxu0 }
 0x382   : > { %v7550_v25 = vadd.f32 %v3654_v15, %v7513_v2  ;;  %v3656_v53 = vpop.f32.mrb[121].mxu0 }
 0x383   : > { %v7553_v21 = vadd.f32 %v3656_v53, %v7515_v9  ;;  %v3658_v50 = vpop.f32.mrb[122].mxu0 }
 0x384   : > { %v7556_v49 = vadd.f32 %v3658_v50, %v7513_v2  ;;  %v3660_v33 = vpop.f32.mrb[123].mxu0 }
 0x385   : > { %v3725_v38 = vmax.f32 %v7550_v25, %v7553_v21  ;;  %v7561_v57 = vadd.f32 %v3660_v33, %v7515_v9 }
 0x387   : > { %v3728_v28 = vmax.f32 %v7556_v49, %v7561_v57  ;;  %3726 = vmax.xlane.f32.xlu0 %v3725_v38 }
 0x389   : > { %3729 = vmax.xlane.f32.xlu1 %v3728_v28 }
 0x38b   : > { %v3664_v22 = vpop.f32.mrb[124].mxu0 }
 0x38c   : > { %v7566_v39 = vadd.f32 %v3664_v22, %v7513_v2  ;;  %v3666_v17 = vpop.f32.mrb[125].mxu0 }
 0x38d   : > { %v7569_v35 = vadd.f32 %v3666_v17, %v7515_v9  ;;  %v3668_v37 = vpop.f32.mrb[126].mxu0 }
 0x38e   : > { %v7572_v46 = vadd.f32 %v3668_v37, %v7513_v2  ;;  %v3670_v59 = vpop.f32.mrb[127].mxu0 }
 0x38f   : > { %v3731_v45 = vmax.f32 %v7566_v39, %v7569_v35  ;;  %v7577_v6 = vadd.f32 %v3670_v59, %v7515_v9 }
 0x391   : > { %v3734_v5 = vmax.f32 %v7572_v46, %v7577_v6  ;;  %3732 = vmax.xlane.f32.xlu0 %v3731_v45 }
 0x393   : > { %3735 = vmax.xlane.f32.xlu1 %v3734_v5 }
 0x399   : > { %v3674_v42 = vpop.f32.mrb[128].mxu0 }
 0x39a   : > { %v7582_v61 = vadd.f32 %v3674_v42, %v7513_v2  ;;  %v3676_v55 = vpop.f32.mrb[129].mxu0 }
 0x39b   : > { %v7585_v51 = vadd.f32 %v3676_v55, %v7515_v9  ;;  %v3678_v56 = vpop.f32.mrb[130].mxu0 }
 0x39c   : > { %v7588_v10 = vadd.f32 %v3678_v56, %v7513_v2  ;;  %v3680_v3 = vpop.f32.mrb[131].mxu0 }
 0x39d   : > { %v3737_v41 = vmax.f32 %v7582_v61, %v7585_v51  ;;  %v7593_v44 = vadd.f32 %v3680_v3, %v7515_v9 }
 0x39f   : > { %v3740_v34 = vmax.f32 %v7588_v10, %v7593_v44  ;;  %3738 = vmax.xlane.f32.xlu0 %v3737_v41 }
 0x3a1   : > { %3741 = vmax.xlane.f32.xlu1 %v3740_v34 }
 0x3a3   : > { %v3684_v36 = vpop.f32.mrb[132].mxu0 }
 0x3a4   : > { %v7598_v58 = vadd.f32 %v3684_v36, %v7513_v2  ;;  %v3686_v47 = vpop.f32.mrb[133].mxu0 }
 0x3a5   : > { %v7601_v26 = vadd.f32 %v3686_v47, %v7515_v9  ;;  %v3688_v43 = vpop.f32.mrb[134].mxu0 }
 0x3a6   : > { %v7604_v60 = vadd.f32 %v3688_v43, %v7513_v2  ;;  %v3690_v62 = vpop.f32.mrb[135].mxu0 }
 0x3a7   : > { %v3743_v13 = vmax.f32 %v7598_v58, %v7601_v26  ;;  %v7609_v4 = vadd.f32 %v3690_v62, %v7515_v9 }
 0x3a9   : > { %v3746_v8 = vmax.f32 %v7604_v60, %v7609_v4  ;;  %3744 = vmax.xlane.f32.xlu0 %v3743_v13 }
 0x3ab   : > { %3747 = vmax.xlane.f32.xlu1 %v3746_v8 }
 0x3b1   : > { %v3694_v7 = vpop.f32.mrb[136].mxu0 }
 0x3b2   : > { %v7614_v24 = vadd.f32 %v3694_v7, %v7513_v2  ;;  %v3696_v1 = vpop.f32.mrb[137].mxu0 }
 0x3b3   : > { %v7617_v11 = vadd.f32 %v3696_v1, %v7515_v9  ;;  %v3698_v31 = vpop.f32.mrb[138].mxu0 }
 0x3b4   : > { %v7620_v63 = vadd.f32 %v3698_v31, %v7513_v2  ;;  %v3700_v52 = vpop.f32.mrb[139].mxu0 }
 0x3b5   : > { %v3749_v16 = vmax.f32 %v7614_v24, %v7617_v11  ;;  %v7625_v14 = vadd.f32 %v3700_v52, %v7515_v9 }
 0x3b7   : > { %v3752_v29 = vmax.f32 %v7620_v63, %v7625_v14  ;;  %3750 = vmax.xlane.f32.xlu0 %v3749_v16 }
 0x3b9   : > { %3753 = vmax.xlane.f32.xlu1 %v3752_v29 }
 0x3bb   : > { %v3704_v20 = vpop.f32.mrb[140].mxu0 }
 0x3bc   : > { %v7630_v23 = vadd.f32 %v3704_v20, %v7513_v2  ;;  %v3706_v0 = vpop.f32.mrb[141].mxu0 }
 0x3bd   : > { %v7633_v18 = vadd.f32 %v3706_v0, %v7515_v9  ;;  %v3708_v15 = vpop.f32.mrb[142].mxu0 }
 0x3be   : > { %v7636_v53 = vadd.f32 %v3708_v15, %v7513_v2  ;;  %v3710_v50 = vpop.f32.mrb[143].mxu0 }
 0x3bf   : > { %v3755_v33 = vmax.f32 %v7630_v23, %v7633_v18  ;;  %v7641_v38 = vadd.f32 %v3710_v50, %v7515_v9 }
 0x3c1   : > { %v3758_v28 = vmax.f32 %v7636_v53, %v7641_v38  ;;  %3756 = vmax.xlane.f32.xlu0 %v3755_v33 }
 0x3c3   : > { %3759 = vmax.xlane.f32.xlu1 %v3758_v28 }
 0x3fc   : > { %v3715_v22 = vpop.xlane.xlu1 %3714 }
 0x3fd   : > { %v7646_v17 = vsub.f32 %v7518_v30, %v3715_v22  ;;  %v7649_v37 = vsub.f32 %v7521_v32, %v3715_v22 }
 0x3fe   : > { %v3718_v2 = vpop.xlane.xlu0 %3717 }
 0x3ff   : > { %v3793_v59 = vmul.f32 1.442695, %v7646_v17  ;;  %v3795_v45 = vmul.f32 1.442695, %v7649_v37  ;;  %v7654_v9 = vsub.f32 %v7524_v40, %v3718_v2  ;;  %v7657_v5 = vsub.f32 %v7529_v12, %v3718_v2 }
 0x401   : > { %5781 = vpow2.f32 %v3793_v59  ;;  %v3797_v42 = vmul.f32 1.442695, %v7654_v9  ;;  %v3799_v30 = vmul.f32 1.442695, %v7657_v5 }
 0x402   : > { %5783 = vpow2.f32 %v3795_v45 }
 0x403   : > { %5785 = vpow2.f32 %v3797_v42 }
 0x404   : > { %5787 = vpow2.f32 %v3799_v30 }
 0x406   : > { %v3721_v32 = vpop.xlane.xlu0 %3720 }
 0x407   : > { %v7662_v55 = vsub.f32 %v7534_v48, %v3721_v32  ;;  %v7665_v56 = vsub.f32 %v7537_v19, %v3721_v32 }
 0x408   : > { %v3724_v40 = vpop.xlane.xlu1 %3723 }
 0x409   : > { %v3801_v3 = vmul.f32 1.442695, %v7662_v55  ;;  %v3803_v12 = vmul.f32 1.442695, %v7665_v56  ;;  %v7670_v41 = vsub.f32 %v7540_v27, %v3724_v40  ;;  %v7673_v34 = vsub.f32 %v7545_v54, %v3724_v40 }
 0x40b   : > { %v5782_v36 = vpop.eup %5781  ;;  %5789 = vpow2.f32 %v3801_v3  ;;  %v3805_v47 = vmul.f32 1.442695, %v7670_v41  ;;  %v3807_v48 = vmul.f32 1.442695, %v7673_v34 }
 0x40c   : > { %v5784_v43 = vpop.eup %5783  ;;  %5791 = vpow2.f32 %v3803_v12 }
 0x40d   : > { %v5786_v19 = vpop.eup %5785  ;;  %5793 = vpow2.f32 %v3805_v47  ;;  %v3857_v62 = vadd.f32 %v5784_v43, %v5782_v36 }
 0x40e   : > { %v5788_v13 = vpop.eup %5787  ;;  %5795 = vpow2.f32 %v3807_v48 }
 0x40f   : > { %3858 = vadd.xlane.f32.xlu0 %v3857_v62  ;;  %v3860_v8 = vadd.f32 %v5788_v13, %v5786_v19 }
 0x411   : > { %3861 = vadd.xlane.f32.xlu1 %v3860_v8 }
 0x414   : > { %v3727_v27 = vpop.xlane.xlu0 %3726 }
 0x415   : > { %v5790_v7 = vpop.eup %5789  ;;  %v7678_v54 = vsub.f32 %v7550_v25, %v3727_v27  ;;  %v7681_v1 = vsub.f32 %v7553_v21, %v3727_v27 }
 0x416   : > { %v5792_v31 = vpop.eup %5791  ;;  %v3730_v52 = vpop.xlane.xlu1 %3729 }
 0x417   : > { %v5794_v16 = vpop.eup %5793  ;;  %v3809_v29 = vmul.f32 1.442695, %v7678_v54  ;;  %v3811_v20 = vmul.f32 1.442695, %v7681_v1  ;;  %v7686_v0 = vsub.f32 %v7556_v49, %v3730_v52  ;;  %v7689_v15 = vsub.f32 %v7561_v57, %v3730_v52 }
 0x418   : > { %v5796_v50 = vpop.eup %5795  ;;  %v3863_v33 = vadd.f32 %v5792_v31, %v5790_v7 }
 0x419   : > { %5797 = vpow2.f32 %v3809_v29  ;;  %v3813_v25 = vmul.f32 1.442695, %v7686_v0  ;;  %v3815_v21 = vmul.f32 1.442695, %v7689_v15  ;;  %v3866_v28 = vadd.f32 %v5796_v50, %v5794_v16 }
 0x41a   : > { %5799 = vpow2.f32 %v3811_v20  ;;  %3864 = vadd.xlane.f32.xlu0 %v3863_v33 }
 0x41b   : > { %5801 = vpow2.f32 %v3813_v25  ;;  %3867 = vadd.xlane.f32.xlu1 %v3866_v28 }
 0x41c   : > { %5803 = vpow2.f32 %v3815_v21 }
 0x41e   : > { %v3733_v22 = vpop.xlane.xlu0 %3732 }
 0x41f   : > { %v7694_v49 = vsub.f32 %v7566_v39, %v3733_v22  ;;  %v7697_v57 = vsub.f32 %v7569_v35, %v3733_v22 }
 0x420   : > { %v3736_v2 = vpop.xlane.xlu1 %3735 }
 0x421   : > { %v3817_v59 = vmul.f32 1.442695, %v7694_v49  ;;  %v3819_v45 = vmul.f32 1.442695, %v7697_v57  ;;  %v7702_v42 = vsub.f32 %v7572_v46, %v3736_v2  ;;  %v7705_v30 = vsub.f32 %v7577_v6, %v3736_v2 }
 0x423   : > { %v5798_v32 = vpop.eup %5797  ;;  %5805 = vpow2.f32 %v3817_v59  ;;  %v3821_v40 = vmul.f32 1.442695, %v7702_v42  ;;  %v3823_v39 = vmul.f32 1.442695, %v7705_v30 }
 0x424   : > { %v5800_v3 = vpop.eup %5799  ;;  %5807 = vpow2.f32 %v3819_v45 }
 0x425   : > { %v5802_v35 = vpop.eup %5801  ;;  %5809 = vpow2.f32 %v3821_v40  ;;  %v3869_v12 = vadd.f32 %v5800_v3, %v5798_v32 }
 0x426   : > { %v5804_v36 = vpop.eup %5803  ;;  %5811 = vpow2.f32 %v3823_v39 }
 0x427   : > { %3870 = vadd.xlane.f32.xlu0 %v3869_v12  ;;  %v3872_v47 = vadd.f32 %v5804_v36, %v5802_v35 }
 0x429   : > { %3873 = vadd.xlane.f32.xlu1 %v3872_v47 }
 0x42c   : > { %v3739_v46 = vpop.xlane.xlu0 %3738 }
 0x42d   : > { %v5806_v48 = vpop.eup %5805  ;;  %v7710_v6 = vsub.f32 %v7582_v61, %v3739_v46  ;;  %v7713_v43 = vsub.f32 %v7585_v51, %v3739_v46 }
 0x42e   : > { %v5808_v19 = vpop.eup %5807  ;;  %v3742_v62 = vpop.xlane.xlu1 %3741 }
 0x42f   : > { %v5810_v13 = vpop.eup %5809  ;;  %v3825_v8 = vmul.f32 1.442695, %v7710_v6  ;;  %v3827_v27 = vmul.f32 1.442695, %v7713_v43  ;;  %v7718_v7 = vsub.f32 %v7588_v10, %v3742_v62  ;;  %v7721_v31 = vsub.f32 %v7593_v44, %v3742_v62 }
 0x430   : > { %v5812_v52 = vpop.eup %5811  ;;  %v3875_v16 = vadd.f32 %v5808_v19, %v5806_v48 }
 0x431   : > { %5813 = vpow2.f32 %v3825_v8  ;;  %v3829_v61 = vmul.f32 1.442695, %v7718_v7  ;;  %v3831_v51 = vmul.f32 1.442695, %v7721_v31  ;;  %v3878_v29 = vadd.f32 %v5812_v52, %v5810_v13 }
 0x432   : > { %5815 = vpow2.f32 %v3827_v27  ;;  %3876 = vadd.xlane.f32.xlu0 %v3875_v16 }
 0x433   : > { %5817 = vpow2.f32 %v3829_v61  ;;  %3879 = vadd.xlane.f32.xlu1 %v3878_v29 }
 0x434   : > { %5819 = vpow2.f32 %v3831_v51 }
 0x436   : > { %v3745_v20 = vpop.xlane.xlu0 %3744 }
 0x437   : > { %v7726_v10 = vsub.f32 %v7598_v58, %v3745_v20  ;;  %v7729_v44 = vsub.f32 %v7601_v26, %v3745_v20 }
 0x438   : > { %v3748_v50 = vpop.xlane.xlu1 %3747 }
 0x439   : > { %v3833_v33 = vmul.f32 1.442695, %v7726_v10  ;;  %v3835_v25 = vmul.f32 1.442695, %v7729_v44  ;;  %v7734_v21 = vsub.f32 %v7604_v60, %v3748_v50  ;;  %v7737_v28 = vsub.f32 %v7609_v4, %v3748_v50 }
 0x43b   : > { %v5814_v22 = vpop.eup %5813  ;;  %5821 = vpow2.f32 %v3833_v33  ;;  %v3837_v2 = vmul.f32 1.442695, %v7734_v21  ;;  %v3839_v58 = vmul.f32 1.442695, %v7737_v28 }
 0x43c   : > { %v5816_v59 = vpop.eup %5815  ;;  %5823 = vpow2.f32 %v3835_v25 }
 0x43d   : > { %v5818_v26 = vpop.eup %5817  ;;  %5825 = vpow2.f32 %v3837_v2  ;;  %v3881_v45 = vadd.f32 %v5816_v59, %v5814_v22 }
 0x43e   : > { %v5820_v32 = vpop.eup %5819  ;;  %5827 = vpow2.f32 %v3839_v58 }
 0x43f   : > { %3882 = vadd.xlane.f32.xlu0 %v3881_v45  ;;  %v3884_v40 = vadd.f32 %v5820_v32, %v5818_v26 }
 0x441   : > { %3885 = vadd.xlane.f32.xlu1 %v3884_v40 }
 0x444   : > { %v3751_v60 = vpop.xlane.xlu0 %3750 }
 0x445   : > { %v5822_v39 = vpop.eup %5821  ;;  %v7742_v4 = vsub.f32 %v7614_v24, %v3751_v60  ;;  %v7745_v3 = vsub.f32 %v7617_v11, %v3751_v60 }
 0x446   : > { %v5824_v35 = vpop.eup %5823  ;;  %v3754_v12 = vpop.xlane.xlu1 %3753 }
 0x447   : > { %v5826_v36 = vpop.eup %5825  ;;  %v3841_v47 = vmul.f32 1.442695, %v7742_v4  ;;  %v3843_v46 = vmul.f32 1.442695, %v7745_v3  ;;  %v7750_v48 = vsub.f32 %v7620_v63, %v3754_v12  ;;  %v7753_v19 = vsub.f32 %v7625_v14, %v3754_v12 }
 0x448   : > { %v5828_v62 = vpop.eup %5827  ;;  %v3887_v13 = vadd.f32 %v5824_v35, %v5822_v39 }
 0x449   : > { %5829 = vpow2.f32 %v3841_v47  ;;  %v3845_v24 = vmul.f32 1.442695, %v7750_v48  ;;  %v3847_v11 = vmul.f32 1.442695, %v7753_v19  ;;  %v3890_v8 = vadd.f32 %v5828_v62, %v5826_v36 }
 0x44a   : > { %5831 = vpow2.f32 %v3843_v46  ;;  %3888 = vadd.xlane.f32.xlu0 %v3887_v13 }
 0x44b   : > { %5833 = vpow2.f32 %v3845_v24  ;;  %3891 = vadd.xlane.f32.xlu1 %v3890_v8 }
 0x44c   : > { %5835 = vpow2.f32 %v3847_v11 }
 0x44e   : > { %v3757_v27 = vpop.xlane.xlu0 %3756 }
 0x44f   : > { %v7758_v63 = vsub.f32 %v7630_v23, %v3757_v27  ;;  %v7761_v14 = vsub.f32 %v7633_v18, %v3757_v27 }
 0x450   : > { %v3760_v52 = vpop.xlane.xlu1 %3759 }
 0x451   : > { %v3849_v16 = vmul.f32 1.442695, %v7758_v63  ;;  %v3851_v61 = vmul.f32 1.442695, %v7761_v14  ;;  %v7766_v51 = vsub.f32 %v7636_v53, %v3760_v52  ;;  %v7769_v29 = vsub.f32 %v7641_v38, %v3760_v52 }
 0x453   : > { %v5830_v20 = vpop.eup %5829  ;;  %5837 = vpow2.f32 %v3849_v16  ;;  %v3853_v50 = vmul.f32 1.442695, %v7766_v51  ;;  %v3855_v23 = vmul.f32 1.442695, %v7769_v29 }
 0x454   : > { %v5832_v33 = vpop.eup %5831  ;;  %5839 = vpow2.f32 %v3851_v61 }
 0x455   : > { %v5834_v18 = vpop.eup %5833  ;;  %5841 = vpow2.f32 %v3853_v50  ;;  %v3893_v25 = vadd.f32 %v5832_v33, %v5830_v20 }
 0x456   : > { %v5836_v22 = vpop.eup %5835  ;;  %5843 = vpow2.f32 %v3855_v23 }
 0x457   : > { %3894 = vadd.xlane.f32.xlu0 %v3893_v25  ;;  %v3896_v53 = vadd.f32 %v5836_v22, %v5834_v18 }
 0x459   : > { %3897 = vadd.xlane.f32.xlu1 %v3896_v53 }
 0x45d   : > { %v5838_v38 = vpop.eup %5837 }
 0x45e   : > { %v5840_v2 = vpop.eup %5839 }
 0x45f   : > { %v5842_v58 = vpop.eup %5841  ;;  %v3899_v59 = vadd.f32 %v5840_v2, %v5838_v38 }
 0x460   : > { %v5844_v26 = vpop.eup %5843 }
 0x461   : > { %3900 = vadd.xlane.f32.xlu0 %v3899_v59  ;;  %v3902_v45 = vadd.f32 %v5844_v26, %v5842_v58 }
 0x463   : > { %3903 = vadd.xlane.f32.xlu1 %v3902_v45 }
 0x49c   : > { %v3859_v32 = vpop.xlane.xlu0 %3858 }
 0x49d   : > { %5845 = vlog2.f32 %v3859_v32 }
 0x49e   : > { %v3862_v40 = vpop.xlane.xlu1 %3861 }
 0x49f   : > { %5847 = vlog2.f32 %v3862_v40 }
 0x4a7   : > { %v5846_v60 = vpop.eup %5845  ;;  %v3865_v39 = vpop.xlane.xlu0 %3864 }
 0x4a8   : > { %v3906_v35 = vmul.f32 0.6931472, %v5846_v60  ;;  %5849 = vlog2.f32 %v3865_v39  ;;  %v3868_v12 = vpop.xlane.xlu1 %3867 }
 0x4a9   : > { %v5848_v36 = vpop.eup %5847  ;;  %5851 = vlog2.f32 %v3868_v12 }
 0x4aa   : > { %v3937_v47 = vsub.f32 %v7646_v17, %v3906_v35  ;;  %v3938_v46 = vsub.f32 %v7649_v37, %v3906_v35  ;;  %v3908_v62 = vmul.f32 0.6931472, %v5848_v36 }
 0x4ac   : > { %3969 = vst [vmem:[%s7778_s15] sm:$0xff] %v3937_v47  ;;  %3970 = vst [vmem:[%s7778_s15 + $0x8] sm:$0xff] %v3938_v46  ;;  %v3939_v13 = vsub.f32 %v7654_v9, %v3908_v62  ;;  %v3940_v24 = vsub.f32 %v7657_v5, %v3908_v62 }
 0x4ae   : > { %3971 = vst [vmem:[%s7778_s15 + $0x10] sm:$0xff] %v3939_v13  ;;  %3972 = vst [vmem:[%s7778_s15 + $0x18] sm:$0xff] %v3940_v24 }
 0x4b2   : > { %v5850_v17 = vpop.eup %5849 }
 0x4b3   : > { %v5852_v37 = vpop.eup %5851  ;;  %v3910_v11 = vmul.f32 0.6931472, %v5850_v17 }
 0x4b4   : > { %v3912_v8 = vmul.f32 0.6931472, %v5852_v37  ;;  %v3871_v27 = vpop.xlane.xlu0 %3870 }
 0x4b5   : > { %v3941_v52 = vsub.f32 %v7662_v55, %v3910_v11  ;;  %v3942_v16 = vsub.f32 %v7665_v56, %v3910_v11  ;;  %5853 = vlog2.f32 %v3871_v27 }
 0x4b6   : > { %v3943_v61 = vsub.f32 %v7670_v41, %v3912_v8  ;;  %v3944_v9 = vsub.f32 %v7673_v34, %v3912_v8  ;;  %v3874_v20 = vpop.xlane.xlu1 %3873 }
 0x4b7   : > { %3973 = vst [vmem:[%s7778_s15 + $0x20] sm:$0xff] %v3941_v52  ;;  %3974 = vst [vmem:[%s7778_s15 + $0x28] sm:$0xff] %v3942_v16  ;;  %5855 = vlog2.f32 %v3874_v20 }
 0x4b8   : > { %3975 = vst [vmem:[%s7778_s15 + $0x30] sm:$0xff] %v3943_v61  ;;  %3976 = vst [vmem:[%s7778_s15 + $0x38] sm:$0xff] %v3944_v9 }
 0x4bf   : > { %v5854_v5 = vpop.eup %5853  ;;  %v3877_v50 = vpop.xlane.xlu0 %3876 }
 0x4c0   : > { %v3914_v55 = vmul.f32 0.6931472, %v5854_v5  ;;  %5857 = vlog2.f32 %v3877_v50  ;;  %v3880_v56 = vpop.xlane.xlu1 %3879 }
 0x4c1   : > { %v5856_v23 = vpop.eup %5855  ;;  %5859 = vlog2.f32 %v3880_v56 }
 0x4c2   : > { %v3945_v41 = vsub.f32 %v7678_v54, %v3914_v55  ;;  %v3946_v34 = vsub.f32 %v7681_v1, %v3914_v55  ;;  %v3916_v33 = vmul.f32 0.6931472, %v5856_v23 }
 0x4c4   : > { %3977 = vst [vmem:[%s7778_s15 + $0x40] sm:$0xff] %v3945_v41  ;;  %3978 = vst [vmem:[%s7778_s15 + $0x48] sm:$0xff] %v3946_v34  ;;  %v3947_v18 = vsub.f32 %v7686_v0, %v3916_v33  ;;  %v3948_v25 = vsub.f32 %v7689_v15, %v3916_v33 }
 0x4c6   : > { %3979 = vst [vmem:[%s7778_s15 + $0x50] sm:$0xff] %v3947_v18  ;;  %3980 = vst [vmem:[%s7778_s15 + $0x58] sm:$0xff] %v3948_v25 }
 0x4ca   : > { %v5858_v22 = vpop.eup %5857 }
 0x4cb   : > { %v5860_v53 = vpop.eup %5859  ;;  %v3918_v38 = vmul.f32 0.6931472, %v5858_v22 }
 0x4cc   : > { %v3920_v2 = vmul.f32 0.6931472, %v5860_v53  ;;  %v3883_v54 = vpop.xlane.xlu0 %3882 }
 0x4cd   : > { %v3949_v1 = vsub.f32 %v7694_v49, %v3918_v38  ;;  %v3950_v58 = vsub.f32 %v7697_v57, %v3918_v38  ;;  %5861 = vlog2.f32 %v3883_v54 }
 0x4ce   : > { %v3951_v59 = vsub.f32 %v7702_v42, %v3920_v2  ;;  %v3952_v0 = vsub.f32 %v7705_v30, %v3920_v2  ;;  %v3886_v26 = vpop.xlane.xlu1 %3885 }
 0x4cf   : > { %3981 = vst [vmem:[%s7778_s15 + $0x60] sm:$0xff] %v3949_v1  ;;  %3982 = vst [vmem:[%s7778_s15 + $0x68] sm:$0xff] %v3950_v58  ;;  %5863 = vlog2.f32 %v3886_v26 }
 0x4d0   : > { %3983 = vst [vmem:[%s7778_s15 + $0x70] sm:$0xff] %v3951_v59  ;;  %3984 = vst [vmem:[%s7778_s15 + $0x78] sm:$0xff] %v3952_v0 }
 0x4d7   : > { %v5862_v15 = vpop.eup %5861  ;;  %v3889_v45 = vpop.xlane.xlu0 %3888 }
 0x4d8   : > { %v3922_v49 = vmul.f32 0.6931472, %v5862_v15  ;;  %5865 = vlog2.f32 %v3889_v45  ;;  %v3892_v57 = vpop.xlane.xlu1 %3891 }
 0x4d9   : > { %v5864_v32 = vpop.eup %5863  ;;  %5867 = vlog2.f32 %v3892_v57 }
 0x4da   : > { %v3953_v42 = vsub.f32 %v7710_v6, %v3922_v49  ;;  %v3954_v30 = vsub.f32 %v7713_v43, %v3922_v49  ;;  %v3924_v40 = vmul.f32 0.6931472, %v5864_v32 }
 0x4dc   : > { %3985 = vst [vmem:[%s7778_s15 + $0x80] sm:$0xff] %v3953_v42  ;;  %3986 = vst [vmem:[%s7778_s15 + $0x88] sm:$0xff] %v3954_v30  ;;  %v3955_v60 = vsub.f32 %v7718_v7, %v3924_v40  ;;  %v3956_v39 = vsub.f32 %v7721_v31, %v3924_v40 }
 0x4de   : > { %3987 = vst [vmem:[%s7778_s15 + $0x90] sm:$0xff] %v3955_v60  ;;  %3988 = vst [vmem:[%s7778_s15 + $0x98] sm:$0xff] %v3956_v39 }
 0x4e2   : > { %v5866_v35 = vpop.eup %5865 }
 0x4e3   : > { %v5868_v12 = vpop.eup %5867  ;;  %v3926_v36 = vmul.f32 0.6931472, %v5866_v35 }
 0x4e4   : > { %v3928_v47 = vmul.f32 0.6931472, %v5868_v12  ;;  %v3895_v6 = vpop.xlane.xlu0 %3894 }
 0x4e5   : > { %v3957_v43 = vsub.f32 %v7726_v10, %v3926_v36  ;;  %v3958_v46 = vsub.f32 %v7729_v44, %v3926_v36  ;;  %5869 = vlog2.f32 %v3895_v6 }
 0x4e6   : > { %v3959_v62 = vsub.f32 %v7734_v21, %v3928_v47  ;;  %v3960_v7 = vsub.f32 %v7737_v28, %v3928_v47  ;;  %v3898_v13 = vpop.xlane.xlu1 %3897 }
 0x4e7   : > { %3989 = vst [vmem:[%s7778_s15 + $0xa0] sm:$0xff] %v3957_v43  ;;  %3990 = vst [vmem:[%s7778_s15 + $0xa8] sm:$0xff] %v3958_v46  ;;  %5871 = vlog2.f32 %v3898_v13 }
 0x4e8   : > { %3991 = vst [vmem:[%s7778_s15 + $0xb0] sm:$0xff] %v3959_v62  ;;  %3992 = vst [vmem:[%s7778_s15 + $0xb8] sm:$0xff] %v3960_v7 }
 0x4ee   : > { %v3901_v31 = vpop.xlane.xlu0 %3900 }
 0x4ef   : > { %v5870_v24 = vpop.eup %5869  ;;  %5873 = vlog2.f32 %v3901_v31 }
 0x4f0   : > { %v3930_v10 = vmul.f32 0.6931472, %v5870_v24  ;;  %v3904_v44 = vpop.xlane.xlu1 %3903 }
 0x4f1   : > { %v5872_v21 = vpop.eup %5871  ;;  %5875 = vlog2.f32 %v3904_v44 }
 0x4f2   : > { %v3961_v28 = vsub.f32 %v7742_v4, %v3930_v10  ;;  %v3962_v17 = vsub.f32 %v7745_v3, %v3930_v10  ;;  %v3932_v37 = vmul.f32 0.6931472, %v5872_v21 }
 0x4f4   : > { %3993 = vst [vmem:[%s7778_s15 + $0xc0] sm:$0xff] %v3961_v28  ;;  %3994 = vst [vmem:[%s7778_s15 + $0xc8] sm:$0xff] %v3962_v17  ;;  %v3963_v11 = vsub.f32 %v7750_v48, %v3932_v37  ;;  %v3964_v8 = vsub.f32 %v7753_v19, %v3932_v37 }
 0x4f6   : > { %3995 = vst [vmem:[%s7778_s15 + $0xd0] sm:$0xff] %v3963_v11  ;;  %3996 = vst [vmem:[%s7778_s15 + $0xd8] sm:$0xff] %v3964_v8 }
 0x4f9   : > { %v5874_v27 = vpop.eup %5873 }
 0x4fa   : > { %v3934_v52 = vmul.f32 0.6931472, %v5874_v27 }
 0x4fb   : > { %v5876_v4 = vpop.eup %5875 }
 0x4fc   : > { %v3965_v3 = vsub.f32 %v7758_v63, %v3934_v52  ;;  %v3966_v16 = vsub.f32 %v7761_v14, %v3934_v52  ;;  %v3936_v61 = vmul.f32 0.6931472, %v5876_v4 }
 0x4fe   : > { %3997 = vst [vmem:[%s7778_s15 + $0xe0] sm:$0xff] %v3965_v3  ;;  %3998 = vst [vmem:[%s7778_s15 + $0xe8] sm:$0xff] %v3966_v16  ;;  %v3967_v48 = vsub.f32 %v7766_v51, %v3936_v61  ;;  %v3968_v19 = vsub.f32 %v7769_v29, %v3936_v61 }
 0x500   : > { %3999 = vst [vmem:[%s7778_s15 + $0xf0] sm:$0xff] %v3967_v48  ;;  %4000 = vst [vmem:[%s7778_s15 + $0xf8] sm:$0xff] %v3968_v19 }
 0x501   : > { %5908 = shalt.err (!%p5905_p3)
}
 0x502   : > { %s5909_s25 = scalar_lea.hbm %s7841_s30, 4096  ;;  %s5913_s12 = scalar_lea.hbm %s7899_s5, 8192 }
 0x503   : > { %p5910_p4 = scmp.ne.s32.totalorder %s7841_s30, %s5909_s25  ;;  %p5914_p9 = scmp.lt.u32.totalorder %s7841_s30, %s7899_s5 }
 0x504   : > { %p5915_p10 = scmp.lt.u32.totalorder %s5913_s12, %s5909_s25  ;;  %p5917_p12 = scmp.lt.u32.totalorder %s5909_s25, %s7841_s30 }
 0x505   : > { %p5911_p7 = pnand %p5910_p4, %p6039_p5 }
 0x506   : > { %p5916_p11 = por %p5915_p10, %p5914_p9 }
 0x507   : > { %p5912_p8 = pneg %p5911_p7 }
 0x508   : > { %p5918_p13 = por %p5917_p12, %p5916_p11 }
 0x50a   : > { %p5919_p0 = pnand %p5918_p13, %p5912_p8 }
 0x50c   : > { %5922 = shalt.err (!%p5919_p0)
}
 0x50d   : > { %s5969_s15 = smov 256   ;;  %s5970_s16 = smov 16  }
 0x50e   : > { %5502 = dma.vmem_to_hbm [thread:$0]  (%p6039_p5), %s7843_s17, 4096, %s7841_s30, %s7853_s22, %s5969_s15, %s5969_s15, %s5970_s16  }
 0x50f PF: > { %p5508_p1 = scmp.ge.s32.totalorder %s5957_s21, 2  ;;  %s4031_s23 = sand.u32 1, %s5945_s18  }
 0x510   : > { %s4032_s26 = scalar_lea.sflag [#allocation3], %s4031_s23 }
 0x511   : > { %p5505_p2 = pnand %p5508_p1, %p6043_p6 }
 0x513   : > { %5940 = dma.done.wait (!%p5505_p2), %s4032_s26, 4096  }
 0x514   : > { %5942 = vsyncadd (!%p5505_p2), %s4032_s26, 4294963200  ;;  %p15_p3 = scmp.ge.s32.totalorder %s6026_s24, 4   ;;  %s7902_s18 = smov %s5949_s19 }
 0x515   : > { %s7903_s19 = smov %s5953_s20  ;;  %s7904_s20 = smov %s6037_s27 }
 0x516   : > { %s7905_s21 = smov %s6026_s24  ;;  %17 = sbr.rel (!%p15_p3) target bundleno = 3 (0x3), region = 82 }
 0x51d   :  { %4037 = vsyncpa [#allocation3], 1 }
 0x51e   :  { %4039 = vsyncpa [#allocation3 + $0x1], 1 }

</bundles_post_ra>
